<compile_context>
chip_gen: v7x
topology: tpu7x:2x2x1
jax: 0.10.0
libtpu: 0.0.40
codegen_flags: <defaults>
</compile_context>

<pallas_src>
import functools

import jax
import jax.numpy as jnp
from jax.experimental import pallas as pl
from jax.experimental.pallas import tpu as pltpu

_SUB = 8  # sublane width; the cls token is padded to one full sublane group


# ---------------------------------------------------------------------------
# Fused kernel: one grid step per batch element.
# ---------------------------------------------------------------------------
def _fused_attention_kernel(xp_ref, cls_ref, w_dw_ref, bn_s_ref, bn_b_ref,
                            w_q_ref, w_k_ref, w_v_ref, w_o_ref, b_o_ref,
                            o_ref, *, num_heads, scale, t_real):
    f32 = jnp.float32
    hp, wp, c = xp_ref.shape
    h, w = hp - 2, wp - 2
    hw = h * w
    tp, cout = o_ref.shape
    d = cout // num_heads

    # ---- depthwise 3x3 conv (stride 1, pad 1) + folded eval-mode BN ---------
    # The three projections (q/k/v) share the 9 shifted-window loads; tap
    # weights / BN scale / bias are loaded once before the loop.
    w_dw = w_dw_ref[...].astype(f32)              # (3, 9, 1, C)
    bn_s = bn_s_ref[...].astype(f32)              # (3, 1, C)
    bn_b = bn_b_ref[...].astype(f32)              # (3, 1, C)
    accs = [jnp.zeros((h, w, c), f32) for _ in range(3)]
    for ky in range(3):
        for kx in range(3):
            win = xp_ref[ky:ky + h, kx:kx + w, :].astype(f32)      # (H, W, C)
            for p in range(3):
                accs[p] = accs[p] + win * w_dw[p, ky * 3 + kx]     # (1, C) bcast
    cls = cls_ref[...].astype(f32)                # (8, C); row 0 = cls, rest zero

    # internal token order: [spatial(hw), cls, zero-pad] -> Tp rows, 8-aligned
    toks = []
    for p in range(3):
        conv = accs[p] * bn_s[p] + bn_b[p]                          # BN (eval)
        toks.append(jnp.concatenate([conv.reshape(hw, c), cls], axis=0))

    # ---- q/k/v linear projections (qkv_bias=False, no fake zero bias) -------
    q_all = jnp.dot(toks[0], w_q_ref[...].astype(f32), preferred_element_type=f32)
    k_all = jnp.dot(toks[1], w_k_ref[...].astype(f32), preferred_element_type=f32)
    v_all = jnp.dot(toks[2], w_v_ref[...].astype(f32), preferred_element_type=f32)

    # key-side mask: exclude the zero pad tokens from the softmax
    col = jax.lax.broadcasted_iota(jnp.int32, (tp, tp), 1)
    key_ok = col < t_real

    # ---- per-head softmax attention; head re-concat folded into out-proj ----
    w_o = w_o_ref[...].astype(f32)                # (Cout, Cout)
    acc_o = jnp.zeros((tp, cout), f32)
    for hd in range(num_heads):
        sl = slice(hd * d, (hd + 1) * d)
        q_h = q_all[:, sl]                        # (Tp, d)
        k_h = k_all[:, sl]                        # (Tp, d)
        v_h = v_all[:, sl]                        # (Tp, d)
        # NT matmul (contract last dims) -> MXU transposed-RHS path, once per
        # head per batch (no per-grid-step relayout).
        s = jax.lax.dot_general(q_h, k_h, (((1,), (1,)), ((), ())),
                                preferred_element_type=f32) * scale  # (Tp, Tp)
        s = jnp.where(key_ok, s, -1e30)
        m = jnp.max(s, axis=-1, keepdims=True)
        e = jnp.exp(s - m)
        l = jnp.sum(e, axis=-1, keepdims=True)
        pv = jnp.dot(e, v_h, preferred_element_type=f32)            # unnormalized
        o_h = pv * (1.0 / l)                      # fold 1/l after PV: (Tp,1) divide
        # fold the head re-concat into the output projection (lane-dense accum)
        acc_o = acc_o + jnp.dot(o_h, w_o[sl, :], preferred_element_type=f32)

    o_ref[...] = (acc_o + b_o_ref[...].astype(f32)).astype(o_ref.dtype)


# ---------------------------------------------------------------------------
# Full forward pass (wrapper: layout prep only, all math in the fused kernel).
# ---------------------------------------------------------------------------
def attention_forward(x, h, w, params, *, num_heads, with_cls_token=True):
    if not with_cls_token:
        raise NotImplementedError("with_cls_token=False path not implemented")
    B, T, Cin = x.shape
    Cout = params["w_q"].shape[-1]
    scale = float(Cout) ** -0.5
    HW = h * w
    Tp = HW + _SUB                                   # sublane-aligned token count
    t_real = HW + 1                                  # spatial + cls

    cls_tok = x[:, :1, :]
    x_sp = x[:, 1:, :]
    x_img = x_sp.reshape(B, h, w, Cin)               # channel-last
    xp = jnp.pad(x_img, ((0, 0), (1, 1), (1, 1), (0, 0)))      # zero pad = 1
    cls_pad = jnp.pad(cls_tok, ((0, 0), (0, _SUB - 1), (0, 0)))  # (B, 8, Cin)

    conv_w = params["conv_w"].reshape(3, 9, 1, Cin)
    bn_s = params["bn_scale"].reshape(3, 1, Cin)
    bn_b = params["bn_bias"].reshape(3, 1, Cin)
    b_o = params["b_o"].reshape(1, Cout)

    kernel = functools.partial(_fused_attention_kernel,
                               num_heads=num_heads, scale=scale, t_real=t_real)

    out_p = pl.pallas_call(
        kernel,
        out_shape=jax.ShapeDtypeStruct((B, Tp, Cout), x.dtype),
        grid=(B,),
        in_specs=[
            pl.BlockSpec((None, h + 2, w + 2, Cin), lambda b: (b, 0, 0, 0)),
            pl.BlockSpec((None, _SUB, Cin), lambda b: (b, 0, 0)),
            pl.BlockSpec((3, 9, 1, Cin), lambda b: (0, 0, 0, 0)),
            pl.BlockSpec((3, 1, Cin), lambda b: (0, 0, 0)),
            pl.BlockSpec((3, 1, Cin), lambda b: (0, 0, 0)),
            pl.BlockSpec((Cin, Cout), lambda b: (0, 0)),
            pl.BlockSpec((Cin, Cout), lambda b: (0, 0)),
            pl.BlockSpec((Cin, Cout), lambda b: (0, 0)),
            pl.BlockSpec((Cout, Cout), lambda b: (0, 0)),
            pl.BlockSpec((1, Cout), lambda b: (0, 0)),
        ],
        out_specs=pl.BlockSpec((None, Tp, Cout), lambda b: (b, 0, 0)),
        compiler_params=pltpu.CompilerParams(
            dimension_semantics=("parallel",)),
    )(xp, cls_pad, conv_w, bn_s, bn_b,
      params["w_q"], params["w_k"], params["w_v"], params["w_o"], b_o)

    # internal row order is [spatial(HW), cls, pad]; restore [cls, spatial].
    out = jnp.concatenate([out_p[:, HW:HW + 1, :], out_p[:, :HW, :]], axis=1)
    return out


# ---------------------------------------------------------------------------
# Pure-JAX reference mirroring the PyTorch forward (eval mode).
# ---------------------------------------------------------------------------
def _attention_ref(x, h, w, params, *, num_heads, with_cls_token=True):
    B, T, Cin = x.shape
    Cout = params["w_q"].shape[-1]
    d = Cout // num_heads
    scale = float(Cout) ** -0.5
    hp = jax.lax.Precision.HIGHEST

    cls_tok, x_sp = x[:, :1, :], x[:, 1:, :]
    x_img = x_sp.reshape(B, h, w, Cin)

    def dwconv_bn(w_dw, s, b):
        out = jax.lax.conv_general_dilated(
            x_img, w_dw.reshape(3, 3, 1, Cin),
            window_strides=(1, 1), padding=((1, 1), (1, 1)),
            dimension_numbers=("NHWC", "HWIO", "NHWC"),
            feature_group_count=Cin, precision=hp)
        return (out * s + b).reshape(B, h * w, Cin)

    toks = []
    for i in range(3):
        t = dwconv_bn(params["conv_w"][i], params["bn_scale"][i], params["bn_bias"][i])
        if with_cls_token:
            t = jnp.concatenate([cls_tok, t], axis=1)
        toks.append(t)
    q_t, k_t, v_t = toks

    q = jnp.dot(q_t, params["w_q"], precision=hp)
    k = jnp.dot(k_t, params["w_k"], precision=hp)
    v = jnp.dot(v_t, params["w_v"], precision=hp)

    def heads(t):
        return t.reshape(B, T, num_heads, d).transpose(0, 2, 1, 3)
    qh, kh, vh = heads(q), heads(k), heads(v)
    attn = jax.nn.softmax(
        jnp.einsum("bhld,bhtd->bhlt", qh, kh, precision=hp) * scale, axis=-1)
    o = jnp.einsum("bhlt,bhtd->bhld", attn, vh, precision=hp)
    o = o.transpose(0, 2, 1, 3).reshape(B, T, Cout)
    return jnp.dot(o, params["w_o"], precision=hp) + params["b_o"]


if __name__ == "__main__":
    # Small deterministic example: B=2, 8x8 spatial grid (+ cls token), 32 channels,
    # dim_out=32, 4 heads (head dim 8).
    B, H, W = 2, 8, 8
    DIM_IN, DIM_OUT, NUM_HEADS = 32, 32, 4
    T = H * W + 1                                   # with_cls_token=True

    key = jax.random.PRNGKey(0)
    ks = jax.random.split(key, 11)

    x = jax.random.normal(ks[0], (B, T, DIM_IN), jnp.float32)

    # Depthwise conv weights for the q/k/v projections, stacked: (3, 3, 3, C).
    conv_w = jax.random.normal(ks[1], (3, 3, 3, DIM_IN), jnp.float32) * (1.0 / 3.0)
    # BatchNorm2d (eval mode) parameters, folded to per-channel scale/bias.
    bn_gamma = 1.0 + 0.1 * jax.random.normal(ks[2], (3, DIM_IN), jnp.float32)
    bn_beta = 0.1 * jax.random.normal(ks[3], (3, DIM_IN), jnp.float32)
    bn_mean = 0.1 * jax.random.normal(ks[4], (3, DIM_IN), jnp.float32)
    bn_var = 1.0 + 0.1 * jax.random.uniform(ks[5], (3, DIM_IN), dtype=jnp.float32)
    eps = 1e-5
    bn_scale = bn_gamma / jnp.sqrt(bn_var + eps)
    bn_bias = bn_beta - bn_mean * bn_scale

    lin_scale = 1.0 / jnp.sqrt(jnp.float32(DIM_IN))
    params = dict(
        conv_w=conv_w, bn_scale=bn_scale, bn_bias=bn_bias,
        w_q=jax.random.normal(ks[6], (DIM_IN, DIM_OUT), jnp.float32) * lin_scale,
        w_k=jax.random.normal(ks[7], (DIM_IN, DIM_OUT), jnp.float32) * lin_scale,
        w_v=jax.random.normal(ks[8], (DIM_IN, DIM_OUT), jnp.float32) * lin_scale,
        w_o=jax.random.normal(ks[9], (DIM_OUT, DIM_OUT), jnp.float32) * lin_scale,
        b_o=0.1 * jax.random.normal(ks[10], (DIM_OUT,), jnp.float32),
    )

    fwd = jax.jit(lambda x_, p_: attention_forward(
        x_, H, W, p_, num_heads=NUM_HEADS, with_cls_token=True))
    out = fwd(x, params)
    out = jax.block_until_ready(out)

    ref = _attention_ref(x, H, W, params, num_heads=NUM_HEADS, with_cls_token=True)
    assert out.shape == (B, T, DIM_OUT), out.shape
    max_err = float(jnp.max(jnp.abs(out - ref)))
    assert jnp.allclose(out, ref, atol=1e-3, rtol=1e-3), f"max abs err = {max_err}"

    print("KERNEL_OK")
</pallas_src>

<mosaic_0001>
module attributes {stable_mosaic.version = 11 : i64} {
  func.func @_fused_attention_kernel(%arg0: i32, %arg1: memref<1x10x10x32xf32, #tpu.memory_space<vmem>>, %arg2: memref<1x8x32xf32, #tpu.memory_space<vmem>>, %arg3: memref<3x9x1x32xf32, #tpu.memory_space<vmem>>, %arg4: memref<3x1x32xf32, #tpu.memory_space<vmem>>, %arg5: memref<3x1x32xf32, #tpu.memory_space<vmem>>, %arg6: memref<32x32xf32, #tpu.memory_space<vmem>>, %arg7: memref<32x32xf32, #tpu.memory_space<vmem>>, %arg8: memref<32x32xf32, #tpu.memory_space<vmem>>, %arg9: memref<32x32xf32, #tpu.memory_space<vmem>>, %arg10: memref<1x32xf32, #tpu.memory_space<vmem>>, %arg11: memref<1x72x32xf32, #tpu.memory_space<vmem>>) attributes {dimension_semantics = [#tpu.dimension_semantics<parallel>], iteration_bounds = array<i64: 2>, scalar_prefetch = 0 : i64, scratch_operands = 0 : i64, tpu.core_type = #tpu.core_type<tc>, window_params = [{transform_indices = @transform_0, window_bounds = array<i64: 1, 10, 10, 32>}, {transform_indices = @transform_1, window_bounds = array<i64: 1, 8, 32>}, {pipeline_mode = #tpu.pipeline_mode<synchronous>, transform_indices = @transform_2, window_bounds = array<i64: 3, 9, 1, 32>}, {pipeline_mode = #tpu.pipeline_mode<synchronous>, transform_indices = @transform_3, window_bounds = array<i64: 3, 1, 32>}, {pipeline_mode = #tpu.pipeline_mode<synchronous>, transform_indices = @transform_4, window_bounds = array<i64: 3, 1, 32>}, {pipeline_mode = #tpu.pipeline_mode<synchronous>, transform_indices = @transform_5, window_bounds = array<i64: 32, 32>}, {pipeline_mode = #tpu.pipeline_mode<synchronous>, transform_indices = @transform_6, window_bounds = array<i64: 32, 32>}, {pipeline_mode = #tpu.pipeline_mode<synchronous>, transform_indices = @transform_7, window_bounds = array<i64: 32, 32>}, {pipeline_mode = #tpu.pipeline_mode<synchronous>, transform_indices = @transform_8, window_bounds = array<i64: 32, 32>}, {pipeline_mode = #tpu.pipeline_mode<synchronous>, transform_indices = @transform_9, window_bounds = array<i64: 1, 32>}, {transform_indices = @transform_10, window_bounds = array<i64: 1, 72, 32>}]} {
    %c0 = arith.constant 0 : index
    %c0_0 = arith.constant 0 : index
    %c0_1 = arith.constant 0 : index
    %c0_2 = arith.constant 0 : index
    %0 = vector.load %arg3[%c0, %c0_0, %c0_1, %c0_2] : memref<3x9x1x32xf32, #tpu.memory_space<vmem>>, vector<3x9x1x32xf32>
    %c0_3 = arith.constant 0 : index
    %c0_4 = arith.constant 0 : index
    %c0_5 = arith.constant 0 : index
    %1 = vector.load %arg4[%c0_3, %c0_4, %c0_5] : memref<3x1x32xf32, #tpu.memory_space<vmem>>, vector<3x1x32xf32>
    %c0_6 = arith.constant 0 : index
    %c0_7 = arith.constant 0 : index
    %c0_8 = arith.constant 0 : index
    %2 = vector.load %arg5[%c0_6, %c0_7, %c0_8] : memref<3x1x32xf32, #tpu.memory_space<vmem>>, vector<3x1x32xf32>
    %cst = arith.constant 0.000000e+00 : f32
    %3 = vector.broadcast %cst : f32 to vector<8x8x32xf32>
    %cst_9 = arith.constant 0.000000e+00 : f32
    %4 = vector.broadcast %cst_9 : f32 to vector<8x8x32xf32>
    %cst_10 = arith.constant 0.000000e+00 : f32
    %5 = vector.broadcast %cst_10 : f32 to vector<8x8x32xf32>
    %c0_11 = arith.constant 0 : index
    %c0_12 = arith.constant 0 : index
    %c0_13 = arith.constant 0 : index
    %c0_14 = arith.constant 0 : index
    %6 = vector.load %arg1[%c0_11, %c0_12, %c0_13, %c0_14] : memref<1x10x10x32xf32, #tpu.memory_space<vmem>>, vector<1x8x8x32xf32>
    %7 = vector.shape_cast %6 : vector<1x8x8x32xf32> to vector<8x8x32xf32>
    %8 = vector.extract_strided_slice %0 {offsets = [0, 0, 0, 0], sizes = [1, 1, 1, 32], strides = [1, 1, 1, 1]} : vector<3x9x1x32xf32> to vector<1x1x1x32xf32>
    %9 = vector.shape_cast %8 : vector<1x1x1x32xf32> to vector<1x32xf32>
    %10 = vector.shape_cast %9 : vector<1x32xf32> to vector<1x1x32xf32>
    %11 = vector.broadcast %10 : vector<1x1x32xf32> to vector<8x8x32xf32>
    %12 = arith.mulf %7, %11 : vector<8x8x32xf32>
    %13 = arith.addf %3, %12 : vector<8x8x32xf32>
    %14 = vector.extract_strided_slice %0 {offsets = [1, 0, 0, 0], sizes = [1, 1, 1, 32], strides = [1, 1, 1, 1]} : vector<3x9x1x32xf32> to vector<1x1x1x32xf32>
    %15 = vector.shape_cast %14 : vector<1x1x1x32xf32> to vector<1x32xf32>
    %16 = vector.shape_cast %15 : vector<1x32xf32> to vector<1x1x32xf32>
    %17 = vector.broadcast %16 : vector<1x1x32xf32> to vector<8x8x32xf32>
    %18 = arith.mulf %7, %17 : vector<8x8x32xf32>
    %19 = arith.addf %4, %18 : vector<8x8x32xf32>
    %20 = vector.extract_strided_slice %0 {offsets = [2, 0, 0, 0], sizes = [1, 1, 1, 32], strides = [1, 1, 1, 1]} : vector<3x9x1x32xf32> to vector<1x1x1x32xf32>
    %21 = vector.shape_cast %20 : vector<1x1x1x32xf32> to vector<1x32xf32>
    %22 = vector.shape_cast %21 : vector<1x32xf32> to vector<1x1x32xf32>
    %23 = vector.broadcast %22 : vector<1x1x32xf32> to vector<8x8x32xf32>
    %24 = arith.mulf %7, %23 : vector<8x8x32xf32>
    %25 = arith.addf %5, %24 : vector<8x8x32xf32>
    %c0_15 = arith.constant 0 : index
    %c0_16 = arith.constant 0 : index
    %c1 = arith.constant 1 : index
    %c0_17 = arith.constant 0 : index
    %26 = vector.load %arg1[%c0_15, %c0_16, %c1, %c0_17] : memref<1x10x10x32xf32, #tpu.memory_space<vmem>>, vector<1x8x8x32xf32>
    %27 = vector.shape_cast %26 : vector<1x8x8x32xf32> to vector<8x8x32xf32>
    %28 = vector.extract_strided_slice %0 {offsets = [0, 1, 0, 0], sizes = [1, 1, 1, 32], strides = [1, 1, 1, 1]} : vector<3x9x1x32xf32> to vector<1x1x1x32xf32>
    %29 = vector.shape_cast %28 : vector<1x1x1x32xf32> to vector<1x32xf32>
    %30 = vector.shape_cast %29 : vector<1x32xf32> to vector<1x1x32xf32>
    %31 = vector.broadcast %30 : vector<1x1x32xf32> to vector<8x8x32xf32>
    %32 = arith.mulf %27, %31 : vector<8x8x32xf32>
    %33 = arith.addf %13, %32 : vector<8x8x32xf32>
    %34 = vector.extract_strided_slice %0 {offsets = [1, 1, 0, 0], sizes = [1, 1, 1, 32], strides = [1, 1, 1, 1]} : vector<3x9x1x32xf32> to vector<1x1x1x32xf32>
    %35 = vector.shape_cast %34 : vector<1x1x1x32xf32> to vector<1x32xf32>
    %36 = vector.shape_cast %35 : vector<1x32xf32> to vector<1x1x32xf32>
    %37 = vector.broadcast %36 : vector<1x1x32xf32> to vector<8x8x32xf32>
    %38 = arith.mulf %27, %37 : vector<8x8x32xf32>
    %39 = arith.addf %19, %38 : vector<8x8x32xf32>
    %40 = vector.extract_strided_slice %0 {offsets = [2, 1, 0, 0], sizes = [1, 1, 1, 32], strides = [1, 1, 1, 1]} : vector<3x9x1x32xf32> to vector<1x1x1x32xf32>
    %41 = vector.shape_cast %40 : vector<1x1x1x32xf32> to vector<1x32xf32>
    %42 = vector.shape_cast %41 : vector<1x32xf32> to vector<1x1x32xf32>
    %43 = vector.broadcast %42 : vector<1x1x32xf32> to vector<8x8x32xf32>
    %44 = arith.mulf %27, %43 : vector<8x8x32xf32>
    %45 = arith.addf %25, %44 : vector<8x8x32xf32>
    %c0_18 = arith.constant 0 : index
    %c0_19 = arith.constant 0 : index
    %c2 = arith.constant 2 : index
    %c0_20 = arith.constant 0 : index
    %46 = vector.load %arg1[%c0_18, %c0_19, %c2, %c0_20] : memref<1x10x10x32xf32, #tpu.memory_space<vmem>>, vector<1x8x8x32xf32>
    %47 = vector.shape_cast %46 : vector<1x8x8x32xf32> to vector<8x8x32xf32>
    %48 = vector.extract_strided_slice %0 {offsets = [0, 2, 0, 0], sizes = [1, 1, 1, 32], strides = [1, 1, 1, 1]} : vector<3x9x1x32xf32> to vector<1x1x1x32xf32>
    %49 = vector.shape_cast %48 : vector<1x1x1x32xf32> to vector<1x32xf32>
    %50 = vector.shape_cast %49 : vector<1x32xf32> to vector<1x1x32xf32>
    %51 = vector.broadcast %50 : vector<1x1x32xf32> to vector<8x8x32xf32>
    %52 = arith.mulf %47, %51 : vector<8x8x32xf32>
    %53 = arith.addf %33, %52 : vector<8x8x32xf32>
    %54 = vector.extract_strided_slice %0 {offsets = [1, 2, 0, 0], sizes = [1, 1, 1, 32], strides = [1, 1, 1, 1]} : vector<3x9x1x32xf32> to vector<1x1x1x32xf32>
    %55 = vector.shape_cast %54 : vector<1x1x1x32xf32> to vector<1x32xf32>
    %56 = vector.shape_cast %55 : vector<1x32xf32> to vector<1x1x32xf32>
    %57 = vector.broadcast %56 : vector<1x1x32xf32> to vector<8x8x32xf32>
    %58 = arith.mulf %47, %57 : vector<8x8x32xf32>
    %59 = arith.addf %39, %58 : vector<8x8x32xf32>
    %60 = vector.extract_strided_slice %0 {offsets = [2, 2, 0, 0], sizes = [1, 1, 1, 32], strides = [1, 1, 1, 1]} : vector<3x9x1x32xf32> to vector<1x1x1x32xf32>
    %61 = vector.shape_cast %60 : vector<1x1x1x32xf32> to vector<1x32xf32>
    %62 = vector.shape_cast %61 : vector<1x32xf32> to vector<1x1x32xf32>
    %63 = vector.broadcast %62 : vector<1x1x32xf32> to vector<8x8x32xf32>
    %64 = arith.mulf %47, %63 : vector<8x8x32xf32>
    %65 = arith.addf %45, %64 : vector<8x8x32xf32>
    %c0_21 = arith.constant 0 : index
    %c1_22 = arith.constant 1 : index
    %c0_23 = arith.constant 0 : index
    %c0_24 = arith.constant 0 : index
    %66 = vector.load %arg1[%c0_21, %c1_22, %c0_23, %c0_24] : memref<1x10x10x32xf32, #tpu.memory_space<vmem>>, vector<1x8x8x32xf32>
    %67 = vector.shape_cast %66 : vector<1x8x8x32xf32> to vector<8x8x32xf32>
    %68 = vector.extract_strided_slice %0 {offsets = [0, 3, 0, 0], sizes = [1, 1, 1, 32], strides = [1, 1, 1, 1]} : vector<3x9x1x32xf32> to vector<1x1x1x32xf32>
    %69 = vector.shape_cast %68 : vector<1x1x1x32xf32> to vector<1x32xf32>
    %70 = vector.shape_cast %69 : vector<1x32xf32> to vector<1x1x32xf32>
    %71 = vector.broadcast %70 : vector<1x1x32xf32> to vector<8x8x32xf32>
    %72 = arith.mulf %67, %71 : vector<8x8x32xf32>
    %73 = arith.addf %53, %72 : vector<8x8x32xf32>
    %74 = vector.extract_strided_slice %0 {offsets = [1, 3, 0, 0], sizes = [1, 1, 1, 32], strides = [1, 1, 1, 1]} : vector<3x9x1x32xf32> to vector<1x1x1x32xf32>
    %75 = vector.shape_cast %74 : vector<1x1x1x32xf32> to vector<1x32xf32>
    %76 = vector.shape_cast %75 : vector<1x32xf32> to vector<1x1x32xf32>
    %77 = vector.broadcast %76 : vector<1x1x32xf32> to vector<8x8x32xf32>
    %78 = arith.mulf %67, %77 : vector<8x8x32xf32>
    %79 = arith.addf %59, %78 : vector<8x8x32xf32>
    %80 = vector.extract_strided_slice %0 {offsets = [2, 3, 0, 0], sizes = [1, 1, 1, 32], strides = [1, 1, 1, 1]} : vector<3x9x1x32xf32> to vector<1x1x1x32xf32>
    %81 = vector.shape_cast %80 : vector<1x1x1x32xf32> to vector<1x32xf32>
    %82 = vector.shape_cast %81 : vector<1x32xf32> to vector<1x1x32xf32>
    %83 = vector.broadcast %82 : vector<1x1x32xf32> to vector<8x8x32xf32>
    %84 = arith.mulf %67, %83 : vector<8x8x32xf32>
    %85 = arith.addf %65, %84 : vector<8x8x32xf32>
    %c0_25 = arith.constant 0 : index
    %c1_26 = arith.constant 1 : index
    %c1_27 = arith.constant 1 : index
    %c0_28 = arith.constant 0 : index
    %86 = vector.load %arg1[%c0_25, %c1_26, %c1_27, %c0_28] : memref<1x10x10x32xf32, #tpu.memory_space<vmem>>, vector<1x8x8x32xf32>
    %87 = vector.shape_cast %86 : vector<1x8x8x32xf32> to vector<8x8x32xf32>
    %88 = vector.extract_strided_slice %0 {offsets = [0, 4, 0, 0], sizes = [1, 1, 1, 32], strides = [1, 1, 1, 1]} : vector<3x9x1x32xf32> to vector<1x1x1x32xf32>
    %89 = vector.shape_cast %88 : vector<1x1x1x32xf32> to vector<1x32xf32>
    %90 = vector.shape_cast %89 : vector<1x32xf32> to vector<1x1x32xf32>
    %91 = vector.broadcast %90 : vector<1x1x32xf32> to vector<8x8x32xf32>
    %92 = arith.mulf %87, %91 : vector<8x8x32xf32>
    %93 = arith.addf %73, %92 : vector<8x8x32xf32>
    %94 = vector.extract_strided_slice %0 {offsets = [1, 4, 0, 0], sizes = [1, 1, 1, 32], strides = [1, 1, 1, 1]} : vector<3x9x1x32xf32> to vector<1x1x1x32xf32>
    %95 = vector.shape_cast %94 : vector<1x1x1x32xf32> to vector<1x32xf32>
    %96 = vector.shape_cast %95 : vector<1x32xf32> to vector<1x1x32xf32>
    %97 = vector.broadcast %96 : vector<1x1x32xf32> to vector<8x8x32xf32>
    %98 = arith.mulf %87, %97 : vector<8x8x32xf32>
    %99 = arith.addf %79, %98 : vector<8x8x32xf32>
    %100 = vector.extract_strided_slice %0 {offsets = [2, 4, 0, 0], sizes = [1, 1, 1, 32], strides = [1, 1, 1, 1]} : vector<3x9x1x32xf32> to vector<1x1x1x32xf32>
    %101 = vector.shape_cast %100 : vector<1x1x1x32xf32> to vector<1x32xf32>
    %102 = vector.shape_cast %101 : vector<1x32xf32> to vector<1x1x32xf32>
    %103 = vector.broadcast %102 : vector<1x1x32xf32> to vector<8x8x32xf32>
    %104 = arith.mulf %87, %103 : vector<8x8x32xf32>
    %105 = arith.addf %85, %104 : vector<8x8x32xf32>
    %c0_29 = arith.constant 0 : index
    %c1_30 = arith.constant 1 : index
    %c2_31 = arith.constant 2 : index
    %c0_32 = arith.constant 0 : index
    %106 = vector.load %arg1[%c0_29, %c1_30, %c2_31, %c0_32] : memref<1x10x10x32xf32, #tpu.memory_space<vmem>>, vector<1x8x8x32xf32>
    %107 = vector.shape_cast %106 : vector<1x8x8x32xf32> to vector<8x8x32xf32>
    %108 = vector.extract_strided_slice %0 {offsets = [0, 5, 0, 0], sizes = [1, 1, 1, 32], strides = [1, 1, 1, 1]} : vector<3x9x1x32xf32> to vector<1x1x1x32xf32>
    %109 = vector.shape_cast %108 : vector<1x1x1x32xf32> to vector<1x32xf32>
    %110 = vector.shape_cast %109 : vector<1x32xf32> to vector<1x1x32xf32>
    %111 = vector.broadcast %110 : vector<1x1x32xf32> to vector<8x8x32xf32>
    %112 = arith.mulf %107, %111 : vector<8x8x32xf32>
    %113 = arith.addf %93, %112 : vector<8x8x32xf32>
    %114 = vector.extract_strided_slice %0 {offsets = [1, 5, 0, 0], sizes = [1, 1, 1, 32], strides = [1, 1, 1, 1]} : vector<3x9x1x32xf32> to vector<1x1x1x32xf32>
    %115 = vector.shape_cast %114 : vector<1x1x1x32xf32> to vector<1x32xf32>
    %116 = vector.shape_cast %115 : vector<1x32xf32> to vector<1x1x32xf32>
    %117 = vector.broadcast %116 : vector<1x1x32xf32> to vector<8x8x32xf32>
    %118 = arith.mulf %107, %117 : vector<8x8x32xf32>
    %119 = arith.addf %99, %118 : vector<8x8x32xf32>
    %120 = vector.extract_strided_slice %0 {offsets = [2, 5, 0, 0], sizes = [1, 1, 1, 32], strides = [1, 1, 1, 1]} : vector<3x9x1x32xf32> to vector<1x1x1x32xf32>
    %121 = vector.shape_cast %120 : vector<1x1x1x32xf32> to vector<1x32xf32>
    %122 = vector.shape_cast %121 : vector<1x32xf32> to vector<1x1x32xf32>
    %123 = vector.broadcast %122 : vector<1x1x32xf32> to vector<8x8x32xf32>
    %124 = arith.mulf %107, %123 : vector<8x8x32xf32>
    %125 = arith.addf %105, %124 : vector<8x8x32xf32>
    %c0_33 = arith.constant 0 : index
    %c2_34 = arith.constant 2 : index
    %c0_35 = arith.constant 0 : index
    %c0_36 = arith.constant 0 : index
    %126 = vector.load %arg1[%c0_33, %c2_34, %c0_35, %c0_36] : memref<1x10x10x32xf32, #tpu.memory_space<vmem>>, vector<1x8x8x32xf32>
    %127 = vector.shape_cast %126 : vector<1x8x8x32xf32> to vector<8x8x32xf32>
    %128 = vector.extract_strided_slice %0 {offsets = [0, 6, 0, 0], sizes = [1, 1, 1, 32], strides = [1, 1, 1, 1]} : vector<3x9x1x32xf32> to vector<1x1x1x32xf32>
    %129 = vector.shape_cast %128 : vector<1x1x1x32xf32> to vector<1x32xf32>
    %130 = vector.shape_cast %129 : vector<1x32xf32> to vector<1x1x32xf32>
    %131 = vector.broadcast %130 : vector<1x1x32xf32> to vector<8x8x32xf32>
    %132 = arith.mulf %127, %131 : vector<8x8x32xf32>
    %133 = arith.addf %113, %132 : vector<8x8x32xf32>
    %134 = vector.extract_strided_slice %0 {offsets = [1, 6, 0, 0], sizes = [1, 1, 1, 32], strides = [1, 1, 1, 1]} : vector<3x9x1x32xf32> to vector<1x1x1x32xf32>
    %135 = vector.shape_cast %134 : vector<1x1x1x32xf32> to vector<1x32xf32>
    %136 = vector.shape_cast %135 : vector<1x32xf32> to vector<1x1x32xf32>
    %137 = vector.broadcast %136 : vector<1x1x32xf32> to vector<8x8x32xf32>
    %138 = arith.mulf %127, %137 : vector<8x8x32xf32>
    %139 = arith.addf %119, %138 : vector<8x8x32xf32>
    %140 = vector.extract_strided_slice %0 {offsets = [2, 6, 0, 0], sizes = [1, 1, 1, 32], strides = [1, 1, 1, 1]} : vector<3x9x1x32xf32> to vector<1x1x1x32xf32>
    %141 = vector.shape_cast %140 : vector<1x1x1x32xf32> to vector<1x32xf32>
    %142 = vector.shape_cast %141 : vector<1x32xf32> to vector<1x1x32xf32>
    %143 = vector.broadcast %142 : vector<1x1x32xf32> to vector<8x8x32xf32>
    %144 = arith.mulf %127, %143 : vector<8x8x32xf32>
    %145 = arith.addf %125, %144 : vector<8x8x32xf32>
    %c0_37 = arith.constant 0 : index
    %c2_38 = arith.constant 2 : index
    %c1_39 = arith.constant 1 : index
    %c0_40 = arith.constant 0 : index
    %146 = vector.load %arg1[%c0_37, %c2_38, %c1_39, %c0_40] : memref<1x10x10x32xf32, #tpu.memory_space<vmem>>, vector<1x8x8x32xf32>
    %147 = vector.shape_cast %146 : vector<1x8x8x32xf32> to vector<8x8x32xf32>
    %148 = vector.extract_strided_slice %0 {offsets = [0, 7, 0, 0], sizes = [1, 1, 1, 32], strides = [1, 1, 1, 1]} : vector<3x9x1x32xf32> to vector<1x1x1x32xf32>
    %149 = vector.shape_cast %148 : vector<1x1x1x32xf32> to vector<1x32xf32>
    %150 = vector.shape_cast %149 : vector<1x32xf32> to vector<1x1x32xf32>
    %151 = vector.broadcast %150 : vector<1x1x32xf32> to vector<8x8x32xf32>
    %152 = arith.mulf %147, %151 : vector<8x8x32xf32>
    %153 = arith.addf %133, %152 : vector<8x8x32xf32>
    %154 = vector.extract_strided_slice %0 {offsets = [1, 7, 0, 0], sizes = [1, 1, 1, 32], strides = [1, 1, 1, 1]} : vector<3x9x1x32xf32> to vector<1x1x1x32xf32>
    %155 = vector.shape_cast %154 : vector<1x1x1x32xf32> to vector<1x32xf32>
    %156 = vector.shape_cast %155 : vector<1x32xf32> to vector<1x1x32xf32>
    %157 = vector.broadcast %156 : vector<1x1x32xf32> to vector<8x8x32xf32>
    %158 = arith.mulf %147, %157 : vector<8x8x32xf32>
    %159 = arith.addf %139, %158 : vector<8x8x32xf32>
    %160 = vector.extract_strided_slice %0 {offsets = [2, 7, 0, 0], sizes = [1, 1, 1, 32], strides = [1, 1, 1, 1]} : vector<3x9x1x32xf32> to vector<1x1x1x32xf32>
    %161 = vector.shape_cast %160 : vector<1x1x1x32xf32> to vector<1x32xf32>
    %162 = vector.shape_cast %161 : vector<1x32xf32> to vector<1x1x32xf32>
    %163 = vector.broadcast %162 : vector<1x1x32xf32> to vector<8x8x32xf32>
    %164 = arith.mulf %147, %163 : vector<8x8x32xf32>
    %165 = arith.addf %145, %164 : vector<8x8x32xf32>
    %c0_41 = arith.constant 0 : index
    %c2_42 = arith.constant 2 : index
    %c2_43 = arith.constant 2 : index
    %c0_44 = arith.constant 0 : index
    %166 = vector.load %arg1[%c0_41, %c2_42, %c2_43, %c0_44] : memref<1x10x10x32xf32, #tpu.memory_space<vmem>>, vector<1x8x8x32xf32>
    %167 = vector.shape_cast %166 : vector<1x8x8x32xf32> to vector<8x8x32xf32>
    %168 = vector.extract_strided_slice %0 {offsets = [0, 8, 0, 0], sizes = [1, 1, 1, 32], strides = [1, 1, 1, 1]} : vector<3x9x1x32xf32> to vector<1x1x1x32xf32>
    %169 = vector.shape_cast %168 : vector<1x1x1x32xf32> to vector<1x32xf32>
    %170 = vector.shape_cast %169 : vector<1x32xf32> to vector<1x1x32xf32>
    %171 = vector.broadcast %170 : vector<1x1x32xf32> to vector<8x8x32xf32>
    %172 = arith.mulf %167, %171 : vector<8x8x32xf32>
    %173 = arith.addf %153, %172 : vector<8x8x32xf32>
    %174 = vector.extract_strided_slice %0 {offsets = [1, 8, 0, 0], sizes = [1, 1, 1, 32], strides = [1, 1, 1, 1]} : vector<3x9x1x32xf32> to vector<1x1x1x32xf32>
    %175 = vector.shape_cast %174 : vector<1x1x1x32xf32> to vector<1x32xf32>
    %176 = vector.shape_cast %175 : vector<1x32xf32> to vector<1x1x32xf32>
    %177 = vector.broadcast %176 : vector<1x1x32xf32> to vector<8x8x32xf32>
    %178 = arith.mulf %167, %177 : vector<8x8x32xf32>
    %179 = arith.addf %159, %178 : vector<8x8x32xf32>
    %180 = vector.extract_strided_slice %0 {offsets = [2, 8, 0, 0], sizes = [1, 1, 1, 32], strides = [1, 1, 1, 1]} : vector<3x9x1x32xf32> to vector<1x1x1x32xf32>
    %181 = vector.shape_cast %180 : vector<1x1x1x32xf32> to vector<1x32xf32>
    %182 = vector.shape_cast %181 : vector<1x32xf32> to vector<1x1x32xf32>
    %183 = vector.broadcast %182 : vector<1x1x32xf32> to vector<8x8x32xf32>
    %184 = arith.mulf %167, %183 : vector<8x8x32xf32>
    %185 = arith.addf %165, %184 : vector<8x8x32xf32>
    %c0_45 = arith.constant 0 : index
    %c0_46 = arith.constant 0 : index
    %c0_47 = arith.constant 0 : index
    %186 = vector.load %arg2[%c0_45, %c0_46, %c0_47] : memref<1x8x32xf32, #tpu.memory_space<vmem>>, vector<1x8x32xf32>
    %187 = vector.shape_cast %186 : vector<1x8x32xf32> to vector<8x32xf32>
    %188 = vector.extract_strided_slice %1 {offsets = [0, 0, 0], sizes = [1, 1, 32], strides = [1, 1, 1]} : vector<3x1x32xf32> to vector<1x1x32xf32>
    %189 = vector.shape_cast %188 : vector<1x1x32xf32> to vector<1x32xf32>
    %190 = vector.shape_cast %189 : vector<1x32xf32> to vector<1x1x32xf32>
    %191 = vector.broadcast %190 : vector<1x1x32xf32> to vector<8x8x32xf32>
    %192 = arith.mulf %173, %191 : vector<8x8x32xf32>
    %193 = vector.extract_strided_slice %2 {offsets = [0, 0, 0], sizes = [1, 1, 32], strides = [1, 1, 1]} : vector<3x1x32xf32> to vector<1x1x32xf32>
    %194 = vector.shape_cast %193 : vector<1x1x32xf32> to vector<1x32xf32>
    %195 = vector.shape_cast %194 : vector<1x32xf32> to vector<1x1x32xf32>
    %196 = vector.broadcast %195 : vector<1x1x32xf32> to vector<8x8x32xf32>
    %197 = arith.addf %192, %196 : vector<8x8x32xf32>
    %198 = vector.shape_cast %197 : vector<8x8x32xf32> to vector<64x32xf32>
    %199 = tpu.concatenate %198, %187 in 0 : vector<64x32xf32>, vector<8x32xf32> -> vector<72x32xf32>
    %200 = vector.extract_strided_slice %1 {offsets = [1, 0, 0], sizes = [1, 1, 32], strides = [1, 1, 1]} : vector<3x1x32xf32> to vector<1x1x32xf32>
    %201 = vector.shape_cast %200 : vector<1x1x32xf32> to vector<1x32xf32>
    %202 = vector.shape_cast %201 : vector<1x32xf32> to vector<1x1x32xf32>
    %203 = vector.broadcast %202 : vector<1x1x32xf32> to vector<8x8x32xf32>
    %204 = arith.mulf %179, %203 : vector<8x8x32xf32>
    %205 = vector.extract_strided_slice %2 {offsets = [1, 0, 0], sizes = [1, 1, 32], strides = [1, 1, 1]} : vector<3x1x32xf32> to vector<1x1x32xf32>
    %206 = vector.shape_cast %205 : vector<1x1x32xf32> to vector<1x32xf32>
    %207 = vector.shape_cast %206 : vector<1x32xf32> to vector<1x1x32xf32>
    %208 = vector.broadcast %207 : vector<1x1x32xf32> to vector<8x8x32xf32>
    %209 = arith.addf %204, %208 : vector<8x8x32xf32>
    %210 = vector.shape_cast %209 : vector<8x8x32xf32> to vector<64x32xf32>
    %211 = tpu.concatenate %210, %187 in 0 : vector<64x32xf32>, vector<8x32xf32> -> vector<72x32xf32>
    %212 = vector.extract_strided_slice %1 {offsets = [2, 0, 0], sizes = [1, 1, 32], strides = [1, 1, 1]} : vector<3x1x32xf32> to vector<1x1x32xf32>
    %213 = vector.shape_cast %212 : vector<1x1x32xf32> to vector<1x32xf32>
    %214 = vector.shape_cast %213 : vector<1x32xf32> to vector<1x1x32xf32>
    %215 = vector.broadcast %214 : vector<1x1x32xf32> to vector<8x8x32xf32>
    %216 = arith.mulf %185, %215 : vector<8x8x32xf32>
    %217 = vector.extract_strided_slice %2 {offsets = [2, 0, 0], sizes = [1, 1, 32], strides = [1, 1, 1]} : vector<3x1x32xf32> to vector<1x1x32xf32>
    %218 = vector.shape_cast %217 : vector<1x1x32xf32> to vector<1x32xf32>
    %219 = vector.shape_cast %218 : vector<1x32xf32> to vector<1x1x32xf32>
    %220 = vector.broadcast %219 : vector<1x1x32xf32> to vector<8x8x32xf32>
    %221 = arith.addf %216, %220 : vector<8x8x32xf32>
    %222 = vector.shape_cast %221 : vector<8x8x32xf32> to vector<64x32xf32>
    %223 = tpu.concatenate %222, %187 in 0 : vector<64x32xf32>, vector<8x32xf32> -> vector<72x32xf32>
    %c0_48 = arith.constant 0 : index
    %c0_49 = arith.constant 0 : index
    %224 = vector.load %arg6[%c0_48, %c0_49] : memref<32x32xf32, #tpu.memory_space<vmem>>, vector<32x32xf32>
    %cst_50 = arith.constant dense<0.000000e+00> : vector<72x32xf32>
    %225 = tpu.matmul %199, %224, %cst_50 {dimension_numbers = #tpu.dot_dimension_numbers<[1], [0], [0], [1], [0, 0, 1, 1], [], []>} : vector<72x32xf32>, vector<32x32xf32>, vector<72x32xf32> -> vector<72x32xf32>
    %c0_51 = arith.constant 0 : index
    %c0_52 = arith.constant 0 : index
    %226 = vector.load %arg7[%c0_51, %c0_52] : memref<32x32xf32, #tpu.memory_space<vmem>>, vector<32x32xf32>
    %cst_53 = arith.constant dense<0.000000e+00> : vector<72x32xf32>
    %227 = tpu.matmul %211, %226, %cst_53 {dimension_numbers = #tpu.dot_dimension_numbers<[1], [0], [0], [1], [0, 0, 1, 1], [], []>} : vector<72x32xf32>, vector<32x32xf32>, vector<72x32xf32> -> vector<72x32xf32>
    %c0_54 = arith.constant 0 : index
    %c0_55 = arith.constant 0 : index
    %228 = vector.load %arg8[%c0_54, %c0_55] : memref<32x32xf32, #tpu.memory_space<vmem>>, vector<32x32xf32>
    %cst_56 = arith.constant dense<0.000000e+00> : vector<72x32xf32>
    %229 = tpu.matmul %223, %228, %cst_56 {dimension_numbers = #tpu.dot_dimension_numbers<[1], [0], [0], [1], [0, 0, 1, 1], [], []>} : vector<72x32xf32>, vector<32x32xf32>, vector<72x32xf32> -> vector<72x32xf32>
    %230 = tpu.iota {dimensions = array<i32: 1>} : vector<72x72xi32>
    %c65_i32 = arith.constant 65 : i32
    %231 = vector.broadcast %c65_i32 : i32 to vector<72x72xi32>
    %232 = arith.cmpi slt, %230, %231 : vector<72x72xi32>
    %c0_57 = arith.constant 0 : index
    %c0_58 = arith.constant 0 : index
    %233 = vector.load %arg9[%c0_57, %c0_58] : memref<32x32xf32, #tpu.memory_space<vmem>>, vector<32x32xf32>
    %cst_59 = arith.constant 0.000000e+00 : f32
    %234 = vector.broadcast %cst_59 : f32 to vector<72x32xf32>
    %235 = vector.extract_strided_slice %225 {offsets = [0, 0], sizes = [72, 8], strides = [1, 1]} : vector<72x32xf32> to vector<72x8xf32>
    %236 = vector.extract_strided_slice %227 {offsets = [0, 0], sizes = [72, 8], strides = [1, 1]} : vector<72x32xf32> to vector<72x8xf32>
    %237 = vector.extract_strided_slice %229 {offsets = [0, 0], sizes = [72, 8], strides = [1, 1]} : vector<72x32xf32> to vector<72x8xf32>
    %cst_60 = arith.constant dense<0.000000e+00> : vector<72x72xf32>
    %238 = tpu.matmul %235, %236, %cst_60 {dimension_numbers = #tpu.dot_dimension_numbers<[1], [1], [0], [0], [0, 0, 1, 0], [], []>} : vector<72x8xf32>, vector<72x8xf32>, vector<72x72xf32> -> vector<72x72xf32>
    %cst_61 = arith.constant 0.176776692 : f32
    %239 = vector.broadcast %cst_61 : f32 to vector<72x72xf32>
    %240 = arith.mulf %238, %239 : vector<72x72xf32>
    %cst_62 = arith.constant -1.000000e+30 : f32
    %241 = vector.broadcast %cst_62 : f32 to vector<72x72xf32>
    %242 = arith.select %232, %240, %241 : vector<72x72xi1>, vector<72x72xf32>
    %cst_63 = arith.constant dense<0xFF800000> : vector<72xf32>
    %243 = vector.multi_reduction <maximumf>, %242, %cst_63 [1] : vector<72x72xf32> to vector<72xf32>
    %244 = vector.shape_cast %243 : vector<72xf32> to vector<72x1xf32>
    %245 = vector.broadcast %244 : vector<72x1xf32> to vector<72x72xf32>
    %246 = arith.subf %242, %245 : vector<72x72xf32>
    %247 = math.exp %246 : vector<72x72xf32>
    %cst_64 = arith.constant dense<0.000000e+00> : vector<72xf32>
    %248 = vector.multi_reduction <add>, %247, %cst_64 [1] : vector<72x72xf32> to vector<72xf32>
    %249 = vector.shape_cast %248 : vector<72xf32> to vector<72x1xf32>
    %cst_65 = arith.constant dense<0.000000e+00> : vector<72x8xf32>
    %250 = tpu.matmul %247, %237, %cst_65 {dimension_numbers = #tpu.dot_dimension_numbers<[1], [0], [0], [1], [0, 0, 1, 1], [], []>} : vector<72x72xf32>, vector<72x8xf32>, vector<72x8xf32> -> vector<72x8xf32>
    %cst_66 = arith.constant 1.000000e+00 : f32
    %251 = vector.broadcast %cst_66 : f32 to vector<72x1xf32>
    %252 = arith.divf %251, %249 : vector<72x1xf32>
    %253 = vector.broadcast %252 : vector<72x1xf32> to vector<72x8xf32>
    %254 = arith.mulf %250, %253 : vector<72x8xf32>
    %255 = vector.extract_strided_slice %233 {offsets = [0, 0], sizes = [8, 32], strides = [1, 1]} : vector<32x32xf32> to vector<8x32xf32>
    %cst_67 = arith.constant dense<0.000000e+00> : vector<72x32xf32>
    %256 = tpu.matmul %254, %255, %cst_67 {dimension_numbers = #tpu.dot_dimension_numbers<[1], [0], [0], [1], [0, 0, 1, 1], [], []>} : vector<72x8xf32>, vector<8x32xf32>, vector<72x32xf32> -> vector<72x32xf32>
    %257 = arith.addf %234, %256 : vector<72x32xf32>
    %258 = vector.extract_strided_slice %225 {offsets = [0, 8], sizes = [72, 8], strides = [1, 1]} : vector<72x32xf32> to vector<72x8xf32>
    %259 = vector.extract_strided_slice %227 {offsets = [0, 8], sizes = [72, 8], strides = [1, 1]} : vector<72x32xf32> to vector<72x8xf32>
    %260 = vector.extract_strided_slice %229 {offsets = [0, 8], sizes = [72, 8], strides = [1, 1]} : vector<72x32xf32> to vector<72x8xf32>
    %cst_68 = arith.constant dense<0.000000e+00> : vector<72x72xf32>
    %261 = tpu.matmul %258, %259, %cst_68 {dimension_numbers = #tpu.dot_dimension_numbers<[1], [1], [0], [0], [0, 0, 1, 0], [], []>} : vector<72x8xf32>, vector<72x8xf32>, vector<72x72xf32> -> vector<72x72xf32>
    %cst_69 = arith.constant 0.176776692 : f32
    %262 = vector.broadcast %cst_69 : f32 to vector<72x72xf32>
    %263 = arith.mulf %261, %262 : vector<72x72xf32>
    %cst_70 = arith.constant -1.000000e+30 : f32
    %264 = vector.broadcast %cst_70 : f32 to vector<72x72xf32>
    %265 = arith.select %232, %263, %264 : vector<72x72xi1>, vector<72x72xf32>
    %cst_71 = arith.constant dense<0xFF800000> : vector<72xf32>
    %266 = vector.multi_reduction <maximumf>, %265, %cst_71 [1] : vector<72x72xf32> to vector<72xf32>
    %267 = vector.shape_cast %266 : vector<72xf32> to vector<72x1xf32>
    %268 = vector.broadcast %267 : vector<72x1xf32> to vector<72x72xf32>
    %269 = arith.subf %265, %268 : vector<72x72xf32>
    %270 = math.exp %269 : vector<72x72xf32>
    %cst_72 = arith.constant dense<0.000000e+00> : vector<72xf32>
    %271 = vector.multi_reduction <add>, %270, %cst_72 [1] : vector<72x72xf32> to vector<72xf32>
    %272 = vector.shape_cast %271 : vector<72xf32> to vector<72x1xf32>
    %cst_73 = arith.constant dense<0.000000e+00> : vector<72x8xf32>
    %273 = tpu.matmul %270, %260, %cst_73 {dimension_numbers = #tpu.dot_dimension_numbers<[1], [0], [0], [1], [0, 0, 1, 1], [], []>} : vector<72x72xf32>, vector<72x8xf32>, vector<72x8xf32> -> vector<72x8xf32>
    %cst_74 = arith.constant 1.000000e+00 : f32
    %274 = vector.broadcast %cst_74 : f32 to vector<72x1xf32>
    %275 = arith.divf %274, %272 : vector<72x1xf32>
    %276 = vector.broadcast %275 : vector<72x1xf32> to vector<72x8xf32>
    %277 = arith.mulf %273, %276 : vector<72x8xf32>
    %278 = vector.extract_strided_slice %233 {offsets = [8, 0], sizes = [8, 32], strides = [1, 1]} : vector<32x32xf32> to vector<8x32xf32>
    %cst_75 = arith.constant dense<0.000000e+00> : vector<72x32xf32>
    %279 = tpu.matmul %277, %278, %cst_75 {dimension_numbers = #tpu.dot_dimension_numbers<[1], [0], [0], [1], [0, 0, 1, 1], [], []>} : vector<72x8xf32>, vector<8x32xf32>, vector<72x32xf32> -> vector<72x32xf32>
    %280 = arith.addf %257, %279 : vector<72x32xf32>
    %281 = vector.extract_strided_slice %225 {offsets = [0, 16], sizes = [72, 8], strides = [1, 1]} : vector<72x32xf32> to vector<72x8xf32>
    %282 = vector.extract_strided_slice %227 {offsets = [0, 16], sizes = [72, 8], strides = [1, 1]} : vector<72x32xf32> to vector<72x8xf32>
    %283 = vector.extract_strided_slice %229 {offsets = [0, 16], sizes = [72, 8], strides = [1, 1]} : vector<72x32xf32> to vector<72x8xf32>
    %cst_76 = arith.constant dense<0.000000e+00> : vector<72x72xf32>
    %284 = tpu.matmul %281, %282, %cst_76 {dimension_numbers = #tpu.dot_dimension_numbers<[1], [1], [0], [0], [0, 0, 1, 0], [], []>} : vector<72x8xf32>, vector<72x8xf32>, vector<72x72xf32> -> vector<72x72xf32>
    %cst_77 = arith.constant 0.176776692 : f32
    %285 = vector.broadcast %cst_77 : f32 to vector<72x72xf32>
    %286 = arith.mulf %284, %285 : vector<72x72xf32>
    %cst_78 = arith.constant -1.000000e+30 : f32
    %287 = vector.broadcast %cst_78 : f32 to vector<72x72xf32>
    %288 = arith.select %232, %286, %287 : vector<72x72xi1>, vector<72x72xf32>
    %cst_79 = arith.constant dense<0xFF800000> : vector<72xf32>
    %289 = vector.multi_reduction <maximumf>, %288, %cst_79 [1] : vector<72x72xf32> to vector<72xf32>
    %290 = vector.shape_cast %289 : vector<72xf32> to vector<72x1xf32>
    %291 = vector.broadcast %290 : vector<72x1xf32> to vector<72x72xf32>
    %292 = arith.subf %288, %291 : vector<72x72xf32>
    %293 = math.exp %292 : vector<72x72xf32>
    %cst_80 = arith.constant dense<0.000000e+00> : vector<72xf32>
    %294 = vector.multi_reduction <add>, %293, %cst_80 [1] : vector<72x72xf32> to vector<72xf32>
    %295 = vector.shape_cast %294 : vector<72xf32> to vector<72x1xf32>
    %cst_81 = arith.constant dense<0.000000e+00> : vector<72x8xf32>
    %296 = tpu.matmul %293, %283, %cst_81 {dimension_numbers = #tpu.dot_dimension_numbers<[1], [0], [0], [1], [0, 0, 1, 1], [], []>} : vector<72x72xf32>, vector<72x8xf32>, vector<72x8xf32> -> vector<72x8xf32>
    %cst_82 = arith.constant 1.000000e+00 : f32
    %297 = vector.broadcast %cst_82 : f32 to vector<72x1xf32>
    %298 = arith.divf %297, %295 : vector<72x1xf32>
    %299 = vector.broadcast %298 : vector<72x1xf32> to vector<72x8xf32>
    %300 = arith.mulf %296, %299 : vector<72x8xf32>
    %301 = vector.extract_strided_slice %233 {offsets = [16, 0], sizes = [8, 32], strides = [1, 1]} : vector<32x32xf32> to vector<8x32xf32>
    %cst_83 = arith.constant dense<0.000000e+00> : vector<72x32xf32>
    %302 = tpu.matmul %300, %301, %cst_83 {dimension_numbers = #tpu.dot_dimension_numbers<[1], [0], [0], [1], [0, 0, 1, 1], [], []>} : vector<72x8xf32>, vector<8x32xf32>, vector<72x32xf32> -> vector<72x32xf32>
    %303 = arith.addf %280, %302 : vector<72x32xf32>
    %304 = vector.extract_strided_slice %225 {offsets = [0, 24], sizes = [72, 8], strides = [1, 1]} : vector<72x32xf32> to vector<72x8xf32>
    %305 = vector.extract_strided_slice %227 {offsets = [0, 24], sizes = [72, 8], strides = [1, 1]} : vector<72x32xf32> to vector<72x8xf32>
    %306 = vector.extract_strided_slice %229 {offsets = [0, 24], sizes = [72, 8], strides = [1, 1]} : vector<72x32xf32> to vector<72x8xf32>
    %cst_84 = arith.constant dense<0.000000e+00> : vector<72x72xf32>
    %307 = tpu.matmul %304, %305, %cst_84 {dimension_numbers = #tpu.dot_dimension_numbers<[1], [1], [0], [0], [0, 0, 1, 0], [], []>} : vector<72x8xf32>, vector<72x8xf32>, vector<72x72xf32> -> vector<72x72xf32>
    %cst_85 = arith.constant 0.176776692 : f32
    %308 = vector.broadcast %cst_85 : f32 to vector<72x72xf32>
    %309 = arith.mulf %307, %308 : vector<72x72xf32>
    %cst_86 = arith.constant -1.000000e+30 : f32
    %310 = vector.broadcast %cst_86 : f32 to vector<72x72xf32>
    %311 = arith.select %232, %309, %310 : vector<72x72xi1>, vector<72x72xf32>
    %cst_87 = arith.constant dense<0xFF800000> : vector<72xf32>
    %312 = vector.multi_reduction <maximumf>, %311, %cst_87 [1] : vector<72x72xf32> to vector<72xf32>
    %313 = vector.shape_cast %312 : vector<72xf32> to vector<72x1xf32>
    %314 = vector.broadcast %313 : vector<72x1xf32> to vector<72x72xf32>
    %315 = arith.subf %311, %314 : vector<72x72xf32>
    %316 = math.exp %315 : vector<72x72xf32>
    %cst_88 = arith.constant dense<0.000000e+00> : vector<72xf32>
    %317 = vector.multi_reduction <add>, %316, %cst_88 [1] : vector<72x72xf32> to vector<72xf32>
    %318 = vector.shape_cast %317 : vector<72xf32> to vector<72x1xf32>
    %cst_89 = arith.constant dense<0.000000e+00> : vector<72x8xf32>
    %319 = tpu.matmul %316, %306, %cst_89 {dimension_numbers = #tpu.dot_dimension_numbers<[1], [0], [0], [1], [0, 0, 1, 1], [], []>} : vector<72x72xf32>, vector<72x8xf32>, vector<72x8xf32> -> vector<72x8xf32>
    %cst_90 = arith.constant 1.000000e+00 : f32
    %320 = vector.broadcast %cst_90 : f32 to vector<72x1xf32>
    %321 = arith.divf %320, %318 : vector<72x1xf32>
    %322 = vector.broadcast %321 : vector<72x1xf32> to vector<72x8xf32>
    %323 = arith.mulf %319, %322 : vector<72x8xf32>
    %324 = vector.extract_strided_slice %233 {offsets = [24, 0], sizes = [8, 32], strides = [1, 1]} : vector<32x32xf32> to vector<8x32xf32>
    %cst_91 = arith.constant dense<0.000000e+00> : vector<72x32xf32>
    %325 = tpu.matmul %323, %324, %cst_91 {dimension_numbers = #tpu.dot_dimension_numbers<[1], [0], [0], [1], [0, 0, 1, 1], [], []>} : vector<72x8xf32>, vector<8x32xf32>, vector<72x32xf32> -> vector<72x32xf32>
    %326 = arith.addf %303, %325 : vector<72x32xf32>
    %c0_92 = arith.constant 0 : index
    %c0_93 = arith.constant 0 : index
    %327 = vector.load %arg10[%c0_92, %c0_93] : memref<1x32xf32, #tpu.memory_space<vmem>>, vector<1x32xf32>
    %328 = vector.broadcast %327 : vector<1x32xf32> to vector<72x32xf32>
    %329 = arith.addf %326, %328 : vector<72x32xf32>
    %c0_94 = arith.constant 0 : index
    %c0_95 = arith.constant 0 : index
    %c0_96 = arith.constant 0 : index
    %330 = vector.load %arg11[%c0_94, %c0_95, %c0_96] : memref<1x72x32xf32, #tpu.memory_space<vmem>>, vector<1x72x32xf32>
    %331 = vector.shape_cast %330 : vector<1x72x32xf32> to vector<72x32xf32>
    %332 = vector.shape_cast %329 : vector<72x32xf32> to vector<1x72x32xf32>
    tpu.vector_store %arg11[%c0_94, %c0_95, %c0_96], %332 {strides = array<i32>} : memref<1x72x32xf32, #tpu.memory_space<vmem>>, vector<1x72x32xf32>,
    return
  }
  func.func @transform_0(%arg0: i32) -> (i32, i32, i32, i32) {
    %c0_i32 = arith.constant 0 : i32
    %c0_i32_0 = arith.constant 0 : i32
    %c0_i32_1 = arith.constant 0 : i32
    %c0_i32_2 = arith.constant 0 : i32
    return %arg0, %c0_i32, %c0_i32_0, %c0_i32_1 : i32, i32, i32, i32
  }
  func.func @transform_1(%arg0: i32) -> (i32, i32, i32) {
    %c0_i32 = arith.constant 0 : i32
    %c0_i32_0 = arith.constant 0 : i32
    %c0_i32_1 = arith.constant 0 : i32
    return %arg0, %c0_i32, %c0_i32_0 : i32, i32, i32
  }
  func.func @transform_2(%arg0: i32) -> (i32, i32, i32, i32) {
    %c0_i32 = arith.constant 0 : i32
    %c0_i32_0 = arith.constant 0 : i32
    %c0_i32_1 = arith.constant 0 : i32
    %c0_i32_2 = arith.constant 0 : i32
    %c0_i32_3 = arith.constant 0 : i32
    return %c0_i32, %c0_i32_0, %c0_i32_1, %c0_i32_2 : i32, i32, i32, i32
  }
  func.func @transform_3(%arg0: i32) -> (i32, i32, i32) {
    %c0_i32 = arith.constant 0 : i32
    %c0_i32_0 = arith.constant 0 : i32
    %c0_i32_1 = arith.constant 0 : i32
    %c0_i32_2 = arith.constant 0 : i32
    return %c0_i32, %c0_i32_0, %c0_i32_1 : i32, i32, i32
  }
  func.func @transform_4(%arg0: i32) -> (i32, i32, i32) {
    %c0_i32 = arith.constant 0 : i32
    %c0_i32_0 = arith.constant 0 : i32
    %c0_i32_1 = arith.constant 0 : i32
    %c0_i32_2 = arith.constant 0 : i32
    return %c0_i32, %c0_i32_0, %c0_i32_1 : i32, i32, i32
  }
  func.func @transform_5(%arg0: i32) -> (i32, i32) {
    %c0_i32 = arith.constant 0 : i32
    %c0_i32_0 = arith.constant 0 : i32
    %c0_i32_1 = arith.constant 0 : i32
    return %c0_i32, %c0_i32_0 : i32, i32
  }
  func.func @transform_6(%arg0: i32) -> (i32, i32) {
    %c0_i32 = arith.constant 0 : i32
    %c0_i32_0 = arith.constant 0 : i32
    %c0_i32_1 = arith.constant 0 : i32
    return %c0_i32, %c0_i32_0 : i32, i32
  }
  func.func @transform_7(%arg0: i32) -> (i32, i32) {
    %c0_i32 = arith.constant 0 : i32
    %c0_i32_0 = arith.constant 0 : i32
    %c0_i32_1 = arith.constant 0 : i32
    return %c0_i32, %c0_i32_0 : i32, i32
  }
  func.func @transform_8(%arg0: i32) -> (i32, i32) {
    %c0_i32 = arith.constant 0 : i32
    %c0_i32_0 = arith.constant 0 : i32
    %c0_i32_1 = arith.constant 0 : i32
    return %c0_i32, %c0_i32_0 : i32, i32
  }
  func.func @transform_9(%arg0: i32) -> (i32, i32) {
    %c0_i32 = arith.constant 0 : i32
    %c0_i32_0 = arith.constant 0 : i32
    %c0_i32_1 = arith.constant 0 : i32
    return %c0_i32, %c0_i32_0 : i32, i32
  }
  func.func @transform_10(%arg0: i32) -> (i32, i32, i32) {
    %c0_i32 = arith.constant 0 : i32
    %c0_i32_0 = arith.constant 0 : i32
    %c0_i32_1 = arith.constant 0 : i32
    return %arg0, %c0_i32, %c0_i32_0 : i32, i32, i32
  }
}

</mosaic_0001>

<bundles_post_ra>
// kernel: _lambda_.1
= control target key start
LH: loop header
LB: loop body
LE: loop exit
PB: predicated region body
PF: predicated region fallthrough
CT: control target
= control target key end

     0   :  { %s5665_s13 = smov 0   ;;  %s7633_s0 = inlined_call_operand.vmem [shape: f32[2,10,10,32], index: 0, kind: input, shape index: {}]   ;;  %s7634_s1 = inlined_call_operand.vmem [shape: f32[2,8,32], index: 1, kind: input, shape index: {}]   ;;  %s7635_s2 = inlined_call_operand.vmem [shape: f32[3,9,1,32], index: 2, kind: input, shape index: {}]   ;;  %s7636_s3 = inlined_call_operand.vmem [shape: f32[3,1,32], index: 3, kind: input, shape index: {}]   ;;  %s7637_s4 = inlined_call_operand.vmem [shape: f32[3,1,32], index: 4, kind: input, shape index: {}]   ;;  %s7638_s5 = inlined_call_operand.vmem [shape: f32[32,32], index: 5, kind: input, shape index: {}]   ;;  %s7639_s6 = inlined_call_operand.vmem [shape: f32[32,32], index: 6, kind: input, shape index: {}]   ;;  %s7640_s7 = inlined_call_operand.vmem [shape: f32[32,32], index: 7, kind: input, shape index: {}]   ;;  %s7641_s8 = inlined_call_operand.vmem [shape: f32[32,32], index: 8, kind: input, shape index: {}]   ;;  %s7642_s9 = inlined_call_operand.vmem [shape: f32[1,32], index: 9, kind: input, shape index: {}]   ;;  %s7643_s10 = inlined_call_operand.vmem [shape: f32[2,72,32], index: 10, kind: output, shape index: {}]  }
   0x1 LB: > { %s4100_s14 = sadd.s32 4294967295, %s5602_s13   ;;  %p4104_p0 = scmp.ge.s32.totalorder %s5602_s13, 1  ;;  %s5602_s13 = sphi %s5665_s13, %s20_s13  }
   0x2   : > { %p321_p1 = scmp.lt.s32.totalorder %s5602_s13, 3 }
   0x4   : > { %p322_p2 = pnand %p4104_p0, %p321_p1 }
   0x6   : > { %325 = sbr.rel (%p322_p2) target bundleno = 2438 (0x986), region = 60 }
   0xd   : > { %v1163_v0 = vld [vmem:[%s7638_s5] sm:$0xff]  ;;  %v1164_v1 = vld [vmem:[%s7638_s5 + $0x8] sm:$0xff]  ;;  %v1165_v2 = vld [vmem:[%s7638_s5 + $0x10] sm:$0xff]  ;;  %v7644_v3 = vmov 0.0|0.0   ;;  %vm5605_vm0 = vmmov 0   ;;  %v7646_v6 = vmov 0.0  }
   0xe   : > { %5297 = vmatprep.subr.bf16.mxu1 %v7644_v3  ;;  %v5168_v4 = vpack.c.bf16 %v1164_v1, %v1163_v0  ;;  %v1166_v5 = vld [vmem:[%s7638_s5 + $0x18] sm:$0xff]  ;;  %4609 = vmatprep.mubr.msk.f32.mxu1 %vm5605_vm0, %v7646_v6  ;;  %p363_p3 = scmp.lt.s32.totalorder %s4100_s14, 1  ;;  %v5697_v8 = vld [vmem:[%s7635_s2] ss:$0 sm:$0xff]  ;;  %v5704_v9 = vld [vmem:[%s7635_s2 + $0x1] ss:$0 sm:$0xff] }
   0xf   : > { %5167 = vmatprep.subr.bf16.mxu0 %v7644_v3  ;;  %4594 = vmatprep.mubr.msk.f32.mxu0 %vm5605_vm0, %v7646_v6  ;;  %v5171_v7 = vpack.c.bf16 %v1166_v5, %v1165_v2  ;;  %v5709_v10 = vld [vmem:[%s7635_s2 + $0x2] ss:$0 sm:$0xff]  ;;  %v5714_v11 = vld [vmem:[%s7635_s2 + $0x3] ss:$0 sm:$0xff]  ;;  %v5719_v12 = vld [vmem:[%s7635_s2 + $0x4] ss:$0 sm:$0xff] }
  0x10   : > { %5299 = vmatpush3.bf16.msra.mxu1 %v5168_v4  ;;  %s7723_s14 = smov (!%p363_p3, %s4100_s14), 1  ;;  %5169 = vmatpush3.bf16.msra.mxu0 %v5168_v4  ;;  %7679 = vst [vmem:[#allocation2_spill] sm:$0xff] %v5714_v11  ;;  %7680 = vst [vmem:[#allocation3_spill] sm:$0xff] %v5719_v12  ;;  %v5724_v13 = vld [vmem:[%s7635_s2 + $0x5] ss:$0 sm:$0xff]  ;;  %v5749_v17 = vld [vmem:[%s7639_s6 + $0x8] sm:$0xff] }
  0x11   : > { %5298 = vmatprep.subr.bf16.mxu1 %v7644_v3  ;;  %5170 = vmatprep.subr.bf16.mxu0 %v7644_v3  ;;  %s5301_s25 = smul.u32 160, %s7723_s14  ;;  %7681 = vst [vmem:[#allocation4_spill] sm:$0xff] %v5724_v13  ;;  %v5729_v14 = vld [vmem:[%s7639_s6] sm:$0xff]  ;;  %v5754_v18 = vld [vmem:[%s7639_s6 + $0x10] sm:$0xff]  ;;  %v5759_v19 = vld [vmem:[%s7639_s6 + $0x18] sm:$0xff]  ;;  %vm1167_vm1 = vcmask 261120  }
  0x12   : > { %v5739_v15 = vld [vmem:[%s7635_s2 + $0x6] ss:$0 sm:$0xff]  ;;  %v5744_v16 = vld [vmem:[%s7635_s2 + $0x7] ss:$0 sm:$0xff]  ;;  %v5790_v29 = vld [vmem:[%s7635_s2 + $0x8] ss:$0 sm:$0xff] }
  0x13   : > { %s5734_s22 = scalar_lea.vmem %s7633_s0, %s5301_s25  ;;  %7682 = vst [vmem:[#allocation5_spill] sm:$0xff] %v5739_v15  ;;  %7683 = vst [vmem:[#allocation6_spill] sm:$0xff] %v5744_v16  ;;  %v5837_v49 = vld [vmem:[%s7635_s2 + $0x9] ss:$0 sm:$0xff]  ;;  %v5842_v50 = vld [vmem:[%s7635_s2 + $0xa] ss:$0 sm:$0xff] }
  0x14   : > { %5300 = vmatpush3.bf16.msra.mxu1 %v5171_v7  ;;  %5172 = vmatpush3.bf16.msra.mxu0 %v5171_v7  ;;  %v5762_v20 = vld [vmem:[%s5734_s22 + $0x50] sm:$0xff]  ;;  %v5779_v26 = vld [vmem:[%s5734_s22 + $0x60] sm:$0xff]  ;;  %7685 = vst [vmem:[#allocation8_spill] sm:$0xff] %v5790_v29  ;;  %v5859_v57 = vld [vmem:[%s7635_s2 + $0xb] ss:$0 sm:$0xff]  ;;  %s4106_s23 = sshll.u32 %s7723_s14, 3 }
  0x15   : > { %v5765_v21 = vld [vmem:[%s5734_s22 + $0x51] sm:$0xff]  ;;  %5173 = vmatprep.subr.bf16.mxu1 %v7644_v3  ;;  %5179 = vmatprep.subr.bf16.mxu0 %v7644_v3  ;;  %v429_v23 = vmul.f32 %v5697_v8, %v5762_v20  ;;  %v5782_v27 = vld [vmem:[%s5734_s22 + $0x61] sm:$0xff]  ;;  %v430_v31 = vmul.f32 %v5779_v26, %v5697_v8  ;;  %v652_v35 = vmul.f32 %v5714_v11, %v5779_v26  ;;  %v5933_v6 = vld [vmem:[%s7635_s2 + $0xf] ss:$0 sm:$0xff]  ;;  %s371_s29 = scalar_lea.vmem %s7634_s1, %s4106_s23  ;;  %vm1588_vm2 = vcmask 64512   ;;  %s5607_s28 = smov 120  }
  0x16   : > { %v5768_v22 = vld [vmem:[%s5734_s22 + $0x52] sm:$0xff]  ;;  %v503_v24 = vmul.f32 %v5704_v9, %v5765_v21  ;;  %7684 = vst [vmem:[#allocation7_spill] sm:$0xff] %v5782_v27  ;;  %v5785_v28 = vld [vmem:[%s5734_s22 + $0x62] sm:$0xff]  ;;  %v726_v36 = vmul.f32 %v5719_v12, %v5782_v27  ;;  %v504_v42 = vmul.f32 %v5782_v27, %v5704_v9  ;;  %vm6500_vm3 = vmpackc.low %vm1588_vm2, %vm1588_vm2  ;;  %vm1771_vm5 = vcmask 588800   ;;  %s5609_s12 = smov 104   ;;  %s5302_s19 = smul.u32 72, %s7723_s14 }
  0x17   : > { %v577_v25 = vmul.f32 %v5709_v10, %v5768_v22  ;;  %v5793_v30 = vld [vmem:[%s5734_s22 + $0x70] sm:$0xff]  ;;  %v800_v37 = vmul.f32 %v5724_v13, %v5785_v28  ;;  %v578_v43 = vmul.f32 %v5785_v28, %v5709_v10  ;;  %v5832_v48 = vld [vmem:[%s5734_s22 + $0x80] sm:$0xff] }
  0x18   : > { %v511_v34 = vadd.f32 %v503_v24, %v429_v23  ;;  %v5808_v38 = vld [vmem:[%s5734_s22 + $0x71] sm:$0xff]  ;;  %v875_v39 = vmul.f32 %v5739_v15, %v5793_v30  ;;  %v653_v46 = vmul.f32 %v5793_v30, %v5714_v11  ;;  %v512_v51 = vadd.f32 %v504_v42, %v430_v31  ;;  %v5847_v53 = vld [vmem:[%s5734_s22 + $0x81] sm:$0xff]  ;;  %s7602_s26 = scalar_lea.vmem %s7643_s10, %s5302_s19 }
  0x19   : > { %v5814_v40 = vmul.f32 %v5744_v16, %v5808_v38  ;;  %v5817_v41 = vld [vmem:[%s5734_s22 + $0x72] sm:$0xff]  ;;  %v727_v47 = vmul.f32 %v5808_v38, %v5719_v12  ;;  %7686 = vst [vmem:[#allocation9_spill] sm:$0xff] %v5847_v53  ;;  %v5850_v54 = vld [vmem:[%s5734_s22 + $0x82] sm:$0xff]  ;;  %v431_v55 = vmul.f32 %v5793_v30, %v5697_v8  ;;  %v505_v56 = vmul.f32 %v5808_v38, %v5704_v9 }
  0x1a   : > { %v585_v44 = vadd.f32 %v577_v25, %v511_v34  ;;  %v5825_v45 = vmul.f32 %v5790_v29, %v5817_v41  ;;  %v801_v52 = vmul.f32 %v5817_v41, %v5724_v13  ;;  %7687 = vst [vmem:[#allocation10_spill] sm:$0xff] %v5850_v54  ;;  %v876_v59 = vmul.f32 %v5739_v15, %v5832_v48  ;;  %v5870_v62 = vld [vmem:[%s5734_s22 + $0x90] sm:$0xff]  ;;  %v5876_v0 = vld [vmem:[%s5734_s22] sm:$0xff] }
  0x1b   : > { %v5865_v60 = vmul.f32 %v5744_v16, %v5847_v53  ;;  %v579_v61 = vmul.f32 %v5817_v41, %v5709_v10  ;;  %7688 = vst [vmem:[#allocation11_spill] sm:$0xff] %v5870_v62  ;;  %v5873_v63 = vld [vmem:[%s5734_s22 + $0x91] sm:$0xff]  ;;  %v586_v1 = vadd.f32 %v578_v43, %v512_v51  ;;  %v5880_v2 = vmul.f32 %v5790_v29, %v5850_v54  ;;  %v5888_v23 = vld [vmem:[%s5734_s22 + $0x1] sm:$0xff] }
  0x1c   : > { %v660_v58 = vadd.f32 %v652_v35, %v585_v44  ;;  %7689 = vst [vmem:[#allocation12_spill] sm:$0xff] %v5873_v63  ;;  %v513_v4 = vadd.f32 %v505_v56, %v431_v55  ;;  %v654_v5 = vmul.f32 %v5832_v48, %v5714_v11  ;;  %v5885_v7 = vld [vmem:[%s5734_s22 + $0x92] sm:$0xff]  ;;  %7691 = vst [vmem:[#allocation14_spill] sm:$0xff] %v5888_v23  ;;  %v5891_v24 = vld [vmem:[%s5734_s22 + $0x2] sm:$0xff] }
  0x1d   : > { %7690 = vst [vmem:[#allocation13_spill] sm:$0xff] %v5885_v7  ;;  %7692 = vst [vmem:[#allocation15_spill] sm:$0xff] %v5891_v24  ;;  %v728_v31 = vmul.f32 %v5847_v53, %v5719_v12  ;;  %v802_v34 = vmul.f32 %v5850_v54, %v5724_v13  ;;  %v5900_v35 = vld [vmem:[%s7635_s2 + $0xc] ss:$0 sm:$0xff]  ;;  %v446_v42 = vmul.f32 %v5837_v49, %v5876_v0  ;;  %v5905_v43 = vld [vmem:[%s5734_s22 + $0x10] sm:$0xff] }
  0x1e   : > { %v734_v25 = vadd.f32 %v726_v36, %v660_v58  ;;  %v661_v44 = vadd.f32 %v653_v46, %v586_v1  ;;  %v587_v51 = vadd.f32 %v579_v61, %v513_v4  ;;  %v5910_v36 = vld [vmem:[%s7635_s2 + $0xd] ss:$0 sm:$0xff]  ;;  %v5915_v55 = vld [vmem:[%s7635_s2 + $0xe] ss:$0 sm:$0xff]  ;;  %v520_v56 = vmul.f32 %v5842_v50, %v5888_v23  ;;  %v5928_v33 = vld [vmem:[%s5734_s22 + $0x11] sm:$0xff] }
  0x1f   : > { %v594_v58 = vmul.f32 %v5859_v57, %v5891_v24  ;;  %v877_v61 = vmul.f32 %v5739_v15, %v5870_v62  ;;  %v951_v1 = vmul.f32 %v5744_v16, %v5873_v63  ;;  %v1025_v4 = vmul.f32 %v5790_v29, %v5885_v7  ;;  %7693 = vst [vmem:[#allocation16_spill] sm:$0xff] %v5928_v33  ;;  %v5938_v62 = vld [vmem:[%s5734_s22 + $0x12] sm:$0xff]  ;;  %v5941_v63 = vld [vmem:[%s5734_s22 + $0x20] sm:$0xff] }
  0x20   : > { %v808_v46 = vadd.f32 %v800_v37, %v734_v25  ;;  %v735_v3 = vadd.f32 %v727_v47, %v661_v44  ;;  %v662_v32 = vadd.f32 %v654_v5, %v587_v51  ;;  %v528_v37 = vadd.f32 %v520_v56, %v446_v42  ;;  %7694 = vst [vmem:[#allocation17_spill] sm:$0xff] %v5938_v62  ;;  %v5952_v51 = vld [vmem:[%s7635_s2 + $0x10] ss:$0 sm:$0xff]  ;;  %v5974_v13 = vld [vmem:[%s5734_s22 + $0x21] sm:$0xff]  ;;  %v6010_v11 = vld [vmem:[%s5734_s22 + $0x31] sm:$0xff] }
  0x21   : > { %v669_v25 = vmul.f32 %v5900_v35, %v5905_v43  ;;  %7695 = vst [vmem:[#allocation18_spill] sm:$0xff] %v5941_v63  ;;  %v743_v7 = vmul.f32 %v5910_v36, %v5928_v33  ;;  %v817_v47 = vmul.f32 %v5915_v55, %v5938_v62  ;;  %v447_v5 = vmul.f32 %v5905_v43, %v5837_v49 }
  0x22   : > { %v883_v16 = vadd.f32 %v875_v39, %v808_v46  ;;  %v809_v42 = vadd.f32 %v801_v52, %v735_v3  ;;  %v736_v44 = vadd.f32 %v728_v31, %v662_v32  ;;  %v5957_v39 = vld [vmem:[%s7635_s2 + $0x11] ss:$0 sm:$0xff]  ;;  %v602_v56 = vadd.f32 %v594_v58, %v528_v37  ;;  %v5971_v31 = vld [vmem:[%s7636_s3] ss:$0 sm:$0xff]  ;;  %7696 = vst [vmem:[#allocation19_spill] sm:$0xff] %v5974_v13 }
  0x23   : > { %v521_v46 = vmul.f32 %v5928_v33, %v5842_v50  ;;  %v892_v3 = vmul.f32 %v5933_v6, %v5941_v63  ;;  %v595_v32 = vmul.f32 %v5938_v62, %v5859_v57  ;;  %v670_v52 = vmul.f32 %v5941_v63, %v5900_v35 }
  0x24   : > { %v957_v29 = vadd.f32 %v5814_v40, %v883_v16  ;;  %v884_v58 = vadd.f32 %v876_v59, %v809_v42  ;;  %v810_v37 = vadd.f32 %v802_v34, %v736_v44  ;;  %v677_v15 = vadd.f32 %v669_v25, %v602_v56  ;;  %v5977_v16 = vld [vmem:[%s5734_s22 + $0x22] sm:$0xff]  ;;  %v5989_v59 = vld [vmem:[%s7637_s4] ss:$0 sm:$0xff] }
  0x25   : > { %v529_v40 = vadd.f32 %v521_v46, %v447_v5  ;;  %v966_v62 = vmul.f32 %v5952_v51, %v5974_v13  ;;  %v1040_v12 = vmul.f32 %v5957_v39, %v5977_v16  ;;  %v744_v33 = vmul.f32 %v5974_v13, %v5910_v36 }
  0x26   : > { %v1031_v54 = vadd.f32 %v5825_v45, %v957_v29  ;;  %v958_v34 = vadd.f32 %v5865_v60, %v884_v58  ;;  %v885_v25 = vadd.f32 %v877_v61, %v810_v37  ;;  %v751_v5 = vadd.f32 %v743_v7, %v677_v15  ;;  %v5993_v29 = vld [vmem:[%s5734_s22 + $0x30] sm:$0xff] }
  0x27   : > { %v603_v42 = vadd.f32 %v595_v32, %v529_v40  ;;  %v818_v44 = vmul.f32 %v5977_v16, %v5915_v55  ;;  %v448_v56 = vmul.f32 %v5941_v63, %v5837_v49  ;;  %v522_v46 = vmul.f32 %v5974_v13, %v5842_v50 }
  0x28   : > { %v1090_v45 = vmul.f32 %v5971_v31, %v1031_v54  ;;  %v1032_v53 = vadd.f32 %v5880_v2, %v958_v34  ;;  %v959_v60 = vadd.f32 %v951_v1, %v885_v25  ;;  %v825_v61 = vadd.f32 %v817_v47, %v751_v5  ;;  %v6027_v25 = vld [vmem:[%s5734_s22 + $0x32] sm:$0xff] }
  0x29   : > { %v678_v15 = vadd.f32 %v670_v52, %v603_v42  ;;  %v530_v32 = vadd.f32 %v522_v46, %v448_v56  ;;  %v596_v54 = vmul.f32 %v5977_v16, %v5859_v57  ;;  %v671_v58 = vmul.f32 %v5993_v29, %v5900_v35 }
  0x2a   : > { %v1104_v7 = vadd.f32 %v5989_v59, %v1090_v45  ;;  %v1091_v37 = vmul.f32 %v5971_v31, %v1032_v53  ;;  %v1033_v40 = vadd.f32 %v1025_v4, %v959_v60  ;;  %v900_v63 = vadd.f32 %v892_v3, %v825_v61  ;;  %v6035_v60 = vld [vmem:[%s5734_s22 + $0x40] sm:$0xff] }
  0x2b   : > { %v752_v13 = vadd.f32 %v744_v33, %v678_v15  ;;  %v893_v2 = vmul.f32 %v5933_v6, %v5993_v29  ;;  %v967_v1 = vmul.f32 %v5952_v51, %v6010_v11  ;;  %v604_v47 = vadd.f32 %v596_v54, %v530_v32  ;;  %v6059_v32 = vld [vmem:[%s5734_s22 + $0x41] sm:$0xff] }
  0x2c   : > { %4610 = vmatmul.mubr.msk.f32.vlgmr.msra.gmra.mrb[0].mxu1 %vm1167_vm1, %v1104_v7  ;;  %v745_v52 = vmul.f32 %v6010_v11, %v5910_v36  ;;  %v7697_v53 = vmov 0.0   ;;  %v1105_v33 = vadd.f32 %v5989_v59, %v1091_v37  ;;  %v7698_v4 = vpack.c.bf16 %v5749_v17, %v5729_v14  ;;  %v6041_v14 = vld [vmem:[%s7636_s3 + $0x1] ss:$0 sm:$0xff] }
  0x2d   : > { %4612 = vmatprep.mubr.msk.f32.mxu1 %vm5605_vm0, %v7697_v53  ;;  %v1092_v3 = vmul.f32 %v5971_v31, %v1033_v40  ;;  %v974_v34 = vadd.f32 %v966_v62, %v900_v63  ;;  %v7699_v5 = vmov 0.0|0.0   ;;  %v826_v42 = vadd.f32 %v818_v44, %v752_v13 }
  0x2e   : > { %5175 = vmatpush3.bf16.msra.mxu1 %v7698_v4  ;;  %v1041_v45 = vmul.f32 %v5957_v39, %v6027_v25  ;;  %v679_v56 = vadd.f32 %v671_v58, %v604_v47  ;;  %v819_v46 = vmul.f32 %v6027_v25, %v5915_v55  ;;  %v894_v13 = vmul.f32 %v5933_v6, %v6035_v60 }
  0x2f   : > { %5176 = vmatprep.subr.bf16.mxu1 %v7699_v5  ;;  %v1048_v17 = vadd.f32 %v1040_v12, %v974_v34  ;;  %v449_v62 = vmul.f32 %v5993_v29, %v5837_v49  ;;  %v523_v63 = vmul.f32 %v6010_v11, %v5842_v50  ;;  %v1106_v44 = vadd.f32 %v5989_v59, %v1092_v3 }
  0x30   : > { %4613 = vmatmul.mubr.msk.f32.gmra.mrb[2].mxu1 %vm1167_vm1, %v1105_v33  ;;  %v901_v61 = vadd.f32 %v893_v2, %v826_v42  ;;  %v753_v15 = vadd.f32 %v745_v52, %v679_v56  ;;  %v597_v7 = vmul.f32 %v6027_v25, %v5859_v57  ;;  %v7700_v12 = vpack.c.bf16 %v5759_v19, %v5754_v18  ;;  %v6070_v52 = vld [vmem:[%s5734_s22 + $0x42] sm:$0xff]  ;;  %v6076_v18 = vld [vmem:[%s7637_s4 + $0x1] ss:$0 sm:$0xff] }
  0x31   : > { %4615 = vmatprep.mubr.msk.f32.mxu1 %vm5605_vm0, %v7697_v53  ;;  %v531_v54 = vadd.f32 %v523_v63, %v449_v62  ;;  %v672_v58 = vmul.f32 %v6035_v60, %v5900_v35  ;;  %v1113_v37 = vmul.f32 %v6041_v14, %v1048_v17  ;;  %v968_v47 = vmul.f32 %v5952_v51, %v6059_v32 }
  0x32   : > { %5178 = vmatpush3.bf16.msra.mxu1 %v7700_v12  ;;  %v975_v40 = vadd.f32 %v967_v1, %v901_v61  ;;  %v827_v2 = vadd.f32 %v819_v46, %v753_v15  ;;  %v1042_v19 = vmul.f32 %v5957_v39, %v6070_v52  ;;  %v746_v1 = vmul.f32 %v6059_v32, %v5910_v36  ;;  %v6091_v46 = vld [vmem:[%s371_s29] sm:$0xff] }
  0x33   : > { %5185 = vmatprep.subr.bf16.mxu1 %v7699_v5  ;;  %v605_v33 = vadd.f32 %v597_v7, %v531_v54  ;;  %v451_v4 = vmul.f32 %v5837_v49, %v5762_v20  ;;  %v450_v42 = vmul.f32 %v6035_v60, %v5837_v49  ;;  %v524_v56 = vmul.f32 %v6059_v32, %v5842_v50 }
  0x34   : > { %4616 = vmatmul.mubr.msk.f32.gmra.mrb[4].mxu1 %vm1167_vm1, %v1106_v44  ;;  %v1049_v3 = vadd.f32 %v1041_v45, %v975_v40  ;;  %v902_v34 = vadd.f32 %v894_v13, %v827_v2  ;;  %v820_v62 = vmul.f32 %v6070_v52, %v5915_v55  ;;  %v895_v63 = vmul.f32 %v5933_v6, %v5762_v20 }
  0x35   : > { %4618 = vmatprep.mubr.msk.f32.mxu1 %vm5605_vm0, %v7697_v53  ;;  %v680_v17 = vadd.f32 %v672_v58, %v605_v33  ;;  %v598_v45 = vmul.f32 %v6070_v52, %v5859_v57  ;;  %v1127_v13 = vadd.f32 %v6076_v18, %v1113_v37  ;;  %v532_v61 = vadd.f32 %v524_v56, %v450_v42 }
  0x36   : > { %v976_v44 = vadd.f32 %v968_v47, %v902_v34  ;;  %v673_v15 = vmul.f32 %v5900_v35, %v5762_v20  ;;  %v1114_v7 = vmul.f32 %v6041_v14, %v1049_v3  ;;  %v969_v54 = vmul.f32 %v5952_v51, %v5765_v21 }
  0x37   : > { %v754_v12 = vadd.f32 %v746_v1, %v680_v17  ;;  %v1043_v58 = vmul.f32 %v5957_v39, %v5768_v22  ;;  %v606_v2 = vadd.f32 %v598_v45, %v532_v61  ;;  %v747_v37 = vmul.f32 %v5910_v36, %v5765_v21 }
  0x38   : > { %4619 = vmatmul.mubr.msk.f32.gmra.mrb[6].mxu1 %vm1167_vm1, %v6091_v46  ;;  %v1050_v40 = vadd.f32 %v1042_v19, %v976_v44  ;;  %v525_v47 = vmul.f32 %v5842_v50, %v5765_v21  ;;  %v821_v1 = vmul.f32 %v5915_v55, %v5768_v22  ;;  %v896_v3 = vmul.f32 %v5933_v6, %v5779_v26 }
  0x39   : > { %4629 = vmatprep.mubr.msk.f32.mxu1 %vm5605_vm0, %v7697_v53  ;;  %v828_v33 = vadd.f32 %v820_v62, %v754_v12  ;;  %v599_v19 = vmul.f32 %v5859_v57, %v5768_v22  ;;  %v681_v34 = vadd.f32 %v673_v15, %v606_v2  ;;  %v970_v42 = vmul.f32 %v5952_v51, %v5782_v27 }
  0x3a   : > { %v533_v56 = vadd.f32 %v525_v47, %v451_v4  ;;  %v674_v17 = vmul.f32 %v5900_v35, %v5779_v26  ;;  %v1128_v45 = vadd.f32 %v6076_v18, %v1114_v7  ;;  %v1115_v62 = vmul.f32 %v6041_v14, %v1050_v40 }
  0x3b   : > { %v903_v44 = vadd.f32 %v895_v63, %v828_v33  ;;  %v1044_v61 = vmul.f32 %v5957_v39, %v5785_v28  ;;  %v755_v12 = vadd.f32 %v747_v37, %v681_v34  ;;  %v748_v15 = vmul.f32 %v5910_v36, %v5782_v27 }
  0x3c   : > { %4630 = vmatmul.mubr.msk.f32.vlgmr.msra.gmra.mrb[8].mxu1 %vm1167_vm1, %v1127_v13  ;;  %v607_v5 = vadd.f32 %v599_v19, %v533_v56  ;;  %v452_v4 = vmul.f32 %v5779_v26, %v5837_v49  ;;  %v822_v63 = vmul.f32 %v5915_v55, %v5785_v28  ;;  %v526_v40 = vmul.f32 %v5782_v27, %v5842_v50 }
  0x3d   : > { %4632 = vmatprep.mubr.msk.f32.mxu1 %vm5605_vm0, %v7697_v53  ;;  %v977_v7 = vadd.f32 %v969_v54, %v903_v44  ;;  %v600_v13 = vmul.f32 %v5785_v28, %v5859_v57  ;;  %v829_v2 = vadd.f32 %v821_v1, %v755_v12  ;;  %v897_v47 = vmul.f32 %v5933_v6, %v5793_v30 }
  0x3e   : > { %v682_v37 = vadd.f32 %v674_v17, %v607_v5  ;;  %v971_v33 = vmul.f32 %v5952_v51, %v5808_v38  ;;  %v1129_v19 = vadd.f32 %v6076_v18, %v1115_v62  ;;  %v534_v34 = vadd.f32 %v526_v40, %v452_v4 }
  0x3f   : > { %v1051_v54 = vadd.f32 %v1043_v58, %v977_v7  ;;  %v675_v56 = vmul.f32 %v5793_v30, %v5900_v35  ;;  %v904_v44 = vadd.f32 %v896_v3, %v829_v2  ;;  %v749_v5 = vmul.f32 %v5808_v38, %v5910_v36 }
  0x40   : > { %4633 = vmatmul.mubr.msk.f32.gmra.mrb[10].mxu1 %vm1167_vm1, %v1128_v45  ;;  %v756_v27 = vadd.f32 %v748_v15, %v682_v37  ;;  %v424_v1 = vmul.f32 %v5697_v8, %v5876_v0  ;;  %v608_v58 = vadd.f32 %v600_v13, %v534_v34  ;;  %v498_v62 = vmul.f32 %v5704_v9, %v5888_v23  ;;  %v7701_v13 = vld [vmem:[#allocation2_spill] sm:$0xff] }
  0x41   : > { %4635 = vmatprep.mubr.msk.f32.mxu1 %vm5605_vm0, %v7697_v53  ;;  %v1116_v17 = vmul.f32 %v6041_v14, %v1051_v54  ;;  %v572_v45 = vmul.f32 %v5709_v10, %v5891_v24  ;;  %v978_v3 = vadd.f32 %v970_v42, %v904_v44  ;;  %v1045_v15 = vmul.f32 %v5957_v39, %v5817_v41  ;;  %v7704_v24 = vld [vmem:[#allocation3_spill] sm:$0xff] }
  0x42   : > { %v830_v12 = vadd.f32 %v822_v63, %v756_v27  ;;  %v823_v4 = vmul.f32 %v5817_v41, %v5915_v55  ;;  %v683_v7 = vadd.f32 %v675_v56, %v608_v58  ;;  %v898_v40 = vmul.f32 %v5933_v6, %v5832_v48  ;;  %v7702_v63 = vld [vmem:[#allocation9_spill] sm:$0xff]  ;;  %v7703_v58 = vld [vmem:[#allocation16_spill] sm:$0xff] }
  0x43   : > { %v506_v2 = vadd.f32 %v498_v62, %v424_v1  ;;  %v647_v37 = vmul.f32 %v7701_v13, %v5905_v43  ;;  %v1130_v54 = vadd.f32 %v6076_v18, %v1116_v17  ;;  %v1052_v42 = vadd.f32 %v1044_v61, %v978_v3  ;;  %v7705_v3 = vld [vmem:[#allocation10_spill] sm:$0xff] }
  0x44   : > { %4636 = vmatmul.mubr.msk.f32.gmra.mrb[12].mxu1 %vm1167_vm1, %v1129_v19  ;;  %v905_v27 = vadd.f32 %v897_v47, %v830_v12  ;;  %v972_v34 = vmul.f32 %v5952_v51, %v7702_v63  ;;  %v757_v56 = vadd.f32 %v749_v5, %v683_v7  ;;  %v721_v1 = vmul.f32 %v7704_v24, %v7703_v58  ;;  %v7706_v12 = vld [vmem:[#allocation17_spill] sm:$0xff]  ;;  %v7707_v7 = vld [vmem:[#allocation4_spill] sm:$0xff] }
  0x45   : > { %4638 = vmatprep.mubr.msk.f32.mxu1 %vm5605_vm0, %v7697_v53  ;;  %v580_v44 = vadd.f32 %v572_v45, %v506_v2  ;;  %v453_v62 = vmul.f32 %v5793_v30, %v5837_v49  ;;  %v1117_v19 = vmul.f32 %v6041_v14, %v1052_v42  ;;  %v527_v61 = vmul.f32 %v5808_v38, %v5842_v50  ;;  %v7710_v42 = vld [vmem:[#allocation19_spill] sm:$0xff] }
  0x46   : > { %v979_v23 = vadd.f32 %v971_v33, %v905_v27  ;;  %v601_v47 = vmul.f32 %v5817_v41, %v5859_v57  ;;  %v831_v17 = vadd.f32 %v823_v4, %v757_v56  ;;  %v1046_v5 = vmul.f32 %v5957_v39, %v7705_v3  ;;  %v7708_v57 = vld [vmem:[#allocation18_spill] sm:$0xff]  ;;  %v7709_v4 = vld [vmem:[#allocation5_spill] sm:$0xff] }
  0x47   : > { %v655_v45 = vadd.f32 %v647_v37, %v580_v44  ;;  %v795_v2 = vmul.f32 %v7707_v7, %v7706_v12  ;;  %v1131_v30 = vadd.f32 %v6076_v18, %v1117_v19  ;;  %v535_v33 = vadd.f32 %v527_v61, %v453_v62  ;;  %v7711_v27 = vld [vmem:[#allocation6_spill] sm:$0xff]  ;;  %v7712_v19 = vld [vmem:[#allocation8_spill] sm:$0xff] }
  0x48   : > { %4639 = vmatmul.mubr.msk.f32.gmra.mrb[14].mxu1 %vm1167_vm1, %v1130_v54  ;;  %v1053_v49 = vadd.f32 %v1045_v15, %v979_v23  ;;  %v676_v38 = vmul.f32 %v5832_v48, %v5900_v35  ;;  %v906_v41 = vadd.f32 %v898_v40, %v831_v17  ;;  %v870_v37 = vmul.f32 %v7709_v4, %v7708_v57 }
  0x49   : > { %4641 = vmatprep.mubr.msk.f32.mxu1 %vm5605_vm0, %v7697_v53  ;;  %v729_v50 = vadd.f32 %v721_v1, %v655_v45  ;;  %v944_v56 = vmul.f32 %v7711_v27, %v7710_v42  ;;  %v609_v44 = vadd.f32 %v601_v47, %v535_v33  ;;  %v750_v23 = vmul.f32 %v7702_v63, %v5910_v36  ;;  %v7714_v33 = vld [vmem:[#allocation12_spill] sm:$0xff] }
  0x4a   : > { %v1118_v54 = vmul.f32 %v6041_v14, %v1053_v49  ;;  %v425_v48 = vmul.f32 %v5905_v43, %v5697_v8  ;;  %v980_v35 = vadd.f32 %v972_v34, %v906_v41  ;;  %v499_v40 = vmul.f32 %v7703_v58, %v5704_v9 }
  0x4b   : > { %v803_v15 = vadd.f32 %v795_v2, %v729_v50  ;;  %v573_v1 = vmul.f32 %v7706_v12, %v5709_v10  ;;  %v1018_v61 = vmul.f32 %v7712_v19, %v5977_v16  ;;  %v684_v47 = vadd.f32 %v676_v38, %v609_v44 }
  0x4c   : > { %4642 = vmatmul.mubr.msk.f32.gmra.mrb[16].mxu1 %vm1167_vm1, %v1131_v30  ;;  %v1132_v62 = vadd.f32 %v6076_v18, %v1118_v54  ;;  %v824_v36 = vmul.f32 %v7705_v3, %v5915_v55  ;;  %v1054_v63 = vadd.f32 %v1046_v5, %v980_v35  ;;  %v507_v17 = vadd.f32 %v499_v40, %v425_v48  ;;  %v7713_v30 = vld [vmem:[#allocation11_spill] sm:$0xff]  ;;  %v7715_v54 = vld [vmem:[#allocation13_spill] sm:$0xff] }
  0x4d   : > { %4644 = vmatprep.mubr.msk.f32.mxu1 %vm5605_vm0, %v7697_v53  ;;  %v878_v34 = vadd.f32 %v870_v37, %v803_v15  ;;  %v648_v45 = vmul.f32 %v7708_v57, %v7701_v13  ;;  %v758_v2 = vadd.f32 %v750_v23, %v684_v47  ;;  %v899_v49 = vmul.f32 %v5933_v6, %v7713_v30 }
  0x4e   : > { %v973_v41 = vmul.f32 %v5952_v51, %v7714_v33  ;;  %v722_v38 = vmul.f32 %v7710_v42, %v7704_v24  ;;  %v1119_v55 = vmul.f32 %v6041_v14, %v1054_v63  ;;  %v581_v50 = vadd.f32 %v573_v1, %v507_v17 }
  0x4f   : > { %v952_v3 = vadd.f32 %v944_v56, %v878_v34  ;;  %v426_v5 = vmul.f32 %v7708_v57, %v5697_v8  ;;  %v832_v37 = vadd.f32 %v824_v36, %v758_v2  ;;  %v1047_v44 = vmul.f32 %v5957_v39, %v7715_v54 }
  0x50   : > { %4645 = vmatmul.mubr.msk.f32.gmra.mrb[18].mxu1 %vm1167_vm1, %v1132_v62  ;;  %v500_v6 = vmul.f32 %v7710_v42, %v5704_v9  ;;  %v574_v51 = vmul.f32 %v5977_v16, %v5709_v10  ;;  %v1133_v56 = vadd.f32 %v6076_v18, %v1119_v55  ;;  %v656_v48 = vadd.f32 %v648_v45, %v581_v50 }
  0x51   : > { %4647 = vmatprep.mubr.msk.f32.mxu1 %vm5605_vm0, %v7697_v53  ;;  %v1026_v23 = vadd.f32 %v1018_v61, %v952_v3  ;;  %v796_v35 = vmul.f32 %v5977_v16, %v7707_v7  ;;  %v907_v15 = vadd.f32 %v899_v49, %v832_v37  ;;  %v871_v39 = vmul.f32 %v7709_v4, %v5993_v29 }
  0x52   : > { %v508_v40 = vadd.f32 %v500_v6, %v426_v5  ;;  %v649_v1 = vmul.f32 %v5993_v29, %v7701_v13  ;;  %v730_v47 = vadd.f32 %v722_v38, %v656_v48  ;;  %v945_v36 = vmul.f32 %v7711_v27, %v6010_v11 }
  0x53   : > { %v1085_v62 = vmul.f32 %v5971_v31, %v1026_v23  ;;  %v723_v61 = vmul.f32 %v6010_v11, %v7704_v24  ;;  %v981_v63 = vadd.f32 %v973_v41, %v907_v15  ;;  %v427_v17 = vmul.f32 %v5993_v29, %v5697_v8 }
  0x54   : > { %4648 = vmatmul.mubr.msk.f32.gmra.mrb[20].mxu1 %vm1167_vm1, %v1133_v56  ;;  %v582_v34 = vadd.f32 %v574_v51, %v508_v40  ;;  %v501_v45 = vmul.f32 %v6010_v11, %v5704_v9  ;;  %v804_v30 = vadd.f32 %v796_v35, %v730_v47  ;;  %v797_v49 = vmul.f32 %v6027_v25, %v7707_v7 }
  0x55   : > { %v1099_v2 = vadd.f32 %v5989_v59, %v1085_v62  ;;  %4650 = vmatprep.mubr.msk.f32.mxu1 %vm5605_vm0, %v7697_v53  ;;  %v575_v33 = vmul.f32 %v6027_v25, %v5709_v10  ;;  %v1055_v41 = vadd.f32 %v1047_v44, %v981_v63  ;;  %v650_v3 = vmul.f32 %v6035_v60, %v7701_v13 }
  0x56   : > { %v657_v38 = vadd.f32 %v649_v1, %v582_v34  ;;  %v509_v55 = vadd.f32 %v501_v45, %v427_v17  ;;  %v879_v50 = vadd.f32 %v871_v39, %v804_v30  ;;  %v1019_v5 = vmul.f32 %v7712_v19, %v6027_v25 }
  0x57   : > { %4595 = vmatmul.mubr.msk.f32.vlgmr.msra.gmra.mrb[0].mxu0 %vm1167_vm1, %v1099_v2  ;;  %v872_v37 = vmul.f32 %v7709_v4, %v6035_v60  ;;  %v946_v54 = vmul.f32 %v7711_v27, %v6059_v32  ;;  %v1120_v6 = vmul.f32 %v6041_v14, %v1055_v41  ;;  %v724_v56 = vmul.f32 %v6059_v32, %v7704_v24 }
  0x58   : > { %4597 = vmatprep.mubr.msk.f32.mxu0 %vm5605_vm0, %v7697_v53  ;;  %v731_v44 = vadd.f32 %v723_v61, %v657_v38  ;;  %v583_v51 = vadd.f32 %v575_v33, %v509_v55  ;;  %v953_v23 = vadd.f32 %v945_v36, %v879_v50  ;;  %v428_v48 = vmul.f32 %v6035_v60, %v5697_v8 }
  0x59   : > { %v502_v35 = vmul.f32 %v6059_v32, %v5704_v9  ;;  %v576_v15 = vmul.f32 %v6070_v52, %v5709_v10  ;;  %v1134_v14 = vadd.f32 %v6076_v18, %v1120_v6  ;;  %v798_v1 = vmul.f32 %v6070_v52, %v7707_v7 }
  0x5a   : > { %v805_v39 = vadd.f32 %v797_v49, %v731_v44  ;;  %v658_v40 = vadd.f32 %v650_v3, %v583_v51  ;;  %v1027_v62 = vadd.f32 %v1019_v5, %v953_v23  ;;  %v651_v36 = vmul.f32 %v7701_v13, %v5762_v20  ;;  %v7716_v5 = vld [vmem:[#allocation7_spill] sm:$0xff] }
  0x5b   : > { %v510_v47 = vadd.f32 %v502_v35, %v428_v48  ;;  %4651 = vmatmul.mubr.msk.f32.gmra.mrb[22].mxu1 %vm1167_vm1, %v1134_v14  ;;  %v1020_v9 = vmul.f32 %v7712_v19, %v6070_v52  ;;  %v873_v10 = vmul.f32 %v7709_v4, %v5762_v20  ;;  %v725_v34 = vmul.f32 %v7704_v24, %v5765_v21  ;;  %v6337_v48 = vld [vmem:[%s7635_s2 + $0x13] ss:$0 sm:$0xff]  ;;  %v7717_v35 = vld [vmem:[#allocation14_spill] sm:$0xff] }
  0x5c   : > { %v880_v8 = vadd.f32 %v872_v37, %v805_v39  ;;  %v732_v61 = vadd.f32 %v724_v56, %v658_v40  ;;  %v1086_v18 = vmul.f32 %v5971_v31, %v1027_v62  ;;  %4653 = vmatprep.mubr.msk.f32.mxu1 %vm5605_vm0, %v7697_v53  ;;  %v947_v45 = vmul.f32 %v7711_v27, %v5765_v21  ;;  %v7718_v39 = vld [vmem:[#allocation15_spill] sm:$0xff] }
  0x5d   : > { %v584_v63 = vadd.f32 %v576_v15, %v510_v47  ;;  %v799_v49 = vmul.f32 %v7707_v7, %v5768_v22  ;;  %v1021_v38 = vmul.f32 %v7712_v19, %v5768_v22  ;;  %v874_v55 = vmul.f32 %v7709_v4, %v5779_v26  ;;  %v6346_v15 = vld [vmem:[%s7635_s2 + $0x14] ss:$0 sm:$0xff] }
  0x5e   : > { %v954_v13 = vadd.f32 %v946_v54, %v880_v8  ;;  %v806_v17 = vadd.f32 %v798_v1, %v732_v61  ;;  %v1100_v2 = vadd.f32 %v5989_v59, %v1086_v18  ;;  %v948_v37 = vmul.f32 %v7711_v27, %v7716_v5  ;;  %v6353_v1 = vld [vmem:[%s7635_s2 + $0x15] ss:$0 sm:$0xff]  ;;  %v1443_v8 = vld [vmem:[%s7640_s7] sm:$0xff]  ;;  %v6370_v61 = vld [vmem:[%s7635_s2 + $0x16] ss:$0 sm:$0xff] }
  0x5f   : > { %v659_v30 = vadd.f32 %v651_v36, %v584_v63  ;;  %4654 = vmatmul.mubr.msk.f32.gmra.mrb[24].mxu1 %vm1167_vm1, %v6091_v46  ;;  %v1022_v26 = vmul.f32 %v7712_v19, %v5785_v28  ;;  %v6332_v19 = vld [vmem:[%s7635_s2 + $0x12] ss:$0 sm:$0xff]  ;;  %v616_v40 = vmul.f32 %v6346_v15, %v7718_v39  ;;  %v543_v36 = vmul.f32 %v7703_v58, %v6337_v48 }
  0x60   : > { %v1028_v33 = vadd.f32 %v1020_v9, %v954_v13  ;;  %v881_v41 = vadd.f32 %v873_v10, %v806_v17  ;;  %4598 = vmatmul.mubr.msk.f32.gmra.mrb[2].mxu0 %vm1167_vm1, %v1100_v2  ;;  %4709 = vmatprep.mubr.msk.f32.mxu1 %vm5605_vm0, %v7697_v53  ;;  %v469_v47 = vmul.f32 %v5905_v43, %v6332_v19  ;;  %v1444_v9 = vld [vmem:[%s7640_s7 + $0x8] sm:$0xff] }
  0x61   : > { %v733_v24 = vadd.f32 %v725_v34, %v659_v30  ;;  %4600 = vmatprep.mubr.msk.f32.mxu0 %vm5605_vm0, %v7697_v53  ;;  %v5180_v10 = vpack.c.bf16 %v1444_v9, %v1443_v8  ;;  %v6377_v34 = vld [vmem:[%s7635_s2 + $0x17] ss:$0 sm:$0xff]  ;;  %v617_v13 = vmul.f32 %v7706_v12, %v6346_v15  ;;  %v692_v2 = vmul.f32 %v7708_v57, %v6353_v1 }
  0x62   : > { %v1087_v7 = vmul.f32 %v5971_v31, %v1028_v33  ;;  %v955_v3 = vadd.f32 %v947_v45, %v881_v41  ;;  %v551_v63 = vadd.f32 %v543_v36, %v469_v47  ;;  %v839_v45 = vmul.f32 %v6377_v34, %v7706_v12  ;;  %v1446_v33 = vld [vmem:[%s7640_s7 + $0x18] sm:$0xff]  ;;  %v6450_v36 = vld [vmem:[%s7637_s4 + $0x2] ss:$0 sm:$0xff] }
  0x63   : > { %v807_v50 = vadd.f32 %v799_v49, %v733_v24  ;;  %5181 = vmatpush3.bf16.msra.mxu0 %v5180_v10  ;;  %v7719_v30 = vmov 0.0|0.0   ;;  %v1445_v49 = vld [vmem:[%s7640_s7 + $0x10] sm:$0xff]  ;;  %v6397_v12 = vld [vmem:[%s7635_s2 + $0x18] ss:$0 sm:$0xff]  ;;  %v694_v47 = vmul.f32 %v6035_v60, %v6353_v1 }
  0x64   : > { %v1101_v54 = vadd.f32 %v5989_v59, %v1087_v7  ;;  %v1029_v6 = vadd.f32 %v1021_v38, %v955_v3  ;;  %5182 = vmatprep.subr.bf16.mxu0 %v7719_v30  ;;  %v625_v41 = vadd.f32 %v617_v13, %v551_v63  ;;  %v544_v38 = vmul.f32 %v7710_v42, %v6337_v48 }
  0x65   : > { %v882_v44 = vadd.f32 %v874_v55, %v807_v50  ;;  %v5183_v24 = vpack.c.bf16 %v1446_v33, %v1445_v49  ;;  %v914_v7 = vmul.f32 %v6397_v12, %v7708_v57  ;;  %v766_v3 = vmul.f32 %v7710_v42, %v6370_v61  ;;  %v6408_v50 = vld [vmem:[%s7635_s2 + $0x19] ss:$0 sm:$0xff] }
  0x66   : > { %4601 = vmatmul.mubr.msk.f32.gmra.mrb[4].mxu0 %vm1167_vm1, %v1101_v54  ;;  %v1088_v4 = vmul.f32 %v5971_v31, %v1029_v6  ;;  %v700_v5 = vadd.f32 %v692_v2, %v625_v41  ;;  %v618_v54 = vmul.f32 %v5977_v16, %v6346_v15  ;;  %v768_v63 = vmul.f32 %v6059_v32, %v6370_v61 }
  0x67   : > { %4603 = vmatprep.mubr.msk.f32.mxu0 %vm5605_vm0, %v7697_v53  ;;  %v956_v51 = vadd.f32 %v948_v37, %v882_v44  ;;  %5184 = vmatpush3.bf16.msra.mxu0 %v5183_v24  ;;  %v988_v44 = vmul.f32 %v6408_v50, %v7710_v42  ;;  %v917_v24 = vmul.f32 %v6397_v12, %v5762_v20 }
  0x68   : > { %v1102_v56 = vadd.f32 %v5989_v59, %v1088_v4  ;;  %v6421_v4 = vld [vmem:[%s7635_s2 + $0x1a] ss:$0 sm:$0xff]  ;;  %5201 = vmatprep.subr.bf16.mxu0 %v7719_v30 }
  0x69   : > { %v1030_v23 = vadd.f32 %v1022_v26, %v956_v51  ;;  %v693_v26 = vmul.f32 %v5993_v29, %v6353_v1  ;;  %v774_v51 = vadd.f32 %v766_v3, %v700_v5  ;;  %v1063_v9 = vmul.f32 %v6421_v4, %v6027_v25 }
  0x6a   : > { %4604 = vmatmul.mubr.msk.f32.gmra.mrb[6].mxu0 %vm1167_vm1, %v1102_v56  ;;  %v1064_v41 = vmul.f32 %v6421_v4, %v6070_v52  ;;  %v991_v5 = vmul.f32 %v6408_v50, %v5765_v21 }
  0x6b   : > { %4606 = vmatprep.mubr.msk.f32.mxu0 %vm5605_vm0, %v7697_v53  ;;  %v1089_v27 = vmul.f32 %v5971_v31, %v1030_v23  ;;  %v468_v31 = vmul.f32 %v6332_v19, %v5876_v0  ;;  %v691_v0 = vmul.f32 %v6353_v1, %v5905_v43  ;;  %v765_v43 = vmul.f32 %v6370_v61, %v7703_v58 }
  0x6c   : > { %v470_v58 = vmul.f32 %v7708_v57, %v6332_v19  ;;  %v840_v57 = vmul.f32 %v5977_v16, %v6377_v34  ;;  %v471_v23 = vmul.f32 %v5993_v29, %v6332_v19 }
  0x6d   : > { %v1103_v28 = vadd.f32 %v5989_v59, %v1089_v27  ;;  %v542_v59 = vmul.f32 %v6337_v48, %v7717_v35  ;;  %v545_v27 = vmul.f32 %v6010_v11, %v6337_v48  ;;  %v767_v35 = vmul.f32 %v6010_v11, %v6370_v61 }
  0x6e   : > { %v552_v37 = vadd.f32 %v544_v38, %v470_v58  ;;  %v990_v58 = vmul.f32 %v6408_v50, %v6059_v32 }
  0x6f   : > { %4607 = vmatmul.mubr.msk.f32.gmra.mrb[8].mxu0 %vm1167_vm1, %v1103_v28  ;;  %v550_v14 = vadd.f32 %v542_v59, %v468_v31  ;;  %v1062_v28 = vmul.f32 %v6421_v4, %v5977_v16  ;;  %v915_v31 = vmul.f32 %v6397_v12, %v5993_v29  ;;  %v6437_v59 = vld [vmem:[%s7636_s3 + $0x2] ss:$0 sm:$0xff]  ;;  %v989_v16 = vmul.f32 %v6408_v50, %v6010_v11 }
  0x70   : > { %4664 = vmatprep.mubr.msk.f32.mxu0 %vm5605_vm0, %v7697_v53  ;;  %v626_v56 = vadd.f32 %v618_v54, %v552_v37  ;;  %v841_v29 = vmul.f32 %v6027_v25, %v6377_v34  ;;  %v916_v11 = vmul.f32 %v6397_v12, %v6035_v60 }
  0x71   : > { %v624_v62 = vadd.f32 %v616_v40, %v550_v14  ;;  %v848_v14 = vadd.f32 %v840_v57, %v774_v51  ;;  %v553_v40 = vadd.f32 %v545_v27, %v471_v23 }
  0x72   : > { %v701_v39 = vadd.f32 %v693_v26, %v626_v56 }
  0x73   : > { %v699_v18 = vadd.f32 %v691_v0, %v624_v62  ;;  %v619_v62 = vmul.f32 %v6027_v25, %v6346_v15  ;;  %v923_v8 = vadd.f32 %v915_v31, %v848_v14  ;;  %v842_v25 = vmul.f32 %v6070_v52, %v6377_v34 }
  0x74   : > { %v775_v10 = vadd.f32 %v767_v35, %v701_v39 }
  0x75   : > { %v773_v17 = vadd.f32 %v765_v43, %v699_v18  ;;  %v627_v18 = vadd.f32 %v619_v62, %v553_v40  ;;  %v997_v13 = vadd.f32 %v989_v16, %v923_v8 }
  0x77   : > { %v847_v55 = vadd.f32 %v839_v45, %v773_v17  ;;  %v849_v17 = vadd.f32 %v841_v29, %v775_v10  ;;  %v702_v45 = vadd.f32 %v694_v47, %v627_v18  ;;  %v1071_v49 = vadd.f32 %v1063_v9, %v997_v13 }
  0x79   : > { %v922_v6 = vadd.f32 %v914_v7, %v847_v55  ;;  %v924_v33 = vadd.f32 %v916_v11, %v849_v17  ;;  %v776_v38 = vadd.f32 %v768_v63, %v702_v45  ;;  %v1142_v55 = vmul.f32 %v6437_v59, %v1071_v49 }
  0x7b   : > { %v996_v42 = vadd.f32 %v988_v44, %v922_v6  ;;  %v998_v7 = vadd.f32 %v990_v58, %v924_v33  ;;  %v850_v3 = vadd.f32 %v842_v25, %v776_v38  ;;  %v1156_v37 = vadd.f32 %v6450_v36, %v1142_v55 }
  0x7c   : > { %v1065_v44 = vmul.f32 %v6421_v4, %v5768_v22  ;;  %v546_v38 = vmul.f32 %v6059_v32, %v6337_v48 }
  0x7d   : > { %v1070_v0 = vadd.f32 %v1062_v28, %v996_v42  ;;  %v1072_v54 = vadd.f32 %v1064_v41, %v998_v7  ;;  %v925_v6 = vadd.f32 %v917_v24, %v850_v3  ;;  %v472_v41 = vmul.f32 %v6035_v60, %v6332_v19 }
  0x7e   : > { %v620_v7 = vmul.f32 %v6070_v52, %v6346_v15 }
  0x7f   : > { %v1141_v43 = vmul.f32 %v6437_v59, %v1070_v0  ;;  %v1143_v20 = vmul.f32 %v6437_v59, %v1072_v54  ;;  %v999_v57 = vadd.f32 %v991_v5, %v925_v6  ;;  %v554_v55 = vadd.f32 %v546_v38, %v472_v41  ;;  %v5581_v5 = vld [vmem:[%s5734_s22 + $0x50] sm:$0xff] }
  0x80   : > { %v473_v54 = vmul.f32 %v5581_v5, %v6332_v19  ;;  %v5582_v6 = vld [vmem:[%s5734_s22 + $0x51] sm:$0xff] }
  0x81   : > { %v1155_v2 = vadd.f32 %v6450_v36, %v1141_v43  ;;  %v1157_v26 = vadd.f32 %v6450_v36, %v1143_v20  ;;  %v1073_v51 = vadd.f32 %v1065_v44, %v999_v57  ;;  %v628_v3 = vadd.f32 %v620_v7, %v554_v55  ;;  %v5587_v38 = vld [vmem:[%s5734_s22 + $0x70] sm:$0xff] }
  0x82   : > { %v547_v44 = vmul.f32 %v5582_v6, %v6337_v48 }
  0x83   : > { %4665 = vmatmul.mubr.msk.f32.vlgmr.msra.gmra.mrb[10].mxu0 %vm1167_vm1, %v1155_v2  ;;  %v1144_v21 = vmul.f32 %v6437_v59, %v1073_v51  ;;  %v769_v51 = vmul.f32 %v5582_v6, %v6370_v61 }
  0x84   : > { %4667 = vmatprep.mubr.msk.f32.mxu0 %vm5605_vm0, %v7697_v53  ;;  %v555_v52 = vadd.f32 %v547_v44, %v473_v54  ;;  %v919_v44 = vmul.f32 %v5587_v38, %v6397_v12 }
  0x85   : > { %v1158_v22 = vadd.f32 %v6450_v36, %v1144_v21  ;;  %v5583_v21 = vld [vmem:[%s5734_s22 + $0x52] sm:$0xff] }
  0x87   : > { %4668 = vmatmul.mubr.msk.f32.gmra.mrb[12].mxu0 %vm1167_vm1, %v1156_v37  ;;  %v695_v37 = vmul.f32 %v5581_v5, %v6353_v1  ;;  %v5588_v5 = vld [vmem:[%s5734_s22 + $0x71] sm:$0xff] }
  0x88   : > { %4670 = vmatprep.mubr.msk.f32.mxu0 %vm5605_vm0, %v7697_v53 }
  0x8b   : > { %4671 = vmatmul.mubr.msk.f32.gmra.mrb[14].mxu0 %vm1167_vm1, %v1157_v26  ;;  %v703_v26 = vadd.f32 %v695_v37, %v628_v3  ;;  %v475_v3 = vmul.f32 %v5587_v38, %v6332_v19  ;;  %v549_v37 = vmul.f32 %v5588_v5, %v6337_v48 }
  0x8c   : > { %4673 = vmatprep.mubr.msk.f32.mxu0 %vm5605_vm0, %v7697_v53 }
  0x8f   : > { %4674 = vmatmul.mubr.msk.f32.gmra.mrb[16].mxu0 %vm1167_vm1, %v1158_v22  ;;  %v621_v22 = vmul.f32 %v5583_v21, %v6346_v15 }
  0x90   : > { %4676 = vmatprep.mubr.msk.f32.mxu0 %vm5605_vm0, %v7697_v53 }
  0xff   : > { %v6490_v56 = vpop.f32.mrb[0].mxu1 }
 0x100   : > { %v4611_v23 = vpop.f32.mrb[1].mxu1 }
 0x101   : > { %v777_v23 = vadd.f32 %v769_v51, %v703_v26  ;;  %v557_v51 = vadd.f32 %v549_v37, %v475_v3 }
 0x103   : > { %v6492_v27 = vpop.f32.mrb[2].mxu1 }
 0x104   : > { %v4614_v42 = vpop.f32.mrb[3].mxu1 }
 0x105   : > { %v843_v42 = vmul.f32 %v5583_v21, %v6377_v34 }
 0x107   : > { %v6494_v28 = vpop.f32.mrb[4].mxu1 }
 0x108   : > { %v4617_v31 = vpop.f32.mrb[5].mxu1 }
 0x109   : > { %v5584_v31 = vld [vmem:[%s5734_s22 + $0x60] sm:$0xff] }
 0x10b   : > { %v6496_v35 = vpop.f32.mrb[6].mxu1 }
 0x10c   : > { %v4620_v14 = vpop.f32.mrb[7].mxu1 }
 0x10d   : > { %v696_v14 = vmul.f32 %v5584_v31, %v6353_v1 }
 0x10f   : > { %v1399_v39 = vpop.f32.mrb[8].mxu1 }
 0x110   : > { %v4631_v40 = vpop.f32.mrb[9].mxu1 }
 0x111   : > { %v629_v40 = vadd.f32 %v621_v22, %v555_v52  ;;  %v993_v22 = vmul.f32 %v5588_v5, %v6408_v50 }
 0x113   : > { %v1404_v62 = vpop.f32.mrb[10].mxu1 }
 0x114   : > { %v5186_v16 = vpack.c.bf16 %v1404_v62, %v1399_v39  ;;  %v4634_v29 = vpop.f32.mrb[11].mxu1  ;;  %v6504_v47 = vpack.i.bf16 %v1404_v62, %v1399_v39  ;;  %v474_v62 = vmul.f32 %v5584_v31, %v6332_v19  ;;  %v5589_v19 = vld [vmem:[%s5734_s22 + $0x72] sm:$0xff] }
 0x115   : > { %v623_v52 = vmul.f32 %v5589_v19, %v6346_v15 }
 0x116   : > { %5318 = vrot.lane.b32.xlu0 %v6504_v47, %s5607_s28  ;;  %5188 = vmatpush3.bf16.xpose.msk.msra.mxu1 %vm6500_vm3, %v5186_v16  ;;  %v5585_v16 = vld [vmem:[%s5734_s22 + $0x61] sm:$0xff] }
 0x117   : > { %v1409_v8 = vpop.f32.mrb[12].mxu1  ;;  %5189 = vmatprep.subr.bf16.mxu1 %v7719_v30  ;;  %v548_v29 = vmul.f32 %v5585_v16, %v6337_v48 }
 0x118   : > { %v4637_v9 = vpop.f32.mrb[13].mxu1 }
 0x11b   : > { %v1414_v10 = vpop.f32.mrb[14].mxu1 }
 0x11c   : > { %v5190_v18 = vpack.c.bf16 %v1414_v10, %v1409_v8  ;;  %v4640_v43 = vpop.f32.mrb[15].mxu1  ;;  %v6511_v11 = vpack.i.bf16 %v1414_v10, %v1409_v8  ;;  %v851_v10 = vadd.f32 %v843_v42, %v777_v23  ;;  %v845_v23 = vmul.f32 %v5589_v19, %v6377_v34 }
 0x11d   : > { %v770_v43 = vmul.f32 %v5585_v16, %v6370_v61 }
 0x11e   : > { %5323 = vrot.lane.b32.xlu0 %v6511_v11, %s5607_s28  ;;  %5192 = vmatpush3.bf16.xpose.msk.msra.mxu1 %vm6500_vm3, %v5190_v18  ;;  %v918_v18 = vmul.f32 %v5584_v31, %v6397_v12 }
 0x11f   : > { %v1419_v63 = vpop.f32.mrb[16].mxu1  ;;  %5193 = vmatprep.subr.bf16.mxu1 %v7719_v30 }
 0x120   : > { %v4643_v13 = vpop.f32.mrb[17].mxu1 }
 0x123   : > { %v1424_v17 = vpop.f32.mrb[18].mxu1 }
 0x124   : > { %v6518_v45 = vpack.i.bf16 %v1424_v17, %v1419_v63  ;;  %v5194_v2 = vpack.c.bf16 %v1424_v17, %v1419_v63  ;;  %v4646_v58 = vpop.f32.mrb[19].mxu1  ;;  %v5586_v63 = vld [vmem:[%s5734_s22 + $0x62] sm:$0xff] }
 0x125   : > { %v622_v13 = vmul.f32 %v5586_v63, %v6346_v15  ;;  %v556_v58 = vadd.f32 %v548_v29, %v474_v62  ;;  %v844_v41 = vmul.f32 %v5586_v63, %v6377_v34  ;;  %v1066_v6 = vmul.f32 %v5586_v63, %v6421_v4 }
 0x126   : > { %5328 = vrot.lane.b32.xlu1 %v6518_v45, %s5607_s28  ;;  %5196 = vmatpush3.bf16.xpose.msk.msra.mxu1 %vm6500_vm3, %v5194_v2  ;;  %v704_v2 = vadd.f32 %v696_v14, %v629_v40  ;;  %v631_v14 = vadd.f32 %v623_v52, %v557_v51  ;;  %v5590_v40 = vld [vmem:[%s5734_s22 + $0x80] sm:$0xff] }
 0x127   : > { %v1429_v25 = vpop.f32.mrb[20].mxu1  ;;  %5197 = vmatprep.subr.bf16.mxu1 %v7719_v30  ;;  %v630_v7 = vadd.f32 %v622_v13, %v556_v58  ;;  %v698_v15 = vmul.f32 %v5590_v40, %v6353_v1  ;;  %v920_v29 = vmul.f32 %v5590_v40, %v6397_v12 }
 0x128   : > { %v4649_v49 = vpop.f32.mrb[21].mxu1  ;;  %v778_v55 = vadd.f32 %v770_v43, %v704_v2  ;;  %v5592_v2 = vld [vmem:[%s5734_s22 + $0x82] sm:$0xff] }
 0x129   : > { %v992_v49 = vmul.f32 %v5585_v16, %v6408_v50  ;;  %v1067_v16 = vmul.f32 %v5589_v19, %v6421_v4  ;;  %v706_v13 = vadd.f32 %v698_v15, %v631_v14  ;;  %v846_v58 = vmul.f32 %v5592_v2, %v6377_v34 }
 0x12a   : > { %v6525_v33 = vpop.f32.mrb[0].mxu0 }
 0x12b   : > { %v4596_v24 = vpop.f32.mrb[1].mxu0 }
 0x12c   : > { %v697_v24 = vmul.f32 %v5587_v38, %v6353_v1  ;;  %v1068_v38 = vmul.f32 %v5592_v2, %v6421_v4 }
 0x12e   : > { %v1434_v60 = vpop.f32.mrb[22].mxu1  ;;  %v705_v26 = vadd.f32 %v697_v24, %v630_v7  ;;  %v5593_v24 = vld [vmem:[%s5734_s22 + $0x90] sm:$0xff] }
 0x12f   : > { %v5198_v20 = vpack.c.bf16 %v1434_v60, %v1429_v25  ;;  %v4652_v57 = vpop.f32.mrb[23].mxu1  ;;  %v6538_v32 = vpack.i.bf16 %v1434_v60, %v1429_v25  ;;  %v926_v25 = vadd.f32 %v918_v18, %v851_v10  ;;  %v771_v60 = vmul.f32 %v5588_v5, %v6370_v61 }
 0x130   : > { %v852_v57 = vadd.f32 %v844_v41, %v778_v55  ;;  %v921_v55 = vmul.f32 %v5593_v24, %v6397_v12  ;;  %v5594_v12 = vld [vmem:[%s5734_s22 + $0x91] sm:$0xff] }
 0x131   : > { %5333 = vrot.lane.b32.xlu1 %v6538_v32, %s5607_s28  ;;  %5200 = vmatpush3.bf16.xpose.msk.msra.mxu1 %vm6500_vm3, %v5198_v20  ;;  %v1000_v54 = vadd.f32 %v992_v49, %v926_v25  ;;  %v779_v31 = vadd.f32 %v771_v60, %v705_v26  ;;  %v995_v37 = vmul.f32 %v5594_v12, %v6408_v50 }
 0x132   : > { %v6550_v39 = vpop.f32.mrb[24].mxu1  ;;  %4707 = vmatprep.subr.mxu1 %v7697_v53  ;;  %v927_v42 = vadd.f32 %v919_v44, %v852_v57  ;;  %v5595_v57 = vld [vmem:[%s5734_s22 + $0x92] sm:$0xff] }
 0x133   : > { %2051 = vrot.lane.b32.xlu0 %v6550_v39, %s5607_s28  ;;  %v6558_v8 = vpop.f32.mrb[2].mxu0  ;;  %v4655_v9 = vpop.f32.mrb[25].mxu1  ;;  %v1074_v21 = vadd.f32 %v1066_v6, %v1000_v54  ;;  %v853_v63 = vadd.f32 %v845_v23, %v779_v31  ;;  %v1069_v26 = vmul.f32 %v5595_v57, %v6421_v4 }
 0x134   : > { %v4599_v17 = vpop.f32.mrb[3].mxu0  ;;  %v5591_v9 = vld [vmem:[%s5734_s22 + $0x81] sm:$0xff]  ;;  %v1001_v43 = vadd.f32 %v993_v22, %v927_v42  ;;  %s5608_s22 = smov 112  }
 0x135   : > { %2017 = vrot.lane.b32.xlu1 %v6525_v33, %s5607_s28  ;;  %v1145_v62 = vmul.f32 %v6437_v59, %v1074_v21  ;;  %v772_v10 = vmul.f32 %v5591_v9, %v6370_v61  ;;  %v994_v61 = vmul.f32 %v5591_v9, %v6408_v50  ;;  %v928_v49 = vadd.f32 %v920_v29, %v853_v63 }
 0x136   : > { %v1075_v25 = vadd.f32 %v1067_v16, %v1001_v43 }
 0x137   : > { %2019 = vrot.lane.b32.xlu0 %v6558_v8, %s5607_s28  ;;  %v1159_v17 = vadd.f32 %v6450_v36, %v1145_v62  ;;  %v780_v41 = vadd.f32 %v772_v10, %v706_v13  ;;  %v1002_v7 = vadd.f32 %v994_v61, %v928_v49 }
 0x138   : > { %v1146_v34 = vmul.f32 %v6437_v59, %v1075_v25 }
 0x139   : > { %v6578_v20 = vpop.f32.mrb[4].mxu0  ;;  %4708 = vmatpush3.xpose.msk.msra.mxu1 %vm1588_vm2, %v6550_v39  ;;  %4677 = vmatmul.mubr.msk.f32.gmra.mrb[18].mxu0 %vm1167_vm1, %v1159_v17  ;;  %v854_v3 = vadd.f32 %v846_v58, %v780_v41  ;;  %v1076_v44 = vadd.f32 %v1068_v38, %v1002_v7 }
 0x13a   : > { %2021 = vrot.lane.b32.xlu1 %v6578_v20, %s5607_s28  ;;  %v4602_v48 = vpop.f32.mrb[5].mxu0  ;;  %5213 = vmatprep.subr.bf16.mxu1 %v7719_v30  ;;  %v1160_v6 = vadd.f32 %v6450_v36, %v1146_v34 }
 0x13b   : > { %4679 = vmatprep.mubr.msk.f32.mxu0 %vm5605_vm0, %v7697_v53  ;;  %v929_v60 = vadd.f32 %v921_v55, %v854_v3  ;;  %v1147_v51 = vmul.f32 %v6437_v59, %v1076_v44 }
 0x13c   : > { %4710 = vmatmul.mubr.msk.f32.vlgmr.msra.gmra.mrb[26].mxu1 %vm1588_vm2, %v6525_v33 }
 0x13d   : > { %v6596_v18 = vpop.f32.mrb[6].mxu0  ;;  %4712 = vmatprep.mubr.msk.f32.mxu1 %vm5605_vm0, %v7697_v53  ;;  %4680 = vmatmul.mubr.msk.f32.gmra.mrb[20].mxu0 %vm1167_vm1, %v1160_v6  ;;  %v1003_v19 = vadd.f32 %v995_v37, %v929_v60  ;;  %v1161_v50 = vadd.f32 %v6450_v36, %v1147_v51  ;;  %v1581_v60 = vlaneseq }
 0x13e   : > { %2023 = vrot.lane.b32.xlu0 %v6596_v18, %s5607_s28  ;;  %v4605_v1 = vpop.f32.mrb[7].mxu0  ;;  %4682 = vmatprep.mubr.msk.f32.mxu0 %vm5605_vm0, %v7697_v53 }
 0x13f   : > { %v1077_v4 = vadd.f32 %v1069_v26, %v1003_v19  ;;  %v6732_v57 = vand.u32 127, %v1581_v60 }
 0x140   : > { %4713 = vmatmul.mubr.msk.f32.gmra.mrb[28].mxu1 %vm1588_vm2, %v6558_v8 }
 0x141   : > { %4715 = vmatprep.mubr.msk.f32.mxu1 %vm5605_vm0, %v7697_v53  ;;  %4683 = vmatmul.mubr.msk.f32.gmra.mrb[22].mxu0 %vm1167_vm1, %v1161_v50  ;;  %v1148_v52 = vmul.f32 %v6437_v59, %v1077_v4  ;;  %vm1583_vm4 = vcmp.lt.s32.totalorder %v6732_v57, 65 }
 0x142   : > { %v6617_v5 = vpop.f32.mrb[8].mxu0  ;;  %2027 = vrot.lane.b32.xlu0 %v6490_v56, %s5607_s28  ;;  %4685 = vmatprep.mubr.msk.f32.mxu0 %vm5605_vm0, %v7697_v53 }
 0x143   : > { %2025 = vrot.lane.b32.xlu1 %v6617_v5, %s5607_s28  ;;  %v4608_v54 = vpop.f32.mrb[9].mxu0  ;;  %v1162_v48 = vadd.f32 %v6450_v36, %v1148_v52 }
 0x144   : > { %4716 = vmatmul.mubr.msk.f32.gmra.mrb[30].mxu1 %vm1588_vm2, %v6578_v20 }
 0x145   : > { %4718 = vmatprep.mubr.msk.f32.mxu1 %vm5605_vm0, %v7697_v53  ;;  %4686 = vmatmul.mubr.msk.f32.gmra.mrb[24].mxu0 %vm1167_vm1, %v1162_v48 }
 0x146   : > { %2031 = vrot.lane.b32.xlu0 %v6494_v28, %s5607_s28  ;;  %4688 = vmatprep.mubr.msk.f32.mxu0 %vm5605_vm0, %v7697_v53 }
 0x147   : > { %2029 = vrot.lane.b32.xlu1 %v6492_v27, %s5607_s28 }
 0x148   : > { %4719 = vmatmul.mubr.msk.f32.gmra.mrb[32].mxu1 %vm1588_vm2, %v6596_v18 }
 0x149   : > { %4721 = vmatprep.mubr.msk.f32.mxu1 %vm5605_vm0, %v7697_v53  ;;  %4689 = vmatmul.mubr.msk.f32.gmra.mrb[26].mxu0 %vm1167_vm1, %v6091_v46 }
 0x14a   : > { %4754 = vmatprep.mubr.msk.f32.mxu0 %vm5605_vm0, %v7697_v53 }
 0x14b   : > { %2033 = vrot.lane.b32.xlu1 %v6496_v35, %s5607_s28 }
 0x14c   : > { %4722 = vmatmul.mubr.msk.f32.gmra.mrb[34].mxu1 %vm1588_vm2, %v6617_v5 }
 0x14d   : > { %4724 = vmatprep.mubr.msk.f32.mxu1 %vm5605_vm0, %v7697_v53 }
 0x150   : > { %4725 = vmatmul.mubr.msk.f32.gmra.mrb[36].mxu1 %vm1588_vm2, %v6490_v56 }
 0x151   : > { %4727 = vmatprep.mubr.msk.f32.mxu1 %vm5605_vm0, %v7697_v53 }
 0x154   : > { %4728 = vmatmul.mubr.msk.f32.gmra.mrb[38].mxu1 %vm1588_vm2, %v6492_v27 }
 0x155   : > { %4730 = vmatprep.mubr.msk.f32.mxu1 %vm5605_vm0, %v7697_v53 }
 0x156   : > { %v1537_v46 = vpop.f32.mrb[10].mxu0 }
 0x157   : > { %v4666_v59 = vpop.f32.mrb[11].mxu0 }
 0x158   : > { %4731 = vmatmul.mubr.msk.f32.gmra.mrb[40].mxu1 %vm1588_vm2, %v6494_v28 }
 0x159   : > { %4733 = vmatprep.mubr.msk.f32.mxu1 %vm5605_vm0, %v7697_v53 }
 0x15a   : > { %v1542_v36 = vpop.f32.mrb[12].mxu0 }
 0x15b   : > { %v5202_v21 = vpack.c.bf16 %v1542_v36, %v1537_v46  ;;  %v4669_v22 = vpop.f32.mrb[13].mxu0  ;;  %v6681_v23 = vpack.i.bf16 %v1542_v36, %v1537_v46 }
 0x15c   : > { %4734 = vmatmul.mubr.msk.f32.gmra.mrb[42].mxu1 %vm1588_vm2, %v6496_v35 }
 0x15d   : > { %4799 = vmatprep.mubr.msk.f32.mxu1 %vm5605_vm0, %v7697_v53  ;;  %5338 = vrot.lane.b32.xlu1 %v6681_v23, %s5607_s28 }
 0x15e   : > { %5203 = vmatpush3.bf16.msra.mxu0 %v5202_v21  ;;  %v1547_v42 = vpop.f32.mrb[14].mxu0 }
 0x15f   : > { %5204 = vmatprep.subr.bf16.mxu0 %v7719_v30  ;;  %v4672_v31 = vpop.f32.mrb[15].mxu0 }
 0x162   : > { %v1552_v14 = vpop.f32.mrb[16].mxu0 }
 0x163   : > { %v6686_v40 = vpack.i.bf16 %v1552_v14, %v1547_v42  ;;  %v5205_v15 = vpack.c.bf16 %v1552_v14, %v1547_v42  ;;  %v4675_v62 = vpop.f32.mrb[17].mxu0 }
 0x165   : > { %5343 = vrot.lane.b32.xlu0 %v6686_v40, %s5607_s28  ;;  %5206 = vmatpush3.bf16.msra.mxu0 %v5205_v15 }
 0x166   : > { %5207 = vmatprep.subr.bf16.mxu0 %v7719_v30 }
 0x188   : > { %v5319_v16 = vpop.permute.xlu0 %5318 }
 0x189   : > { %v5321_v29 = vunpack.i.h.bf16 %v5319_v16  ;;  %v5320_v9 = vunpack.i.l.bf16 %v5319_v16 }
 0x18b   : > { %v5214_v10 = vpack.c.bf16 %v5321_v29, %v5320_v9 }
 0x18d   : > { %5216 = vmatpush3.bf16.xpose.msk.msra.mxu1 %vm6500_vm3, %v5214_v10 }
 0x18e   : > { %5217 = vmatprep.subr.bf16.mxu1 %v7719_v30 }
 0x190   : > { %v5324_v43 = vpop.permute.xlu0 %5323 }
 0x191   : > { %v5326_v63 = vunpack.i.h.bf16 %v5324_v43  ;;  %v5325_v13 = vunpack.i.l.bf16 %v5324_v43 }
 0x193   : > { %v5218_v1 = vpack.c.bf16 %v5326_v63, %v5325_v13 }
 0x195   : > { %5220 = vmatpush3.bf16.xpose.msk.msra.mxu1 %vm6500_vm3, %v5218_v1 }
 0x196   : > { %5221 = vmatprep.subr.bf16.mxu1 %v7719_v30 }
 0x198   : > { %v5329_v17 = vpop.permute.xlu1 %5328 }
 0x199   : > { %v5331_v61 = vunpack.i.h.bf16 %v5329_v17  ;;  %v5330_v2 = vunpack.i.l.bf16 %v5329_v17 }
 0x19b   : > { %v5222_v58 = vpack.c.bf16 %v5331_v61, %v5330_v2 }
 0x19d   : > { %5224 = vmatpush3.bf16.xpose.msk.msra.mxu1 %vm6500_vm3, %v5222_v58 }
 0x19e   : > { %5225 = vmatprep.subr.bf16.mxu1 %v7719_v30 }
 0x1a3   : > { %v5334_v25 = vpop.permute.xlu1 %5333 }
 0x1a4   : > { %v5336_v49 = vunpack.i.h.bf16 %v5334_v25  ;;  %v5335_v41 = vunpack.i.l.bf16 %v5334_v25 }
 0x1a5   : > { %v2052_v24 = vpop.permute.xlu0 %2051 }
 0x1a6   : > { %v5226_v38 = vpack.c.bf16 %v5336_v49, %v5335_v41 }
 0x1a7   : > { %v2018_v55 = vpop.permute.xlu1 %2017 }
 0x1a8   : > { %5228 = vmatpush3.bf16.xpose.msk.msra.mxu1 %vm6500_vm3, %v5226_v38 }
 0x1a9   : > { %4797 = vmatprep.subr.mxu1 %v7697_v53  ;;  %v2020_v34 = vpop.permute.xlu0 %2019 }
 0x1ac   : > { %v2022_v7 = vpop.permute.xlu1 %2021 }
 0x1b0   : > { %4798 = vmatpush3.xpose.msk.msra.mxu1 %vm1588_vm2, %v2052_v24  ;;  %v2024_v3 = vpop.permute.xlu0 %2023 }
 0x1b1   : > { %4871 = vmatprep.subr.mxu1 %v7697_v53 }
 0x1b3   : > { %4800 = vmatmul.mubr.msk.f32.vlgmr.msra.gmra.mrb[44].mxu1 %vm1588_vm2, %v2018_v55 }
 0x1b4   : > { %4802 = vmatprep.mubr.msk.f32.mxu1 %vm5605_vm0, %v7697_v53  ;;  %v2028_v37 = vpop.permute.xlu0 %2027 }
 0x1b5   : > { %v2026_v12 = vpop.permute.xlu1 %2025 }
 0x1b7   : > { %4803 = vmatmul.mubr.msk.f32.gmra.mrb[46].mxu1 %vm1588_vm2, %v2020_v34 }
 0x1b8   : > { %4805 = vmatprep.mubr.msk.f32.mxu1 %vm5605_vm0, %v7697_v53  ;;  %v2032_v6 = vpop.permute.xlu0 %2031 }
 0x1b9   : > { %v2030_v54 = vpop.permute.xlu1 %2029 }
 0x1bb   : > { %4806 = vmatmul.mubr.msk.f32.gmra.mrb[48].mxu1 %vm1588_vm2, %v2022_v7 }
 0x1bc   : > { %4808 = vmatprep.mubr.msk.f32.mxu1 %vm5605_vm0, %v7697_v53 }
 0x1bd   : > { %v2034_v44 = vpop.permute.xlu1 %2033 }
 0x1bf   : > { %4809 = vmatmul.mubr.msk.f32.gmra.mrb[50].mxu1 %vm1588_vm2, %v2024_v3 }
 0x1c0   : > { %4811 = vmatprep.mubr.msk.f32.mxu1 %vm5605_vm0, %v7697_v53 }
 0x1c3   : > { %4812 = vmatmul.mubr.msk.f32.gmra.mrb[52].mxu1 %vm1588_vm2, %v2026_v12 }
 0x1c4   : > { %4814 = vmatprep.mubr.msk.f32.mxu1 %vm5605_vm0, %v7697_v53 }
 0x1c7   : > { %4815 = vmatmul.mubr.msk.f32.gmra.mrb[54].mxu1 %vm1588_vm2, %v2028_v37 }
 0x1c8   : > { %4817 = vmatprep.mubr.msk.f32.mxu1 %vm5605_vm0, %v7697_v53 }
 0x1cb   : > { %4818 = vmatmul.mubr.msk.f32.gmra.mrb[56].mxu1 %vm1588_vm2, %v2030_v54 }
 0x1cc   : > { %4820 = vmatprep.mubr.msk.f32.mxu1 %vm5605_vm0, %v7697_v53 }
 0x1cf   : > { %4821 = vmatmul.mubr.msk.f32.gmra.mrb[58].mxu1 %vm1588_vm2, %v2032_v6 }
 0x1d0   : > { %4823 = vmatprep.mubr.msk.f32.mxu1 %vm5605_vm0, %v7697_v53 }
 0x1d3   : > { %4824 = vmatmul.mubr.msk.f32.gmra.mrb[60].mxu1 %vm1588_vm2, %v2034_v44 }
 0x1d4   : > { %4873 = vmatprep.mubr.msk.f32.mxu1 %vm5605_vm0, %v7697_v53 }
 0x20c   : > { %v1557_v4 = vpop.f32.mrb[18].mxu0 }
 0x20d   : > { %v4678_v46 = vpop.f32.mrb[19].mxu0 }
 0x20f   : > { %v1709_v26 = vpop.f32.mrb[26].mxu1 }
 0x210   : > { %v1753_v51 = vmul.f32 0.17677669, %v1709_v26  ;;  %v4711_v19 = vpop.f32.mrb[27].mxu1  ;;  %v1562_v31 = vpop.f32.mrb[20].mxu0 }
 0x211   : > { %v6747_v62 = vpack.i.bf16 %v1562_v31, %v1557_v4  ;;  %v5208_v16 = vpack.c.bf16 %v1562_v31, %v1557_v4  ;;  %v4681_v29 = vpop.f32.mrb[21].mxu0 }
 0x212   : > { %v6737_v50 = vsel %vm1583_vm4, %v1753_v51, -1e+30 }
 0x213   : > { %v1714_v52 = vpop.f32.mrb[28].mxu1  ;;  %v1772_v48 = vsel %vm1771_vm5, %v6737_v50, -inf  ;;  %5209 = vmatpush3.bf16.msra.mxu0 %v5208_v16 }
 0x214   : > { %v1754_v59 = vmul.f32 0.17677669, %v1714_v52  ;;  %1773 = vmax.xlane.f32.xlu0 %v1772_v48  ;;  %v4714_v36 = vpop.f32.mrb[29].mxu1  ;;  %v1567_v63 = vpop.f32.mrb[22].mxu0  ;;  %5210 = vmatprep.subr.bf16.mxu0 %v7719_v30 }
 0x215   : > { %v4684_v17 = vpop.f32.mrb[23].mxu0 }
 0x216   : > { %v6743_v21 = vsel %vm1583_vm4, %v1754_v59, -1e+30 }
 0x217   : > { %v1719_v22 = vpop.f32.mrb[30].mxu1  ;;  %v1775_v42 = vsel %vm1771_vm5, %v6743_v21, -inf }
 0x218   : > { %v1755_v14 = vmul.f32 0.17677669, %v1719_v22  ;;  %1776 = vmax.xlane.f32.xlu1 %v1775_v42  ;;  %v4717_v15 = vpop.f32.mrb[31].mxu1  ;;  %v1572_v25 = vpop.f32.mrb[24].mxu0 }
 0x219   : > { %v6762_v38 = vpack.i.bf16 %v1572_v25, %v1567_v63  ;;  %v5211_v24 = vpack.c.bf16 %v1572_v25, %v1567_v63  ;;  %v4687_v55 = vpop.f32.mrb[25].mxu0 }
 0x21a   : > { %v6751_v9 = vsel %vm1583_vm4, %v1755_v14, -1e+30 }
 0x21b   : > { %v1724_v10 = vpop.f32.mrb[32].mxu1  ;;  %v1778_v43 = vsel %vm1771_vm5, %v6751_v9, -inf  ;;  %5212 = vmatpush3.bf16.msra.mxu0 %v5211_v24 }
 0x21c   : > { %v1756_v13 = vmul.f32 0.17677669, %v1724_v10  ;;  %1779 = vmax.xlane.f32.xlu0 %v1778_v43  ;;  %v4720_v1 = vpop.f32.mrb[33].mxu1  ;;  %4752 = vmatprep.subr.mxu0 %v7697_v53  ;;  %v6793_v14 = vpop.f32.mrb[26].mxu0 }
 0x21d   : > { %v4690_v16 = vpop.f32.mrb[27].mxu0 }
 0x21e   : > { %v6758_v61 = vsel %vm1583_vm4, %v1756_v13, -1e+30 }
 0x21f   : > { %v1729_v2 = vpop.f32.mrb[34].mxu1  ;;  %v1781_v58 = vsel %vm1771_vm5, %v6758_v61, -inf  ;;  %4753 = vmatpush3.msra.mxu0 %v6793_v14 }
 0x220   : > { %v1757_v49 = vmul.f32 0.17677669, %v1729_v2  ;;  %1782 = vmax.xlane.f32.xlu0 %v1781_v58  ;;  %v4723_v41 = vpop.f32.mrb[35].mxu1  ;;  %5229 = vmatprep.subr.bf16.mxu0 %v7719_v30 }
 0x222   : > { %v6766_v34 = vsel %vm1583_vm4, %v1757_v49, -1e+30 }
 0x223   : > { %v1734_v7 = vpop.f32.mrb[36].mxu1  ;;  %v1784_v3 = vsel %vm1771_vm5, %v6766_v34, -inf }
 0x224   : > { %v1758_v12 = vmul.f32 0.17677669, %v1734_v7  ;;  %v4726_v37 = vpop.f32.mrb[37].mxu1  ;;  %1785 = vmax.xlane.f32.xlu1 %v1784_v3 }
 0x226   : > { %v6773_v54 = vsel %vm1583_vm4, %v1758_v12, -1e+30 }
 0x227   : > { %v1739_v6 = vpop.f32.mrb[38].mxu1  ;;  %v1787_v44 = vsel %vm1771_vm5, %v6773_v54, -inf }
 0x228   : > { %v1759_v60 = vmul.f32 0.17677669, %v1739_v6  ;;  %v4729_v26 = vpop.f32.mrb[39].mxu1  ;;  %1788 = vmax.xlane.f32.xlu0 %v1787_v44 }
 0x22a   : > { %v6779_v51 = vsel %vm1583_vm4, %v1759_v60, -1e+30 }
 0x22b   : > { %v1744_v19 = vpop.f32.mrb[40].mxu1  ;;  %v1790_v4 = vsel %vm1771_vm5, %v6779_v51, -inf }
 0x22c   : > { %v1760_v52 = vmul.f32 0.17677669, %v1744_v19  ;;  %v4732_v48 = vpop.f32.mrb[41].mxu1  ;;  %1791 = vmax.xlane.f32.xlu1 %v1790_v4 }
 0x22e   : > { %v6785_v46 = vsel %vm1583_vm4, %v1760_v52, -1e+30  ;;  %v5344_v52 = vpop.permute.xlu0 %5343 }
 0x22f   : > { %v1749_v59 = vpop.f32.mrb[42].mxu1  ;;  %v1793_v36 = vsel %vm1771_vm5, %v6785_v46, -inf }
 0x230   : > { %v1761_v22 = vmul.f32 0.17677669, %v1749_v59  ;;  %v4735_v42 = vpop.f32.mrb[43].mxu1  ;;  %1794 = vmax.xlane.f32.xlu0 %v1793_v36  ;;  %v5339_v36 = vpop.permute.xlu1 %5338 }
 0x232   : > { %v6791_v31 = vsel %vm1583_vm4, %v1761_v22, -1e+30 }
 0x233   : > { %v1796_v15 = vsel %vm1771_vm5, %v6791_v31, -inf }
 0x234   : > { %1797 = vmax.xlane.f32.xlu1 %v1796_v15 }
 0x286   : > { %v2155_v29 = vpop.f32.mrb[44].mxu1 }
 0x287   : > { %v2199_v10 = vmul.f32 0.17677669, %v2155_v29  ;;  %v4801_v43 = vpop.f32.mrb[45].mxu1 }
 0x289   : > { %v6801_v63 = vsel %vm1583_vm4, %v2199_v10, -1e+30 }
 0x28a   : > { %v2160_v13 = vpop.f32.mrb[46].mxu1  ;;  %v2217_v1 = vsel %vm1771_vm5, %v6801_v63, -inf }
 0x28b   : > { %v2200_v17 = vmul.f32 0.17677669, %v2160_v13  ;;  %v4804_v2 = vpop.f32.mrb[47].mxu1  ;;  %2218 = vmax.xlane.f32.xlu0 %v2217_v1 }
 0x28d   : > { %v6807_v58 = vsel %vm1583_vm4, %v2200_v17, -1e+30 }
 0x28e   : > { %v2165_v25 = vpop.f32.mrb[48].mxu1  ;;  %v2220_v49 = vsel %vm1771_vm5, %v6807_v58, -inf }
 0x28f   : > { %v2201_v41 = vmul.f32 0.17677669, %v2165_v25  ;;  %2221 = vmax.xlane.f32.xlu1 %v2220_v49  ;;  %v4807_v24 = vpop.f32.mrb[49].mxu1  ;;  %v5341_v25 = vunpack.i.h.bf16 %v5339_v36  ;;  %v5340_v49 = vunpack.i.l.bf16 %v5339_v36 }
 0x291   : > { %v6813_v55 = vsel %vm1583_vm4, %v2201_v41, -1e+30 }
 0x292   : > { %v2170_v7 = vpop.f32.mrb[50].mxu1  ;;  %v2223_v3 = vsel %vm1771_vm5, %v6813_v55, -inf }
 0x293   : > { %v2202_v12 = vmul.f32 0.17677669, %v2170_v7  ;;  %2224 = vmax.xlane.f32.xlu0 %v2223_v3  ;;  %v4810_v37 = vpop.f32.mrb[51].mxu1  ;;  %v5345_v3 = vunpack.i.l.bf16 %v5344_v52 }
 0x295   : > { %v6819_v6 = vsel %vm1583_vm4, %v2202_v12, -1e+30  ;;  %v5230_v12 = vpack.c.bf16 %v5341_v25, %v5340_v49 }
 0x296   : > { %v2226_v44 = vsel %vm1771_vm5, %v6819_v6, -inf  ;;  %v2175_v60 = vpop.f32.mrb[52].mxu1 }
 0x297   : > { %2227 = vmax.xlane.f32.xlu0 %v2226_v44  ;;  %v4813_v26 = vpop.f32.mrb[53].mxu1 }
 0x29a   : > { %v6823_v19 = vpop.f32.mrb[54].mxu1 }
 0x29b   : > { %v4816_v4 = vpop.f32.mrb[55].mxu1 }
 0x29e   : > { %v6825_v48 = vpop.f32.mrb[56].mxu1 }
 0x29f   : > { %v4819_v59 = vpop.f32.mrb[57].mxu1 }
 0x2a0   : > { %5353 = vrot.lane.b32.xlu1 %v6762_v38, %s5607_s28 }
 0x2a1   : > { %v1774_v22 = vpop.xlane.xlu0 %1773 }
 0x2a2   : > { %v1799_v42 = vsub.f32 %v6737_v50, %v1774_v22  ;;  %v6830_v15 = vpop.f32.mrb[58].mxu1  ;;  %v5346_v50 = vunpack.i.h.bf16 %v5344_v52 }
 0x2a3   : > { %v4822_v16 = vpop.f32.mrb[59].mxu1 }
 0x2a4   : > { %v1808_v29 = vmul.f32 1.442695, %v1799_v42  ;;  %v5233_v4 = vpack.c.bf16 %v5346_v50, %v5345_v3  ;;  %v2203_v16 = vmul.f32 0.17677669, %v2175_v60 }
 0x2a5   : > { %v1777_v10 = vpop.xlane.xlu1 %1776 }
 0x2a6   : > { %5437 = vpow2.f32 %v1808_v29  ;;  %v1800_v43 = vsub.f32 %v6743_v21, %v1777_v10  ;;  %v6833_v13 = vpop.f32.mrb[60].mxu1  ;;  %v6871_v60 = vsel %vm1583_vm4, %v2203_v16, -1e+30 }
 0x2a7   : > { %v4825_v1 = vpop.f32.mrb[61].mxu1  ;;  %v2229_v25 = vsel %vm1771_vm5, %v6871_v60, -inf }
 0x2a8   : > { %v1810_v17 = vmul.f32 1.442695, %v1800_v43 }
 0x2a9   : > { %v1780_v2 = vpop.xlane.xlu0 %1779 }
 0x2aa   : > { %5439 = vpow2.f32 %v1810_v17  ;;  %v1801_v41 = vsub.f32 %v6751_v9, %v1780_v2 }
 0x2ac   : > { %v1812_v24 = vmul.f32 1.442695, %v1801_v41  ;;  %v2204_v41 = vmul.f32 0.17677669, %v6823_v19 }
 0x2ad   : > { %v1783_v7 = vpop.xlane.xlu0 %1782  ;;  %5348 = vrot.lane.b32.xlu0 %v6747_v62, %s5607_s28 }
 0x2ae   : > { %5441 = vpow2.f32 %v1812_v24  ;;  %v1802_v21 = vsub.f32 %v6758_v61, %v1783_v7  ;;  %v6894_v7 = vsel %vm1583_vm4, %v2204_v41, -1e+30 }
 0x2af   : > { %v2232_v19 = vsel %vm1771_vm5, %v6894_v7, -inf }
 0x2b0   : > { %v6839_v37 = vpop.eup %5437  ;;  %v1814_v44 = vmul.f32 1.442695, %v1802_v21 }
 0x2b1   : > { %v1786_v26 = vpop.xlane.xlu1 %1785  ;;  %4755 = vmatmul.mubr.msk.f32.vlgmr.msra.gmra.mrb[28].mxu0 %vm1771_vm5, %v6839_v37 }
 0x2b2   : > { %5443 = vpow2.f32 %v1814_v44  ;;  %v1803_v9 = vsub.f32 %v6766_v34, %v1786_v26  ;;  %4757 = vmatprep.mubr.msk.f32.mxu0 %vm5605_vm0, %v7697_v53  ;;  %5231 = vmatpush3.bf16.msra.mxu0 %v5230_v12  ;;  %v2206_v12 = vmul.f32 0.17677669, %v6830_v15  ;;  %v2207_v26 = vmul.f32 0.17677669, %v6833_v13 }
 0x2b3   : > { %5232 = vmatprep.subr.bf16.mxu0 %v7719_v30 }
 0x2b4   : > { %v6847_v52 = vpop.eup %5439  ;;  %v1816_v61 = vmul.f32 1.442695, %v1803_v9  ;;  %v6920_v15 = vsel %vm1583_vm4, %v2206_v12, -1e+30  ;;  %v6930_v9 = vsel %vm1583_vm4, %v2207_v26, -1e+30 }
 0x2b5   : > { %v1789_v59 = vpop.xlane.xlu0 %1788  ;;  %4758 = vmatmul.mubr.msk.f32.gmra.mrb[30].mxu0 %vm1771_vm5, %v6847_v52  ;;  %v2241_v13 = vsel %vm1771_vm5, %v6930_v9, -inf }
 0x2b6   : > { %5445 = vpow2.f32 %v1816_v61  ;;  %v1804_v36 = vsub.f32 %v6773_v54, %v1789_v59  ;;  %4760 = vmatprep.mubr.msk.f32.mxu0 %vm5605_vm0, %v7697_v53  ;;  %5234 = vmatpush3.bf16.msra.mxu0 %v5233_v4  ;;  %v2238_v4 = vsel %vm1771_vm5, %v6920_v15, -inf }
 0x2b7   : > { %5235 = vmatprep.subr.bf16.mxu0 %v7719_v30 }
 0x2b8   : > { %v6855_v34 = vpop.eup %5441  ;;  %v1818_v22 = vmul.f32 1.442695, %v1804_v36 }
 0x2b9   : > { %v1792_v42 = vpop.xlane.xlu1 %1791  ;;  %4761 = vmatmul.mubr.msk.f32.gmra.mrb[32].mxu0 %vm1771_vm5, %v6855_v34 }
 0x2ba   : > { %5447 = vpow2.f32 %v1818_v22  ;;  %v1805_v29 = vsub.f32 %v6779_v51, %v1792_v42  ;;  %4763 = vmatprep.mubr.msk.f32.mxu0 %vm5605_vm0, %v7697_v53 }
 0x2bc   : > { %v6862_v54 = vpop.eup %5443  ;;  %v1820_v10 = vmul.f32 1.442695, %v1805_v29 }
 0x2bd   : > { %v1795_v43 = vpop.xlane.xlu0 %1794  ;;  %4764 = vmatmul.mubr.msk.f32.gmra.mrb[34].mxu0 %vm1771_vm5, %v6862_v54 }
 0x2be   : > { %5449 = vpow2.f32 %v1820_v10  ;;  %v1806_v1 = vsub.f32 %v6785_v46, %v1795_v43  ;;  %4766 = vmatprep.mubr.msk.f32.mxu0 %vm5605_vm0, %v7697_v53 }
 0x2c0   : > { %v6873_v51 = vpop.eup %5445  ;;  %v1822_v17 = vmul.f32 1.442695, %v1806_v1 }
 0x2c1   : > { %v1798_v2 = vpop.xlane.xlu1 %1797  ;;  %4767 = vmatmul.mubr.msk.f32.gmra.mrb[36].mxu0 %vm1771_vm5, %v6873_v51 }
 0x2c2   : > { %5451 = vpow2.f32 %v1822_v17  ;;  %v1807_v46 = vsub.f32 %v6791_v31, %v1798_v2  ;;  %4769 = vmatprep.mubr.msk.f32.mxu0 %vm5605_vm0, %v7697_v53  ;;  %v2205_v31 = vmul.f32 0.17677669, %v6825_v48 }
 0x2c4   : > { %v6882_v49 = vpop.eup %5447  ;;  %v1824_v24 = vmul.f32 1.442695, %v1807_v46  ;;  %2230 = vmax.xlane.f32.xlu1 %v2229_v25  ;;  %v6907_v48 = vsel %vm1583_vm4, %v2205_v31, -1e+30 }
 0x2c5   : > { %4770 = vmatmul.mubr.msk.f32.gmra.mrb[38].mxu0 %vm1771_vm5, %v6882_v49  ;;  %v2235_v21 = vsel %vm1771_vm5, %v6907_v48, -inf }
 0x2c6   : > { %5453 = vpow2.f32 %v1824_v24  ;;  %4772 = vmatprep.mubr.msk.f32.mxu0 %vm5605_vm0, %v7697_v53 }
 0x2c8   : > { %v6889_v50 = vpop.eup %5449 }
 0x2c9   : > { %4773 = vmatmul.mubr.msk.f32.gmra.mrb[40].mxu0 %vm1771_vm5, %v6889_v50 }
 0x2ca   : > { %4775 = vmatprep.mubr.msk.f32.mxu0 %vm5605_vm0, %v7697_v53 }
 0x2cc   : > { %v6902_v3 = vpop.eup %5451  ;;  %2233 = vmax.xlane.f32.xlu0 %v2232_v19 }
 0x2cd   : > { %4776 = vmatmul.mubr.msk.f32.gmra.mrb[42].mxu0 %vm1771_vm5, %v6902_v3 }
 0x2ce   : > { %4778 = vmatprep.mubr.msk.f32.mxu0 %vm5605_vm0, %v7697_v53 }
 0x2d0   : > { %v6915_v44 = vpop.eup %5453  ;;  %2236 = vmax.xlane.f32.xlu0 %v2235_v21 }
 0x2d1   : > { %4779 = vmatmul.mubr.msk.f32.gmra.mrb[44].mxu0 %vm1771_vm5, %v6915_v44 }
 0x2d2   : > { %4844 = vmatprep.mubr.msk.f32.mxu0 %vm5605_vm0, %v7697_v53 }
 0x2d4   : > { %2239 = vmax.xlane.f32.xlu0 %v2238_v4 }
 0x2d5   : > { %2323 = vrot.lane.b32.xlu1 %v6793_v14, %s5607_s28 }
 0x2d8   : > { %2242 = vmax.xlane.f32.xlu0 %v2241_v13 }
 0x2ee   : > { %5358 = vrot.lane.b32.xlu0 %v6504_v47, %s5608_s22 }
 0x2f2   : > { %5368 = vrot.lane.b32.xlu0 %v6518_v45, %s5608_s22 }
 0x318   : > { %v2219_v61 = vpop.xlane.xlu0 %2218 }
 0x319   : > { %v2244_v59 = vsub.f32 %v6801_v63, %v2219_v61 }
 0x31b   : > { %v2253_v36 = vmul.f32 1.442695, %v2244_v59 }
 0x31c   : > { %v2222_v22 = vpop.xlane.xlu1 %2221 }
 0x31d   : > { %5455 = vpow2.f32 %v2253_v36  ;;  %v2245_v42 = vsub.f32 %v6807_v58, %v2222_v22 }
 0x31f   : > { %v2255_v16 = vmul.f32 1.442695, %v2245_v42 }
 0x320   : > { %v2225_v29 = vpop.xlane.xlu0 %2224  ;;  %v5354_v46 = vpop.permute.xlu1 %5353 }
 0x321   : > { %5457 = vpow2.f32 %v2255_v16  ;;  %v2246_v10 = vsub.f32 %v6813_v55, %v2225_v29  ;;  %v5356_v19 = vunpack.i.h.bf16 %v5354_v46  ;;  %v5355_v12 = vunpack.i.l.bf16 %v5354_v46 }
 0x323   : > { %v2257_v43 = vmul.f32 1.442695, %v2246_v10  ;;  %v5239_v26 = vpack.c.bf16 %v5356_v19, %v5355_v12 }
 0x324   : > { %v2228_v1 = vpop.xlane.xlu0 %2227 }
 0x325   : > { %5459 = vpow2.f32 %v2257_v43  ;;  %v2247_v17 = vsub.f32 %v6819_v6, %v2228_v1 }
 0x327   : > { %v5456_v2 = vpop.eup %5455  ;;  %v2259_v25 = vmul.f32 1.442695, %v2247_v17 }
 0x328   : > { %v5349_v41 = vpop.permute.xlu0 %5348  ;;  %v2271_v63 = vsel %vm1771_vm5, %v5456_v2, 0.0 }
 0x329   : > { %5461 = vpow2.f32 %v2259_v25  ;;  %v5351_v24 = vunpack.i.h.bf16 %v5349_v41  ;;  %v5350_v31 = vunpack.i.l.bf16 %v5349_v41  ;;  %2272 = vadd.xlane.f32.xlu1 %v2271_v63 }
 0x32b   : > { %v5458_v58 = vpop.eup %5457  ;;  %v5236_v21 = vpack.c.bf16 %v5351_v24, %v5350_v31 }
 0x32c   : > { %v2274_v55 = vsel %vm1771_vm5, %v5458_v58, 0.0 }
 0x32d   : > { %2275 = vadd.xlane.f32.xlu0 %v2274_v55  ;;  %5237 = vmatpush3.bf16.msra.mxu0 %v5236_v21 }
 0x32e   : > { %5238 = vmatprep.subr.bf16.mxu0 %v7719_v30 }
 0x32f   : > { %v5460_v6 = vpop.eup %5459 }
 0x330   : > { %v2277_v4 = vsel %vm1771_vm5, %v5460_v6, 0.0 }
 0x331   : > { %2278 = vadd.xlane.f32.xlu0 %v2277_v4  ;;  %5240 = vmatpush3.bf16.msra.mxu0 %v5239_v26 }
 0x332   : > { %4842 = vmatprep.subr.mxu0 %v7697_v53 }
 0x333   : > { %v5462_v13 = vpop.eup %5461 }
 0x334   : > { %v2280_v61 = vsel %vm1771_vm5, %v5462_v13, 0.0 }
 0x335   : > { %2281 = vadd.xlane.f32.xlu0 %v2280_v61 }
 0x33a   : > { %5363 = vrot.lane.b32.xlu1 %v6511_v11, %s5608_s22 }
 0x351   : > { %v2231_v59 = vpop.xlane.xlu1 %2230 }
 0x352   : > { %v2248_v36 = vsub.f32 %v6871_v60, %v2231_v59 }
 0x354   : > { %v2261_v22 = vmul.f32 1.442695, %v2248_v36 }
 0x355   : > { %v2324_v42 = vpop.permute.xlu1 %2323 }
 0x356   : > { %5463 = vpow2.f32 %v2261_v22  ;;  %4843 = vmatpush3.msra.mxu0 %v2324_v42 }
 0x357   : > { %4845 = vmatmul.mubr.msk.f32.vlgmr.msra.gmra.mrb[46].mxu0 %vm1771_vm5, %v5456_v2  ;;  %4900 = vmatprep.subr.mxu0 %v7697_v53 }
 0x358   : > { %4847 = vmatprep.mubr.msk.f32.mxu0 %vm5605_vm0, %v7697_v53 }
 0x359   : > { %v2234_v16 = vpop.xlane.xlu0 %2233 }
 0x35a   : > { %v2249_v29 = vsub.f32 %v6894_v7, %v2234_v16 }
 0x35b   : > { %4848 = vmatmul.mubr.msk.f32.gmra.mrb[48].mxu0 %vm1771_vm5, %v5458_v58 }
 0x35c   : > { %v2263_v10 = vmul.f32 1.442695, %v2249_v29  ;;  %4850 = vmatprep.mubr.msk.f32.mxu0 %vm5605_vm0, %v7697_v53 }
 0x35d   : > { %v2237_v60 = vpop.xlane.xlu0 %2236 }
 0x35e   : > { %5465 = vpow2.f32 %v2263_v10  ;;  %v2250_v43 = vsub.f32 %v6907_v48, %v2237_v60 }
 0x35f   : > { %4851 = vmatmul.mubr.msk.f32.gmra.mrb[50].mxu0 %vm1771_vm5, %v5460_v6 }
 0x360   : > { %v5464_v1 = vpop.eup %5463  ;;  %v2265_v17 = vmul.f32 1.442695, %v2250_v43  ;;  %4853 = vmatprep.mubr.msk.f32.mxu0 %vm5605_vm0, %v7697_v53 }
 0x361   : > { %v2240_v2 = vpop.xlane.xlu0 %2239  ;;  %v2283_v7 = vsel %vm1771_vm5, %v5464_v1, 0.0 }
 0x362   : > { %5467 = vpow2.f32 %v2265_v17  ;;  %v2251_v25 = vsub.f32 %v6920_v15, %v2240_v2  ;;  %2284 = vadd.xlane.f32.xlu0 %v2283_v7 }
 0x363   : > { %4854 = vmatmul.mubr.msk.f32.gmra.mrb[52].mxu0 %vm1771_vm5, %v5462_v13  ;;  %v1585_v13 = vld [vmem:[%s7641_s8 + $0x8] sm:$0xff] }
 0x364   : > { %v2267_v46 = vmul.f32 1.442695, %v2251_v25  ;;  %4856 = vmatprep.mubr.msk.f32.mxu0 %vm5605_vm0, %v7697_v53  ;;  %4872 = vmatpush3.msra.mxu1 %v1585_v13  ;;  %v1826_v25 = vsel %vm1771_vm5, %v6839_v37, 0.0  ;;  %v1838_v37 = vsel %vm1771_vm5, %v6873_v51, 0.0 }
 0x365   : > { %v2243_v48 = vpop.xlane.xlu0 %2242  ;;  %5241 = vmatprep.subr.bf16.mxu1 %v7719_v30 }
 0x366   : > { %5469 = vpow2.f32 %v2267_v46  ;;  %v2252_v41 = vsub.f32 %v6930_v9, %v2243_v48  ;;  %v1829_v46 = vsel %vm1771_vm5, %v6847_v52, 0.0  ;;  %v1835_v48 = vsel %vm1771_vm5, %v6862_v54, 0.0  ;;  %v1584_v54 = vld [vmem:[%s7641_s8] sm:$0xff] }
 0x367   : > { %4857 = vmatmul.mubr.msk.f32.gmra.mrb[54].mxu0 %vm1771_vm5, %v5464_v1  ;;  %v1844_v52 = vsel %vm1771_vm5, %v6889_v50, 0.0 }
 0x368   : > { %v5466_v63 = vpop.eup %5465  ;;  %v2269_v24 = vmul.f32 1.442695, %v2252_v41  ;;  %4859 = vmatprep.mubr.msk.f32.mxu0 %vm5605_vm0, %v7697_v53  ;;  %v1832_v41 = vsel %vm1771_vm5, %v6855_v34, 0.0  ;;  %v1850_v34 = vsel %vm1771_vm5, %v6915_v44, 0.0  ;;  %4901 = vmatpush3.msra.mxu0 %v1584_v54 }
 0x369   : > { %v2286_v15 = vsel %vm1771_vm5, %v5466_v63, 0.0  ;;  %5257 = vmatprep.subr.bf16.mxu0 %v7719_v30  ;;  %v5359_v51 = vpop.permute.xlu0 %5358 }
 0x36a   : > { %5471 = vpow2.f32 %v2269_v24  ;;  %2287 = vadd.xlane.f32.xlu0 %v2286_v15  ;;  %v1847_v24 = vsel %vm1771_vm5, %v6902_v3, 0.0 }
 0x36b   : > { %4860 = vmatmul.mubr.msk.f32.gmra.mrb[56].mxu0 %vm1771_vm5, %v5466_v63  ;;  %v1841_v63 = vsel %vm1771_vm5, %v6882_v49, 0.0 }
 0x36c   : > { %v5468_v31 = vpop.eup %5467  ;;  %4862 = vmatprep.mubr.msk.f32.mxu0 %vm5605_vm0, %v7697_v53 }
 0x36d   : > { %v2289_v58 = vsel %vm1771_vm5, %v5468_v31, 0.0  ;;  %v7068_v49 = vpop.permute.xlu0 %5368 }
 0x36e   : > { %2290 = vadd.xlane.f32.xlu0 %v2289_v58 }
 0x36f   : > { %4863 = vmatmul.mubr.msk.f32.gmra.mrb[58].mxu0 %vm1771_vm5, %v5468_v31 }
 0x370   : > { %v5470_v9 = vpop.eup %5469  ;;  %4865 = vmatprep.mubr.msk.f32.mxu0 %vm5605_vm0, %v7697_v53 }
 0x371   : > { %v2292_v19 = vsel %vm1771_vm5, %v5470_v9, 0.0 }
 0x372   : > { %2293 = vadd.xlane.f32.xlu1 %v2292_v19 }
 0x373   : > { %4866 = vmatmul.mubr.msk.f32.gmra.mrb[60].mxu0 %vm1771_vm5, %v5470_v9 }
 0x374   : > { %v5472_v12 = vpop.eup %5471  ;;  %4868 = vmatprep.mubr.msk.f32.mxu0 %vm5605_vm0, %v7697_v53 }
 0x375   : > { %v2295_v21 = vsel %vm1771_vm5, %v5472_v12, 0.0 }
 0x376   : > { %2296 = vadd.xlane.f32.xlu1 %v2295_v21 }
 0x377   : > { %4869 = vmatmul.mubr.msk.f32.gmra.mrb[62].mxu0 %vm1771_vm5, %v5472_v12 }
 0x378   : > { %4902 = vmatprep.mubr.msk.f32.mxu0 %vm5605_vm0, %v7697_v53 }
 0x384   : > { %5373 = vrot.lane.b32.xlu0 %v6538_v32, %s5608_s22  ;;  %v6992_v55 = vpop.f32.mrb[28].mxu0 }
 0x385   : > { %v4756_v6 = vpop.f32.mrb[29].mxu0 }
 0x386   : > { %v5361_v6 = vunpack.i.h.bf16 %v5359_v51 }
 0x387   : > { %2774 = vrot.lane.b32.xlu1 %v6558_v8, %s5608_s22 }
 0x388   : > { %2806 = vrot.lane.b32.xlu0 %v6550_v39, %s5608_s22  ;;  %v6998_v26 = vpop.f32.mrb[30].mxu0 }
 0x389   : > { %v4759_v4 = vpop.f32.mrb[31].mxu0 }
 0x38a   : > { %v5360_v4 = vunpack.i.l.bf16 %v5359_v51 }
 0x38b   : > { %2778 = vrot.lane.b32.xlu1 %v6596_v18, %s5608_s22 }
 0x38c   : > { %2772 = vrot.lane.b32.xlu0 %v6525_v33, %s5608_s22  ;;  %v7007_v61 = vpop.f32.mrb[32].mxu0 }
 0x38d   : > { %v4762_v59 = vpop.f32.mrb[33].mxu0 }
 0x38f   : > { %2782 = vrot.lane.b32.xlu1 %v6490_v56, %s5608_s22 }
 0x390   : > { %2776 = vrot.lane.b32.xlu0 %v6578_v20, %s5608_s22  ;;  %v7014_v36 = vpop.f32.mrb[34].mxu0 }
 0x391   : > { %v4765_v22 = vpop.f32.mrb[35].mxu0 }
 0x393   : > { %2786 = vrot.lane.b32.xlu1 %v6494_v28, %s5608_s22 }
 0x394   : > { %2780 = vrot.lane.b32.xlu0 %v6617_v5, %s5608_s22  ;;  %v7020_v42 = vpop.f32.mrb[36].mxu0 }
 0x395   : > { %v4768_v16 = vpop.f32.mrb[37].mxu0 }
 0x398   : > { %2784 = vrot.lane.b32.xlu0 %v6492_v27, %s5608_s22  ;;  %v7024_v29 = vpop.f32.mrb[38].mxu0 }
 0x399   : > { %v4771_v10 = vpop.f32.mrb[39].mxu0 }
 0x39c   : > { %2788 = vrot.lane.b32.xlu0 %v6496_v35, %s5608_s22  ;;  %v7028_v60 = vpop.f32.mrb[40].mxu0 }
 0x39d   : > { %v4774_v43 = vpop.f32.mrb[41].mxu0 }
 0x39e   : > { %v5242_v43 = vpack.c.bf16 %v5361_v6, %v5360_v4  ;;  %v5371_v6 = vunpack.i.h.bf16 %v7068_v49 }
 0x3a0   : > { %v7030_v1 = vpop.f32.mrb[42].mxu0 }
 0x3a1   : > { %v4777_v17 = vpop.f32.mrb[43].mxu0 }
 0x3a4   : > { %v7032_v2 = vpop.f32.mrb[44].mxu0 }
 0x3a5   : > { %v4780_v7 = vpop.f32.mrb[45].mxu0 }
 0x3b6   : > { %v2273_v58 = vpop.xlane.xlu1 %2272 }
 0x3b7   : > { %1827 = vadd.xlane.f32.xlu1 %v1826_v25  ;;  %5473 = vrcp.f32 %v2273_v58 }
 0x3ba   : > { %v2276_v50 = vpop.xlane.xlu0 %2275 }
 0x3bb   : > { %1830 = vadd.xlane.f32.xlu0 %v1829_v46  ;;  %1836 = vadd.xlane.f32.xlu1 %v1835_v48  ;;  %5475 = vrcp.f32 %v2276_v50 }
 0x3be   : > { %v2279_v3 = vpop.xlane.xlu0 %2278 }
 0x3bf   : > { %1833 = vadd.xlane.f32.xlu0 %v1832_v41  ;;  %1842 = vadd.xlane.f32.xlu1 %v1841_v63  ;;  %5477 = vrcp.f32 %v2279_v3 }
 0x3c1   : > { %v5474_v59 = vpop.eup %5473 }
 0x3c2   : > { %v2282_v44 = vpop.xlane.xlu0 %2281 }
 0x3c3   : > { %1839 = vadd.xlane.f32.xlu0 %v1838_v37  ;;  %1848 = vadd.xlane.f32.xlu1 %v1847_v24  ;;  %5479 = vrcp.f32 %v2282_v44 }
 0x3c5   : > { %v5476_v7 = vpop.eup %5475 }
 0x3c7   : > { %1845 = vadd.xlane.f32.xlu0 %v1844_v52 }
 0x3c9   : > { %v5478_v24 = vpop.eup %5477 }
 0x3cb   : > { %1851 = vadd.xlane.f32.xlu0 %v1850_v34 }
 0x3cd   : > { %v5480_v44 = vpop.eup %5479 }
 0x3d4   : > { %5378 = vrot.lane.b32.xlu1 %v6681_v23, %s5608_s22 }
 0x3d8   : > { %5393 = vrot.lane.b32.xlu1 %v6762_v38, %s5608_s22 }
 0x3dc   : > { %5398 = vrot.lane.b32.xlu1 %v6504_v47, %s5609_s12  ;;  %v5364_v47 = vpop.permute.xlu1 %5363 }
 0x3dd   : > { %v5366_v63 = vunpack.i.h.bf16 %v5364_v47  ;;  %v5365_v37 = vunpack.i.l.bf16 %v5364_v47 }
 0x3df   : > { %v5246_v50 = vpack.c.bf16 %v5366_v63, %v5365_v37 }
 0x3e1   : > { %5383 = vrot.lane.b32.xlu0 %v6686_v40, %s5608_s22 }
 0x3e5   : > { %5388 = vrot.lane.b32.xlu0 %v6747_v62, %s5608_s22 }
 0x3e9   : > { %3069 = vrot.lane.b32.xlu0 %v6793_v14, %s5608_s22 }
 0x3ef   : > { %v2285_v15 = vpop.xlane.xlu0 %2284 }
 0x3f0   : > { %5481 = vrcp.f32 %v2285_v15 }
 0x3f7   : > { %v2288_v31 = vpop.xlane.xlu0 %2287 }
 0x3f8   : > { %5483 = vrcp.f32 %v2288_v31  ;;  %v5370_v31 = vunpack.i.l.bf16 %v7068_v49 }
 0x3fb   : > { %v2291_v9 = vpop.xlane.xlu0 %2290 }
 0x3fc   : > { %5485 = vrcp.f32 %v2291_v9 }
 0x3ff   : > { %v7070_v19 = vpop.permute.xlu0 %5373  ;;  %v2294_v12 = vpop.xlane.xlu1 %2293 }
 0x400   : > { %5487 = vrcp.f32 %v2294_v12  ;;  %v5376_v63 = vunpack.i.h.bf16 %v7070_v19  ;;  %v5375_v12 = vunpack.i.l.bf16 %v7070_v19 }
 0x403   : > { %v7072_v21 = vpop.permute.xlu0 %2806  ;;  %v2297_v13 = vpop.xlane.xlu1 %2296 }
 0x404   : > { %5489 = vrcp.f32 %v2297_v13 }
 0x407   : > { %v7074_v17 = vpop.permute.xlu0 %2772  ;;  %v7077_v25 = vpop.permute.xlu1 %2774 }
 0x40b   : > { %v7085_v52 = vpop.permute.xlu0 %2776  ;;  %v7089_v3 = vpop.permute.xlu1 %2778 }
 0x40f   : > { %v7099_v4 = vpop.permute.xlu0 %2780 }
 0x413   : > { %v7107_v49 = vpop.permute.xlu0 %2784 }
 0x42a   : > { %v2427_v22 = vpop.f32.mrb[46].mxu0 }
 0x42b   : > { %v2489_v16 = vmul.f32 %v5474_v59, %v2427_v22  ;;  %v4846_v10 = vpop.f32.mrb[47].mxu0  ;;  %v5482_v59 = vpop.eup %5481 }
 0x42c   : > { %v7102_v22 = vpop.permute.xlu1 %2782 }
 0x42d   : > { %4874 = vmatmul.mubr.msk.f32.vlgmr.msra.gmra.mrb[62].mxu1 %vm1588_vm2, %v2489_v16 }
 0x42e   : > { %5244 = vmatpush3.bf16.xpose.msk.msra.mxu1 %vm6500_vm3, %v5242_v43  ;;  %v2432_v46 = vpop.f32.mrb[48].mxu0  ;;  %4876 = vmatprep.mubr.msk.f32.mxu1 %vm5605_vm0, %v7697_v53 }
 0x42f   : > { %v2490_v48 = vmul.f32 %v5476_v7, %v2432_v46  ;;  %v4849_v41 = vpop.f32.mrb[49].mxu0  ;;  %5245 = vmatprep.subr.bf16.mxu1 %v7719_v30  ;;  %v5250_v7 = vpack.c.bf16 %v5371_v6, %v5370_v31  ;;  %v5484_v46 = vpop.eup %5483 }
 0x430   : > { %v7116_v37 = vpop.permute.xlu1 %2786 }
 0x431   : > { %4877 = vmatmul.mubr.msk.f32.gmra.mrb[64].mxu1 %vm1588_vm2, %v2490_v48 }
 0x432   : > { %v2437_v34 = vpop.f32.mrb[50].mxu0  ;;  %4879 = vmatprep.mubr.msk.f32.mxu1 %vm5605_vm0, %v7697_v53 }
 0x433   : > { %v2491_v54 = vmul.f32 %v5478_v24, %v2437_v34  ;;  %v4852_v51 = vpop.f32.mrb[51].mxu0  ;;  %v5486_v24 = vpop.eup %5485 }
 0x434   : > { %v5488_v19 = vpop.eup %5487 }
 0x435   : > { %4880 = vmatmul.mubr.msk.f32.gmra.mrb[66].mxu1 %vm1588_vm2, %v2491_v54 }
 0x436   : > { %5248 = vmatpush3.bf16.xpose.msk.msra.mxu1 %vm6500_vm3, %v5246_v50  ;;  %v2442_v15 = vpop.f32.mrb[52].mxu0  ;;  %4882 = vmatprep.mubr.msk.f32.mxu1 %vm5605_vm0, %v7697_v53  ;;  %v5254_v50 = vpack.c.bf16 %v5376_v63, %v5375_v12 }
 0x437   : > { %v2492_v58 = vmul.f32 %v5480_v44, %v2442_v15  ;;  %v4855_v47 = vpop.f32.mrb[53].mxu0  ;;  %5249 = vmatprep.subr.bf16.mxu1 %v7719_v30  ;;  %v7121_v44 = vpop.permute.xlu0 %2788 }
 0x439   : > { %4883 = vmatmul.mubr.msk.f32.gmra.mrb[68].mxu1 %vm1588_vm2, %v2492_v58 }
 0x43a   : > { %v2447_v16 = vpop.f32.mrb[54].mxu0  ;;  %4885 = vmatprep.mubr.msk.f32.mxu1 %vm5605_vm0, %v7697_v53 }
 0x43b   : > { %v2493_v10 = vmul.f32 %v5482_v59, %v2447_v16  ;;  %v4858_v43 = vpop.f32.mrb[55].mxu0  ;;  %v5490_v59 = vpop.eup %5489 }
 0x43d   : > { %4886 = vmatmul.mubr.msk.f32.gmra.mrb[70].mxu1 %vm1588_vm2, %v2493_v10 }
 0x43e   : > { %5252 = vmatpush3.bf16.xpose.msk.msra.mxu1 %vm6500_vm3, %v5250_v7  ;;  %v2452_v9 = vpop.f32.mrb[56].mxu0  ;;  %4888 = vmatprep.mubr.msk.f32.mxu1 %vm5605_vm0, %v7697_v53 }
 0x43f   : > { %v2494_v48 = vmul.f32 %v5484_v46, %v2452_v9  ;;  %v4861_v41 = vpop.f32.mrb[57].mxu0  ;;  %5253 = vmatprep.subr.bf16.mxu1 %v7719_v30 }
 0x441   : > { %4889 = vmatmul.mubr.msk.f32.gmra.mrb[72].mxu1 %vm1588_vm2, %v2494_v48 }
 0x442   : > { %v2457_v34 = vpop.f32.mrb[58].mxu0  ;;  %4891 = vmatprep.mubr.msk.f32.mxu1 %vm5605_vm0, %v7697_v53 }
 0x443   : > { %v2495_v54 = vmul.f32 %v5486_v24, %v2457_v34  ;;  %v4864_v51 = vpop.f32.mrb[59].mxu0 }
 0x444   : > { %v1828_v15 = vpop.xlane.xlu1 %1827 }
 0x445   : > { %5491 = vrcp.f32 %v1828_v15  ;;  %4892 = vmatmul.mubr.msk.f32.gmra.mrb[74].mxu1 %vm1588_vm2, %v2495_v54 }
 0x446   : > { %5256 = vmatpush3.bf16.xpose.msk.msra.mxu1 %vm6500_vm3, %v5254_v50  ;;  %v2462_v13 = vpop.f32.mrb[60].mxu0  ;;  %4894 = vmatprep.mubr.msk.f32.mxu1 %vm5605_vm0, %v7697_v53 }
 0x447   : > { %v2496_v58 = vmul.f32 %v5488_v19, %v2462_v13  ;;  %v4867_v47 = vpop.f32.mrb[61].mxu0  ;;  %4945 = vmatprep.subr.mxu1 %v7697_v53 }
 0x448   : > { %v1831_v6 = vpop.xlane.xlu0 %1830  ;;  %v1837_v31 = vpop.xlane.xlu1 %1836 }
 0x449   : > { %5493 = vrcp.f32 %v1831_v6  ;;  %4895 = vmatmul.mubr.msk.f32.gmra.mrb[76].mxu1 %vm1588_vm2, %v2496_v58 }
 0x44a   : > { %v2467_v16 = vpop.f32.mrb[62].mxu0  ;;  %4897 = vmatprep.mubr.msk.f32.mxu1 %vm5605_vm0, %v7697_v53 }
 0x44b   : > { %v2497_v10 = vmul.f32 %v5490_v59, %v2467_v16  ;;  %v4870_v43 = vpop.f32.mrb[63].mxu0 }
 0x44c   : > { %v1834_v7 = vpop.xlane.xlu0 %1833  ;;  %v1843_v46 = vpop.xlane.xlu1 %1842 }
 0x44d   : > { %5495 = vrcp.f32 %v1834_v7  ;;  %4898 = vmatmul.mubr.msk.f32.gmra.mrb[78].mxu1 %vm1588_vm2, %v2497_v10 }
 0x44e   : > { %4946 = vmatpush3.xpose.msk.msra.mxu1 %vm1588_vm2, %v7072_v21  ;;  %4947 = vmatprep.mubr.msk.f32.mxu1 %vm5605_vm0, %v7697_v53  ;;  %5497 = vrcp.f32 %v1837_v31 }
 0x44f   : > { %v5492_v9 = vpop.eup %5491  ;;  %5019 = vmatprep.subr.mxu1 %v7697_v53 }
 0x450   : > { %v2008_v48 = vmul.f32 %v5492_v9, %v6992_v55  ;;  %v1840_v41 = vpop.xlane.xlu0 %1839  ;;  %v1849_v63 = vpop.xlane.xlu1 %1848 }
 0x451   : > { %4948 = vmatmul.mubr.msk.f32.vlgmr.msra.gmra.mrb[80].mxu1 %vm1588_vm2, %v7074_v17  ;;  %5499 = vrcp.f32 %v1840_v41 }
 0x452   : > { %4903 = vmatmul.mubr.msk.f32.vlgmr.msra.gmra.mrb[64].mxu0 %vm1588_vm2, %v2008_v48  ;;  %4950 = vmatprep.mubr.msk.f32.mxu1 %vm5605_vm0, %v7697_v53  ;;  %5501 = vrcp.f32 %v1843_v46 }
 0x453   : > { %v5494_v21 = vpop.eup %5493  ;;  %4905 = vmatprep.mubr.msk.f32.mxu0 %vm5605_vm0, %v7697_v53 }
 0x454   : > { %v1846_v12 = vpop.xlane.xlu0 %1845  ;;  %v5379_v24 = vpop.permute.xlu1 %5378  ;;  %v2009_v34 = vmul.f32 %v5494_v21, %v6998_v26 }
 0x455   : > { %v5381_v55 = vunpack.i.h.bf16 %v5379_v24  ;;  %v5380_v54 = vunpack.i.l.bf16 %v5379_v24  ;;  %4951 = vmatmul.mubr.msk.f32.gmra.mrb[82].mxu1 %vm1588_vm2, %v7077_v25  ;;  %5503 = vrcp.f32 %v1846_v12 }
 0x456   : > { %4906 = vmatmul.mubr.msk.f32.gmra.mrb[66].mxu0 %vm1588_vm2, %v2009_v34  ;;  %4953 = vmatprep.mubr.msk.f32.mxu1 %vm5605_vm0, %v7697_v53  ;;  %5505 = vrcp.f32 %v1849_v63 }
 0x457   : > { %v5496_v17 = vpop.eup %5495  ;;  %v5258_v51 = vpack.c.bf16 %v5381_v55, %v5380_v54  ;;  %4908 = vmatprep.mubr.msk.f32.mxu0 %vm5605_vm0, %v7697_v53 }
 0x458   : > { %v1852_v50 = vpop.xlane.xlu0 %1851  ;;  %v2010_v15 = vmul.f32 %v5496_v17, %v7007_v61  ;;  %v5498_v26 = vpop.eup %5497 }
 0x459   : > { %4954 = vmatmul.mubr.msk.f32.gmra.mrb[84].mxu1 %vm1588_vm2, %v7085_v52  ;;  %5259 = vmatpush3.bf16.msra.mxu0 %v5258_v51  ;;  %v2011_v19 = vmul.f32 %v5498_v26, %v7014_v36  ;;  %v5394_v47 = vpop.permute.xlu1 %5393  ;;  %5507 = vrcp.f32 %v1852_v50 }
 0x45a   : > { %4909 = vmatmul.mubr.msk.f32.gmra.mrb[68].mxu0 %vm1588_vm2, %v2010_v15  ;;  %4956 = vmatprep.mubr.msk.f32.mxu1 %vm5605_vm0, %v7697_v53  ;;  %v5395_v10 = vunpack.i.l.bf16 %v5394_v47 }
 0x45b   : > { %4911 = vmatprep.mubr.msk.f32.mxu0 %vm5605_vm0, %v7697_v53  ;;  %5260 = vmatprep.subr.bf16.mxu0 %v7719_v30  ;;  %v5500_v61 = vpop.eup %5499 }
 0x45c   : > { %v5384_v25 = vpop.permute.xlu0 %5383  ;;  %v2012_v36 = vmul.f32 %v5500_v61, %v7020_v42  ;;  %v5502_v31 = vpop.eup %5501 }
 0x45d   : > { %v5386_v13 = vunpack.i.h.bf16 %v5384_v25  ;;  %v5385_v58 = vunpack.i.l.bf16 %v5384_v25  ;;  %4957 = vmatmul.mubr.msk.f32.gmra.mrb[86].mxu1 %vm1588_vm2, %v7089_v3  ;;  %v5396_v3 = vunpack.i.h.bf16 %v5394_v47  ;;  %v2013_v42 = vmul.f32 %v5502_v31, %v7024_v29 }
 0x45e   : > { %4912 = vmatmul.mubr.msk.f32.gmra.mrb[70].mxu0 %vm1588_vm2, %v2011_v19  ;;  %4959 = vmatprep.mubr.msk.f32.mxu1 %vm5605_vm0, %v7697_v53 }
 0x45f   : > { %v5261_v52 = vpack.c.bf16 %v5386_v13, %v5385_v58  ;;  %4914 = vmatprep.mubr.msk.f32.mxu0 %vm5605_vm0, %v7697_v53  ;;  %v5504_v7 = vpop.eup %5503 }
 0x460   : > { %v5389_v6 = vpop.permute.xlu0 %5388  ;;  %v2014_v46 = vmul.f32 %v5504_v7, %v7028_v60  ;;  %v5506_v9 = vpop.eup %5505 }
 0x461   : > { %v5391_v59 = vunpack.i.h.bf16 %v5389_v6  ;;  %v5390_v16 = vunpack.i.l.bf16 %v5389_v6  ;;  %4960 = vmatmul.mubr.msk.f32.gmra.mrb[88].mxu1 %vm1588_vm2, %v7099_v4  ;;  %5262 = vmatpush3.bf16.msra.mxu0 %v5261_v52  ;;  %v5267_v4 = vpack.c.bf16 %v5396_v3, %v5395_v10 }
 0x462   : > { %4915 = vmatmul.mubr.msk.f32.gmra.mrb[72].mxu0 %vm1588_vm2, %v2012_v36  ;;  %4962 = vmatprep.mubr.msk.f32.mxu1 %vm5605_vm0, %v7697_v53 }
 0x463   : > { %v5264_v43 = vpack.c.bf16 %v5391_v59, %v5390_v16  ;;  %5263 = vmatprep.subr.bf16.mxu0 %v7719_v30  ;;  %4917 = vmatprep.mubr.msk.f32.mxu0 %vm5605_vm0, %v7697_v53  ;;  %v5508_v48 = vpop.eup %5507 }
 0x464   : > { %v3070_v29 = vpop.permute.xlu0 %3069  ;;  %v2016_v60 = vmul.f32 %v5508_v48, %v7032_v2 }
 0x465   : > { %4963 = vmatmul.mubr.msk.f32.gmra.mrb[90].mxu1 %vm1588_vm2, %v7102_v22  ;;  %5265 = vmatpush3.bf16.msra.mxu0 %v5264_v43  ;;  %v2015_v22 = vmul.f32 %v5506_v9, %v7030_v1 }
 0x466   : > { %4918 = vmatmul.mubr.msk.f32.gmra.mrb[74].mxu0 %vm1588_vm2, %v2013_v42  ;;  %4965 = vmatprep.mubr.msk.f32.mxu1 %vm5605_vm0, %v7697_v53 }
 0x467   : > { %5266 = vmatprep.subr.bf16.mxu0 %v7719_v30  ;;  %4920 = vmatprep.mubr.msk.f32.mxu0 %vm5605_vm0, %v7697_v53 }
 0x469   : > { %4966 = vmatmul.mubr.msk.f32.gmra.mrb[92].mxu1 %vm1588_vm2, %v7107_v49  ;;  %5268 = vmatpush3.bf16.msra.mxu0 %v5267_v4 }
 0x46a   : > { %4921 = vmatmul.mubr.msk.f32.gmra.mrb[76].mxu0 %vm1588_vm2, %v2014_v46  ;;  %4968 = vmatprep.mubr.msk.f32.mxu1 %vm5605_vm0, %v7697_v53 }
 0x46b   : > { %4990 = vmatprep.subr.mxu0 %v7697_v53  ;;  %4923 = vmatprep.mubr.msk.f32.mxu0 %vm5605_vm0, %v7697_v53 }
 0x46d   : > { %4969 = vmatmul.mubr.msk.f32.gmra.mrb[94].mxu1 %vm1588_vm2, %v7116_v37  ;;  %4991 = vmatpush3.msra.mxu0 %v3070_v29 }
 0x46e   : > { %4924 = vmatmul.mubr.msk.f32.gmra.mrb[78].mxu0 %vm1588_vm2, %v2015_v22  ;;  %4971 = vmatprep.mubr.msk.f32.mxu1 %vm5605_vm0, %v7697_v53 }
 0x46f   : > { %4926 = vmatprep.mubr.msk.f32.mxu0 %vm5605_vm0, %v7697_v53  ;;  %5269 = vmatprep.subr.bf16.mxu0 %v7719_v30 }
 0x471   : > { %4972 = vmatmul.mubr.msk.f32.gmra.mrb[96].mxu1 %vm1588_vm2, %v7121_v44 }
 0x472   : > { %4927 = vmatmul.mubr.msk.f32.gmra.mrb[80].mxu0 %vm1588_vm2, %v2016_v60  ;;  %5021 = vmatprep.mubr.msk.f32.mxu1 %vm5605_vm0, %v7697_v53 }
 0x473   : > { %4992 = vmatprep.mubr.msk.f32.mxu0 %vm5605_vm0, %v7697_v53 }
 0x500   : > { %v2591_v1 = vpop.f32.mrb[62].mxu1 }
 0x501   : > { %v4875_v49 = vpop.f32.mrb[63].mxu1 }
 0x504   : > { %v2596_v37 = vpop.f32.mrb[64].mxu1 }
 0x505   : > { %v4878_v41 = vpop.f32.mrb[65].mxu1 }
 0x508   : > { %v2601_v63 = vpop.f32.mrb[66].mxu1 }
 0x509   : > { %v4881_v21 = vpop.f32.mrb[67].mxu1 }
 0x50c   : > { %v2606_v12 = vpop.f32.mrb[68].mxu1 }
 0x50d   : > { %v4884_v24 = vpop.f32.mrb[69].mxu1 }
 0x510   : > { %v2611_v2 = vpop.f32.mrb[70].mxu1 }
 0x511   : > { %v4887_v34 = vpop.f32.mrb[71].mxu1 }
 0x514   : > { %v2616_v55 = vpop.f32.mrb[72].mxu1 }
 0x515   : > { %v4890_v44 = vpop.f32.mrb[73].mxu1 }
 0x518   : > { %v2621_v54 = vpop.f32.mrb[74].mxu1 }
 0x519   : > { %v4893_v17 = vpop.f32.mrb[75].mxu1 }
 0x51c   : > { %v7215_v51 = vpop.f32.mrb[76].mxu1 }
 0x51d   : > { %v4896_v50 = vpop.f32.mrb[77].mxu1 }
 0x520   : > { %v7217_v15 = vpop.f32.mrb[78].mxu1 }
 0x521   : > { %v4899_v26 = vpop.f32.mrb[79].mxu1 }
 0x524   : > { %v2910_v25 = vpop.f32.mrb[80].mxu1 }
 0x525   : > { %v2954_v19 = vmul.f32 0.17677669, %v2910_v25  ;;  %v2728_v61 = vpop.f32.mrb[64].mxu0  ;;  %v4949_v13 = vpop.f32.mrb[81].mxu1 }
 0x526   : > { %v7219_v58 = vadd.f32 %v2728_v61, %v2591_v1  ;;  %v4904_v52 = vpop.f32.mrb[65].mxu0 }
 0x527   : > { %v7223_v47 = vsel %vm1583_vm4, %v2954_v19, -1e+30 }
 0x528   : > { %v2915_v6 = vpop.f32.mrb[82].mxu1  ;;  %v2972_v36 = vsel %vm1771_vm5, %v7223_v47, -inf }
 0x529   : > { %v2955_v31 = vmul.f32 0.17677669, %v2915_v6  ;;  %2973 = vmax.xlane.f32.xlu1 %v2972_v36  ;;  %v2733_v59 = vpop.f32.mrb[66].mxu0  ;;  %v4952_v16 = vpop.f32.mrb[83].mxu1 }
 0x52a   : > { %v7227_v3 = vadd.f32 %v2733_v59, %v2596_v37  ;;  %v4907_v10 = vpop.f32.mrb[67].mxu0 }
 0x52b   : > { %v7231_v43 = vsel %vm1583_vm4, %v2955_v31, -1e+30 }
 0x52c   : > { %v2920_v42 = vpop.f32.mrb[84].mxu1  ;;  %v2975_v7 = vsel %vm1771_vm5, %v7231_v43, -inf }
 0x52d   : > { %v2956_v4 = vmul.f32 0.17677669, %v2920_v42  ;;  %2976 = vmax.xlane.f32.xlu0 %v2975_v7  ;;  %v2738_v46 = vpop.f32.mrb[68].mxu0  ;;  %v4955_v9 = vpop.f32.mrb[85].mxu1 }
 0x52e   : > { %v7235_v29 = vadd.f32 %v2738_v46, %v2601_v63  ;;  %v4910_v22 = vpop.f32.mrb[69].mxu0 }
 0x52f   : > { %v7239_v48 = vsel %vm1583_vm4, %v2956_v4, -1e+30 }
 0x530   : > { %v2925_v60 = vpop.f32.mrb[86].mxu1  ;;  %v2978_v1 = vsel %vm1771_vm5, %v7239_v48, -inf }
 0x531   : > { %2979 = vmax.xlane.f32.xlu0 %v2978_v1  ;;  %v2743_v49 = vpop.f32.mrb[70].mxu0  ;;  %v4958_v37 = vpop.f32.mrb[87].mxu1 }
 0x532   : > { %v7243_v41 = vadd.f32 %v2743_v49, %v2606_v12  ;;  %v4913_v21 = vpop.f32.mrb[71].mxu0 }
 0x534   : > { %v2930_v24 = vpop.f32.mrb[88].mxu1 }
 0x535   : > { %v2958_v34 = vmul.f32 0.17677669, %v2930_v24  ;;  %v2748_v44 = vpop.f32.mrb[72].mxu0  ;;  %v4961_v63 = vpop.f32.mrb[89].mxu1 }
 0x536   : > { %v7245_v17 = vadd.f32 %v2748_v44, %v2611_v2  ;;  %v4916_v50 = vpop.f32.mrb[73].mxu0  ;;  %v2957_v63 = vmul.f32 0.17677669, %v2925_v60 }
 0x537   : > { %v7249_v26 = vsel %vm1583_vm4, %v2958_v34, -1e+30 }
 0x538   : > { %v2935_v25 = vpop.f32.mrb[90].mxu1  ;;  %v2984_v19 = vsel %vm1771_vm5, %v7249_v26, -inf }
 0x539   : > { %v2959_v61 = vmul.f32 0.17677669, %v2935_v25  ;;  %2985 = vmax.xlane.f32.xlu0 %v2984_v19  ;;  %v2753_v12 = vpop.f32.mrb[74].mxu0  ;;  %v4964_v13 = vpop.f32.mrb[91].mxu1  ;;  %v7285_v25 = vsel %vm1583_vm4, %v2957_v63, -1e+30 }
 0x53a   : > { %v7253_v52 = vadd.f32 %v2753_v12, %v2616_v55  ;;  %5403 = vrot.lane.b32.xlu1 %v6511_v11, %s5609_s12  ;;  %v4919_v2 = vpop.f32.mrb[75].mxu0  ;;  %v2981_v19 = vsel %vm1771_vm5, %v7285_v25, -inf }
 0x53b   : > { %v7259_v6 = vsel %vm1583_vm4, %v2959_v61, -1e+30 }
 0x53c   : > { %v2940_v36 = vpop.f32.mrb[92].mxu1  ;;  %v2987_v31 = vsel %vm1771_vm5, %v7259_v6, -inf }
 0x53d   : > { %2988 = vmax.xlane.f32.xlu0 %v2987_v31  ;;  %v2758_v59 = vpop.f32.mrb[76].mxu0  ;;  %v4967_v16 = vpop.f32.mrb[93].mxu1  ;;  %v2960_v50 = vmul.f32 0.17677669, %v2940_v36 }
 0x53e   : > { %v7263_v10 = vadd.f32 %v2758_v59, %v2621_v54  ;;  %v4922_v42 = vpop.f32.mrb[77].mxu0 }
 0x540   : > { %v2945_v55 = vpop.f32.mrb[94].mxu1 }
 0x541   : > { %v2961_v7 = vmul.f32 0.17677669, %v2945_v55  ;;  %v2763_v4 = vpop.f32.mrb[78].mxu0  ;;  %v4970_v46 = vpop.f32.mrb[95].mxu1 }
 0x542   : > { %v7266_v11 = vadd.f32 %v2763_v4, %v7215_v51  ;;  %v4925_v9 = vpop.f32.mrb[79].mxu0 }
 0x543   : > { %v7270_v22 = vsel %vm1583_vm4, %v2961_v7, -1e+30 }
 0x544   : > { %v2950_v1 = vpop.f32.mrb[96].mxu1  ;;  %v2993_v49 = vsel %vm1771_vm5, %v7270_v22, -inf }
 0x545   : > { %v2962_v37 = vmul.f32 0.17677669, %v2950_v1  ;;  %2994 = vmax.xlane.f32.xlu0 %v2993_v49  ;;  %v2768_v54 = vpop.f32.mrb[80].mxu0  ;;  %v4973_v21 = vpop.f32.mrb[97].mxu1 }
 0x546   : > { %v7275_v24 = vadd.f32 %v2768_v54, %v7217_v15  ;;  %v4928_v34 = vpop.f32.mrb[81].mxu0  ;;  %v7291_v15 = vsel %vm1583_vm4, %v2960_v50, -1e+30 }
 0x547   : > { %v7279_v51 = vsel %vm1583_vm4, %v2962_v37, -1e+30  ;;  %v2990_v61 = vsel %vm1771_vm5, %v7291_v15, -inf }
 0x548   : > { %v2996_v44 = vsel %vm1771_vm5, %v7279_v51, -inf }
 0x549   : > { %2997 = vmax.xlane.f32.xlu0 %v2996_v44 }
 0x55e   : > { %2982 = vmax.xlane.f32.xlu1 %v2981_v19 }
 0x55f   : > { %5408 = vrot.lane.b32.xlu0 %v6518_v45, %s5609_s12 }
 0x562   : > { %2991 = vmax.xlane.f32.xlu1 %v2990_v61 }
 0x563   : > { %3396 = vrot.lane.b32.xlu0 %v6596_v18, %s5609_s12 }
 0x567   : > { %3400 = vrot.lane.b32.xlu0 %v6490_v56, %s5609_s12  ;;  %v5399_v56 = vpop.permute.xlu1 %5398 }
 0x568   : > { %v5401_v18 = vunpack.i.h.bf16 %v5399_v56 }
 0x56b   : > { %3404 = vrot.lane.b32.xlu0 %v6494_v28, %s5609_s12 }
 0x56f   : > { %5423 = vrot.lane.b32.xlu0 %v6686_v40, %s5609_s12 }
 0x573   : > { %5413 = vrot.lane.b32.xlu1 %v6538_v32, %s5609_s12 }
 0x577   : > { %3424 = vrot.lane.b32.xlu1 %v6550_v39, %s5609_s12 }
 0x57b   : > { %3390 = vrot.lane.b32.xlu1 %v6525_v33, %s5609_s12 }
 0x57f   : > { %3392 = vrot.lane.b32.xlu1 %v6558_v8, %s5609_s12 }
 0x583   : > { %3394 = vrot.lane.b32.xlu1 %v6578_v20, %s5609_s12 }
 0x587   : > { %3398 = vrot.lane.b32.xlu1 %v6617_v5, %s5609_s12  ;;  %v5400_v5 = vunpack.i.l.bf16 %v5399_v56 }
 0x58b   : > { %3402 = vrot.lane.b32.xlu1 %v6492_v27, %s5609_s12 }
 0x58f   : > { %3406 = vrot.lane.b32.xlu1 %v6496_v35, %s5609_s12 }
 0x593   : > { %5418 = vrot.lane.b32.xlu1 %v6681_v23, %s5609_s12  ;;  %v5270_v23 = vpack.c.bf16 %v5401_v18, %v5400_v5 }
 0x5b6   : > { %v2974_v28 = vpop.xlane.xlu1 %2973 }
 0x5b7   : > { %v2999_v45 = vsub.f32 %v7223_v47, %v2974_v28 }
 0x5b9   : > { %v3008_v33 = vmul.f32 1.442695, %v2999_v45 }
 0x5ba   : > { %v2977_v32 = vpop.xlane.xlu0 %2976  ;;  %v5404_v60 = vpop.permute.xlu1 %5403 }
 0x5bb   : > { %5509 = vpow2.f32 %v3008_v33  ;;  %v3000_v39 = vsub.f32 %v7231_v43, %v2977_v32  ;;  %v5406_v13 = vunpack.i.h.bf16 %v5404_v60  ;;  %v5405_v2 = vunpack.i.l.bf16 %v5404_v60 }
 0x5bd   : > { %v3010_v8 = vmul.f32 1.442695, %v3000_v39  ;;  %v5274_v59 = vpack.c.bf16 %v5406_v13, %v5405_v2 }
 0x5be   : > { %v2980_v20 = vpop.xlane.xlu0 %2979 }
 0x5bf   : > { %5511 = vpow2.f32 %v3010_v8  ;;  %v3001_v27 = vsub.f32 %v7239_v48, %v2980_v20 }
 0x5c1   : > { %v3012_v35 = vmul.f32 1.442695, %v3001_v27 }
 0x5c3   : > { %5513 = vpow2.f32 %v3012_v35 }
 0x5c5   : > { %v5510_v40 = vpop.eup %5509 }
 0x5c6   : > { %4993 = vmatmul.mubr.msk.f32.vlgmr.msra.gmra.mrb[82].mxu0 %vm1771_vm5, %v5510_v40  ;;  %v2986_v47 = vpop.xlane.xlu0 %2985  ;;  %v3026_v12 = vsel %vm1771_vm5, %v5510_v40, 0.0 }
 0x5c7   : > { %5272 = vmatpush3.bf16.xpose.msk.msra.mxu0 %vm6500_vm3, %v5270_v23  ;;  %v3003_v43 = vsub.f32 %v7249_v26, %v2986_v47  ;;  %3027 = vadd.xlane.f32.xlu0 %v3026_v12  ;;  %v1586_v12 = vld [vmem:[%s7641_s8 + $0x10] sm:$0xff] }
 0x5c8   : > { %4995 = vmatprep.mubr.msk.f32.mxu0 %vm5605_vm0, %v7697_v53  ;;  %5273 = vmatprep.subr.bf16.mxu0 %v7719_v30 }
 0x5c9   : > { %v5512_v48 = vpop.eup %5511  ;;  %v3016_v36 = vmul.f32 1.442695, %v3003_v43  ;;  %5020 = vmatpush3.msra.mxu1 %v1586_v12 }
 0x5ca   : > { %4996 = vmatmul.mubr.msk.f32.gmra.mrb[84].mxu0 %vm1771_vm5, %v5512_v48  ;;  %v3029_v31 = vsel %vm1771_vm5, %v5512_v48, 0.0  ;;  %v2989_v16 = vpop.xlane.xlu0 %2988  ;;  %5285 = vmatprep.subr.bf16.mxu1 %v7719_v30 }
 0x5cb   : > { %5515 = vpow2.f32 %v3016_v36  ;;  %3030 = vadd.xlane.f32.xlu1 %v3029_v31  ;;  %4998 = vmatprep.mubr.msk.f32.mxu0 %vm5605_vm0, %v7697_v53  ;;  %v3004_v54 = vsub.f32 %v7259_v6, %v2989_v16 }
 0x5cd   : > { %v5514_v26 = vpop.eup %5513  ;;  %v3018_v63 = vmul.f32 1.442695, %v3004_v54 }
 0x5ce   : > { %4999 = vmatmul.mubr.msk.f32.gmra.mrb[86].mxu0 %vm1771_vm5, %v5514_v26  ;;  %v3032_v42 = vsel %vm1771_vm5, %v5514_v26, 0.0 }
 0x5cf   : > { %5276 = vmatpush3.bf16.xpose.msk.msra.mxu0 %vm6500_vm3, %v5274_v59  ;;  %3033 = vadd.xlane.f32.xlu0 %v3032_v42 }
 0x5d0   : > { %5277 = vmatprep.subr.bf16.mxu0 %v7719_v30  ;;  %5001 = vmatprep.mubr.msk.f32.mxu0 %vm5605_vm0, %v7697_v53 }
 0x5d2   : > { %v2995_v55 = vpop.xlane.xlu0 %2994 }
 0x5d3   : > { %v3006_v44 = vsub.f32 %v7270_v22, %v2995_v55 }
 0x5d5   : > { %v5516_v7 = vpop.eup %5515  ;;  %v3022_v28 = vmul.f32 1.442695, %v3006_v44 }
 0x5d6   : > { %v2998_v4 = vpop.xlane.xlu0 %2997  ;;  %v3038_v46 = vsel %vm1771_vm5, %v5516_v7, 0.0 }
 0x5d7   : > { %3039 = vadd.xlane.f32.xlu1 %v3038_v46  ;;  %v3007_v50 = vsub.f32 %v7279_v51, %v2998_v4 }
 0x5d9   : > { %v3024_v45 = vmul.f32 1.442695, %v3007_v50 }
 0x5da   : > { %v5409_v9 = vpop.permute.xlu0 %5408 }
 0x5db   : > { %v5411_v1 = vunpack.i.h.bf16 %v5409_v9  ;;  %v5410_v49 = vunpack.i.l.bf16 %v5409_v9 }
 0x5dd   : > { %v5278_v37 = vpack.c.bf16 %v5411_v1, %v5410_v49 }
 0x5de   : > { %v3397_v43 = vpop.permute.xlu0 %3396 }
 0x5df   : > { %5280 = vmatpush3.bf16.xpose.msk.msra.mxu0 %vm6500_vm3, %v5278_v37 }
 0x5e0   : > { %5281 = vmatprep.subr.bf16.mxu0 %v7719_v30 }
 0x5e2   : > { %v3401_v13 = vpop.permute.xlu0 %3400 }
 0x5e6   : > { %v3405_v36 = vpop.permute.xlu0 %3404 }
 0x5ea   : > { %v5424_v26 = vpop.permute.xlu0 %5423 }
 0x5eb   : > { %v2983_v21 = vpop.xlane.xlu1 %2982  ;;  %v5426_v37 = vunpack.i.h.bf16 %v5424_v26  ;;  %v5425_v54 = vunpack.i.l.bf16 %v5424_v26 }
 0x5ec   : > { %v3002_v34 = vsub.f32 %v7285_v25, %v2983_v21 }
 0x5ee   : > { %v3014_v19 = vmul.f32 1.442695, %v3002_v34 }
 0x5ef   : > { %v2992_v61 = vpop.xlane.xlu1 %2991 }
 0x5f0   : > { %5517 = vpow2.f32 %v3014_v19  ;;  %v3005_v56 = vsub.f32 %v7291_v15, %v2992_v61  ;;  %v5289_v19 = vpack.c.bf16 %v5426_v37, %v5425_v54 }
 0x5f1   : > { %5519 = vpow2.f32 %v3018_v63 }
 0x5f2   : > { %v3020_v33 = vmul.f32 1.442695, %v3005_v56 }
 0x5f3   : > { %v5414_v32 = vpop.permute.xlu1 %5413 }
 0x5f4   : > { %5521 = vpow2.f32 %v3020_v33  ;;  %v5416_v6 = vunpack.i.h.bf16 %v5414_v32  ;;  %v5415_v39 = vunpack.i.l.bf16 %v5414_v32 }
 0x5f5   : > { %5523 = vpow2.f32 %v3022_v28 }
 0x5f6   : > { %5525 = vpow2.f32 %v3024_v45  ;;  %v5282_v25 = vpack.c.bf16 %v5416_v6, %v5415_v39 }
 0x5f7   : > { %v3425_v5 = vpop.permute.xlu1 %3424 }
 0x5f8   : > { %5284 = vmatpush3.bf16.xpose.msk.msra.mxu0 %vm6500_vm3, %v5282_v25 }
 0x5f9   : > { %5064 = vmatprep.subr.mxu0 %v7697_v53 }
 0x5fa   : > { %v5518_v22 = vpop.eup %5517 }
 0x5fb   : > { %5002 = vmatmul.mubr.msk.f32.gmra.mrb[88].mxu0 %vm1771_vm5, %v5518_v22  ;;  %v3035_v51 = vsel %vm1771_vm5, %v5518_v22, 0.0  ;;  %v5520_v15 = vpop.eup %5519  ;;  %v3391_v23 = vpop.permute.xlu1 %3390 }
 0x5fc   : > { %3036 = vadd.xlane.f32.xlu0 %v3035_v51  ;;  %5004 = vmatprep.mubr.msk.f32.mxu0 %vm5605_vm0, %v7697_v53  ;;  %v3041_v0 = vsel %vm1771_vm5, %v5520_v15, 0.0 }
 0x5fe   : > { %v5522_v8 = vpop.eup %5521 }
 0x5ff   : > { %v5524_v20 = vpop.eup %5523  ;;  %5005 = vmatmul.mubr.msk.f32.gmra.mrb[90].mxu0 %vm1771_vm5, %v5516_v7  ;;  %v3044_v27 = vsel %vm1771_vm5, %v5522_v8, 0.0  ;;  %v3393_v60 = vpop.permute.xlu1 %3392 }
 0x600   : > { %v5526_v18 = vpop.eup %5525  ;;  %3045 = vadd.xlane.f32.xlu1 %v3044_v27  ;;  %3042 = vadd.xlane.f32.xlu0 %v3041_v0  ;;  %v3047_v35 = vsel %vm1771_vm5, %v5524_v20, 0.0 }
 0x601   : > { %5065 = vmatpush3.xpose.msk.msra.mxu0 %vm1588_vm2, %v3425_v5  ;;  %5007 = vmatprep.mubr.msk.f32.mxu0 %vm5605_vm0, %v7697_v53  ;;  %v3050_v40 = vsel %vm1771_vm5, %v5526_v18, 0.0 }
 0x602   : > { %5138 = vmatprep.subr.mxu0 %v7697_v53 }
 0x603   : > { %5008 = vmatmul.mubr.msk.f32.gmra.mrb[92].mxu0 %vm1771_vm5, %v5520_v15  ;;  %v3395_v47 = vpop.permute.xlu1 %3394 }
 0x604   : > { %3048 = vadd.xlane.f32.xlu0 %v3047_v35  ;;  %3051 = vadd.xlane.f32.xlu1 %v3050_v40 }
 0x605   : > { %5010 = vmatprep.mubr.msk.f32.mxu0 %vm5605_vm0, %v7697_v53 }
 0x607   : > { %5011 = vmatmul.mubr.msk.f32.gmra.mrb[94].mxu0 %vm1771_vm5, %v5522_v8  ;;  %v3399_v48 = vpop.permute.xlu1 %3398 }
 0x608   : > { %5013 = vmatprep.mubr.msk.f32.mxu0 %vm5605_vm0, %v7697_v53 }
 0x60b   : > { %5014 = vmatmul.mubr.msk.f32.gmra.mrb[96].mxu0 %vm1771_vm5, %v5524_v20  ;;  %v3403_v2 = vpop.permute.xlu1 %3402 }
 0x60c   : > { %5016 = vmatprep.mubr.msk.f32.mxu0 %vm5605_vm0, %v7697_v53 }
 0x60f   : > { %5017 = vmatmul.mubr.msk.f32.gmra.mrb[98].mxu0 %vm1771_vm5, %v5526_v18  ;;  %v3407_v31 = vpop.permute.xlu1 %3406 }
 0x610   : > { %5066 = vmatprep.mubr.msk.f32.mxu0 %vm5605_vm0, %v7697_v53 }
 0x613   : > { %5067 = vmatmul.mubr.msk.f32.vlgmr.msra.gmra.mrb[100].mxu0 %vm1588_vm2, %v3391_v23  ;;  %v5419_v59 = vpop.permute.xlu1 %5418 }
 0x614   : > { %5069 = vmatprep.mubr.msk.f32.mxu0 %vm5605_vm0, %v7697_v53  ;;  %v5421_v7 = vunpack.i.h.bf16 %v5419_v59  ;;  %v5420_v4 = vunpack.i.l.bf16 %v5419_v59 }
 0x616   : > { %v5286_v21 = vpack.c.bf16 %v5421_v7, %v5420_v4 }
 0x617   : > { %5070 = vmatmul.mubr.msk.f32.gmra.mrb[102].mxu0 %vm1588_vm2, %v3393_v60 }
 0x618   : > { %5072 = vmatprep.mubr.msk.f32.mxu0 %vm5605_vm0, %v7697_v53 }
 0x61b   : > { %5073 = vmatmul.mubr.msk.f32.gmra.mrb[104].mxu0 %vm1588_vm2, %v3395_v47 }
 0x61c   : > { %5075 = vmatprep.mubr.msk.f32.mxu0 %vm5605_vm0, %v7697_v53 }
 0x61f   : > { %5076 = vmatmul.mubr.msk.f32.gmra.mrb[106].mxu0 %vm1588_vm2, %v3397_v43 }
 0x620   : > { %5078 = vmatprep.mubr.msk.f32.mxu0 %vm5605_vm0, %v7697_v53 }
 0x623   : > { %5079 = vmatmul.mubr.msk.f32.gmra.mrb[108].mxu0 %vm1588_vm2, %v3399_v48 }
 0x624   : > { %5081 = vmatprep.mubr.msk.f32.mxu0 %vm5605_vm0, %v7697_v53 }
 0x627   : > { %5082 = vmatmul.mubr.msk.f32.gmra.mrb[110].mxu0 %vm1588_vm2, %v3401_v13 }
 0x628   : > { %5084 = vmatprep.mubr.msk.f32.mxu0 %vm5605_vm0, %v7697_v53 }
 0x62b   : > { %5085 = vmatmul.mubr.msk.f32.gmra.mrb[112].mxu0 %vm1588_vm2, %v3403_v2 }
 0x62c   : > { %5087 = vmatprep.mubr.msk.f32.mxu0 %vm5605_vm0, %v7697_v53 }
 0x62f   : > { %5088 = vmatmul.mubr.msk.f32.gmra.mrb[114].mxu0 %vm1588_vm2, %v3405_v36 }
 0x630   : > { %5090 = vmatprep.mubr.msk.f32.mxu0 %vm5605_vm0, %v7697_v53 }
 0x633   : > { %5091 = vmatmul.mubr.msk.f32.gmra.mrb[116].mxu0 %vm1588_vm2, %v3407_v31 }
 0x634   : > { %5140 = vmatprep.mubr.msk.f32.mxu0 %vm5605_vm0, %v7697_v53 }
 0x654   : > { %v3028_v16 = vpop.xlane.xlu0 %3027 }
 0x655   : > { %5527 = vrcp.f32 %v3028_v16 }
 0x658   : > { %v3031_v42 = vpop.xlane.xlu1 %3030 }
 0x659   : > { %5529 = vrcp.f32 %v3031_v42 }
 0x65c   : > { %v3034_v55 = vpop.xlane.xlu0 %3033 }
 0x65d   : > { %5531 = vrcp.f32 %v3034_v55 }
 0x65f   : > { %v5528_v46 = vpop.eup %5527 }
 0x663   : > { %v5530_v34 = vpop.eup %5529 }
 0x664   : > { %v3040_v32 = vpop.xlane.xlu1 %3039 }
 0x667   : > { %v5532_v61 = vpop.eup %5531 }
 0x689   : > { %v3037_v33 = vpop.xlane.xlu0 %3036 }
 0x68a   : > { %5533 = vrcp.f32 %v3037_v33 }
 0x68b   : > { %5535 = vrcp.f32 %v3040_v32 }
 0x68d   : > { %v3043_v6 = vpop.xlane.xlu0 %3042  ;;  %v3046_v39 = vpop.xlane.xlu1 %3045 }
 0x68e   : > { %5537 = vrcp.f32 %v3043_v6 }
 0x68f   : > { %5539 = vrcp.f32 %v3046_v39 }
 0x691   : > { %v3049_v8 = vpop.xlane.xlu0 %3048  ;;  %v3052_v5 = vpop.xlane.xlu1 %3051 }
 0x692   : > { %5541 = vrcp.f32 %v3049_v8 }
 0x693   : > { %5543 = vrcp.f32 %v3052_v5 }
 0x694   : > { %v5534_v25 = vpop.eup %5533 }
 0x695   : > { %v5536_v20 = vpop.eup %5535 }
 0x698   : > { %v5538_v35 = vpop.eup %5537 }
 0x699   : > { %v3173_v9 = vpop.f32.mrb[82].mxu0  ;;  %v5540_v47 = vpop.eup %5539 }
 0x69a   : > { %v3235_v1 = vmul.f32 %v5528_v46, %v3173_v9  ;;  %v4994_v49 = vpop.f32.mrb[83].mxu0 }
 0x69c   : > { %5022 = vmatmul.mubr.msk.f32.vlgmr.msra.gmra.mrb[98].mxu1 %vm1588_vm2, %v3235_v1  ;;  %v5542_v13 = vpop.eup %5541 }
 0x69d   : > { %5287 = vmatpush3.bf16.msra.mxu1 %v5286_v21  ;;  %v3178_v44 = vpop.f32.mrb[84].mxu0  ;;  %5024 = vmatprep.mubr.msk.f32.mxu1 %vm5605_vm0, %v7697_v53  ;;  %v5544_v26 = vpop.eup %5543 }
 0x69e   : > { %v3236_v63 = vmul.f32 %v5530_v34, %v3178_v44  ;;  %v4997_v50 = vpop.f32.mrb[85].mxu0  ;;  %5288 = vmatprep.subr.bf16.mxu1 %v7719_v30 }
 0x6a0   : > { %5025 = vmatmul.mubr.msk.f32.gmra.mrb[100].mxu1 %vm1588_vm2, %v3236_v63 }
 0x6a1   : > { %5290 = vmatpush3.bf16.msra.mxu1 %v5289_v19  ;;  %v3183_v56 = vpop.f32.mrb[86].mxu0  ;;  %5027 = vmatprep.mubr.msk.f32.mxu1 %vm5605_vm0, %v7697_v53 }
 0x6a2   : > { %v3237_v28 = vmul.f32 %v5532_v61, %v3183_v56  ;;  %v5000_v45 = vpop.f32.mrb[87].mxu0  ;;  %5291 = vmatprep.subr.bf16.mxu1 %v7719_v30 }
 0x6a4   : > { %5028 = vmatmul.mubr.msk.f32.gmra.mrb[102].mxu1 %vm1588_vm2, %v3237_v28 }
 0x6a5   : > { %5030 = vmatprep.mubr.msk.f32.mxu1 %vm5605_vm0, %v7697_v53 }
 0x6ce   : > { %v3188_v22 = vpop.f32.mrb[88].mxu0 }
 0x6cf   : > { %v3238_v51 = vmul.f32 %v5534_v25, %v3188_v22  ;;  %v5003_v15 = vpop.f32.mrb[89].mxu0 }
 0x6d1   : > { %5031 = vmatmul.mubr.msk.f32.gmra.mrb[104].mxu1 %vm1588_vm2, %v3238_v51 }
 0x6d2   : > { %v3193_v27 = vpop.f32.mrb[90].mxu0  ;;  %5033 = vmatprep.mubr.msk.f32.mxu1 %vm5605_vm0, %v7697_v53 }
 0x6d3   : > { %v3239_v0 = vmul.f32 %v5536_v20, %v3193_v27  ;;  %v5006_v18 = vpop.f32.mrb[91].mxu0 }
 0x6d5   : > { %5034 = vmatmul.mubr.msk.f32.gmra.mrb[106].mxu1 %vm1588_vm2, %v3239_v0 }
 0x6d6   : > { %v3198_v40 = vpop.f32.mrb[92].mxu0  ;;  %5036 = vmatprep.mubr.msk.f32.mxu1 %vm5605_vm0, %v7697_v53 }
 0x6d7   : > { %v3240_v23 = vmul.f32 %v5538_v35, %v3198_v40  ;;  %v5009_v60 = vpop.f32.mrb[93].mxu0 }
 0x6d9   : > { %5037 = vmatmul.mubr.msk.f32.gmra.mrb[108].mxu1 %vm1588_vm2, %v3240_v23 }
 0x6da   : > { %v3203_v12 = vpop.f32.mrb[94].mxu0  ;;  %5039 = vmatprep.mubr.msk.f32.mxu1 %vm5605_vm0, %v7697_v53 }
 0x6db   : > { %v3241_v43 = vmul.f32 %v5540_v47, %v3203_v12  ;;  %v5012_v48 = vpop.f32.mrb[95].mxu0 }
 0x6dd   : > { %5040 = vmatmul.mubr.msk.f32.gmra.mrb[110].mxu1 %vm1588_vm2, %v3241_v43 }
 0x6de   : > { %v3208_v2 = vpop.f32.mrb[96].mxu0  ;;  %5042 = vmatprep.mubr.msk.f32.mxu1 %vm5605_vm0, %v7697_v53 }
 0x6df   : > { %v3242_v36 = vmul.f32 %v5542_v13, %v3208_v2  ;;  %v5015_v31 = vpop.f32.mrb[97].mxu0 }
 0x6e1   : > { %5043 = vmatmul.mubr.msk.f32.gmra.mrb[112].mxu1 %vm1588_vm2, %v3242_v36 }
 0x6e2   : > { %v3213_v59 = vpop.f32.mrb[98].mxu0  ;;  %5045 = vmatprep.mubr.msk.f32.mxu1 %vm5605_vm0, %v7697_v53 }
 0x6e3   : > { %v3243_v16 = vmul.f32 %v5544_v26, %v3213_v59  ;;  %v5018_v42 = vpop.f32.mrb[99].mxu0 }
 0x6e5   : > { %5046 = vmatmul.mubr.msk.f32.gmra.mrb[114].mxu1 %vm1588_vm2, %v3243_v16 }
 0x6e6   : > { %v3528_v55 = vpop.f32.mrb[100].mxu0  ;;  %5111 = vmatprep.mubr.msk.f32.mxu1 %vm5605_vm0, %v7697_v53 }
 0x6e7   : > { %v3572_v7 = vmul.f32 0.17677669, %v3528_v55  ;;  %v5068_v4 = vpop.f32.mrb[101].mxu0 }
 0x6e9   : > { %v7444_v46 = vsel %vm1583_vm4, %v3572_v7, -1e+30 }
 0x6ea   : > { %v3533_v9 = vpop.f32.mrb[102].mxu0  ;;  %v3590_v1 = vsel %vm1771_vm5, %v7444_v46, -inf }
 0x6eb   : > { %v3573_v49 = vmul.f32 0.17677669, %v3533_v9  ;;  %3591 = vmax.xlane.f32.xlu0 %v3590_v1  ;;  %v5071_v37 = vpop.f32.mrb[103].mxu0 }
 0x6ed   : > { %v7450_v54 = vsel %vm1583_vm4, %v3573_v49, -1e+30 }
 0x6ee   : > { %v3538_v21 = vpop.f32.mrb[104].mxu0  ;;  %v3593_v34 = vsel %vm1771_vm5, %v7450_v54, -inf }
 0x6ef   : > { %v3574_v44 = vmul.f32 0.17677669, %v3538_v21  ;;  %3594 = vmax.xlane.f32.xlu1 %v3593_v34  ;;  %v5074_v63 = vpop.f32.mrb[105].mxu0 }
 0x6f1   : > { %v3583_v50 = vsel %vm1583_vm4, %v3574_v44, -1e+30 }
 0x6f2   : > { %v3543_v19 = vpop.f32.mrb[106].mxu0  ;;  %v3596_v61 = vsel %vm1771_vm5, %v3583_v50, -inf }
 0x6f3   : > { %v3575_v56 = vmul.f32 0.17677669, %v3543_v19  ;;  %3597 = vmax.xlane.f32.xlu0 %v3596_v61  ;;  %v5077_v28 = vpop.f32.mrb[107].mxu0 }
 0x6f5   : > { %v3584_v45 = vsel %vm1583_vm4, %v3575_v56, -1e+30 }
 0x6f6   : > { %v3548_v33 = vpop.f32.mrb[108].mxu0  ;;  %v3599_v32 = vsel %vm1771_vm5, %v3584_v45, -inf }
 0x6f7   : > { %3600 = vmax.xlane.f32.xlu0 %v3599_v32  ;;  %v5080_v6 = vpop.f32.mrb[109].mxu0  ;;  %v3576_v0 = vmul.f32 0.17677669, %v3548_v33 }
 0x6f9   : > { %v7466_v18 = vsel %vm1583_vm4, %v3576_v0, -1e+30 }
 0x6fa   : > { %v3553_v39 = vpop.f32.mrb[110].mxu0  ;;  %v3602_v5 = vsel %vm1771_vm5, %v7466_v18, -inf }
 0x6fb   : > { %v5083_v25 = vpop.f32.mrb[111].mxu0  ;;  %v3577_v35 = vmul.f32 0.17677669, %v3553_v39 }
 0x6fe   : > { %v3558_v22 = vpop.f32.mrb[112].mxu0 }
 0x6ff   : > { %v5086_v51 = vpop.f32.mrb[113].mxu0  ;;  %v3578_v40 = vmul.f32 0.17677669, %v3558_v22 }
 0x700   : > { %5433 = vrot.lane.b32.xlu1 %v6762_v38, %s5609_s12  ;;  %v7472_v38 = vsel %vm1583_vm4, %v3577_v35, -1e+30 }
 0x701   : > { %v3605_v23 = vsel %vm1771_vm5, %v7472_v38, -inf }
 0x702   : > { %v3563_v15 = vpop.f32.mrb[114].mxu0 }
 0x703   : > { %v5089_v8 = vpop.f32.mrb[115].mxu0  ;;  %v3579_v60 = vmul.f32 0.17677669, %v3563_v15 }
 0x705   : > { %v7484_v12 = vsel %vm1583_vm4, %v3579_v60, -1e+30 }
 0x706   : > { %v3568_v20 = vpop.f32.mrb[116].mxu0  ;;  %v3611_v48 = vsel %vm1771_vm5, %v7484_v12, -inf }
 0x707   : > { %v5092_v27 = vpop.f32.mrb[117].mxu0  ;;  %v3580_v43 = vmul.f32 0.17677669, %v3568_v20 }
 0x709   : > { %v7490_v13 = vsel %vm1583_vm4, %v3580_v43, -1e+30 }
 0x70a   : > { %v3614_v2 = vsel %vm1771_vm5, %v7490_v13, -inf }
 0x70d   : > { %5428 = vrot.lane.b32.xlu0 %v6747_v62, %s5609_s12  ;;  %v7478_v62 = vsel %vm1583_vm4, %v3578_v40, -1e+30 }
 0x70e   : > { %v3608_v47 = vsel %vm1771_vm5, %v7478_v62, -inf }
 0x724   : > { %3603 = vmax.xlane.f32.xlu1 %v3602_v5 }
 0x72c   : > { %3606 = vmax.xlane.f32.xlu0 %v3605_v23 }
 0x730   : > { %3609 = vmax.xlane.f32.xlu0 %v3608_v47 }
 0x734   : > { %3612 = vmax.xlane.f32.xlu0 %v3611_v48 }
 0x735   : > { %3687 = vrot.lane.b32.xlu1 %v6793_v14, %s5609_s12 }
 0x738   : > { %3615 = vmax.xlane.f32.xlu0 %v3614_v2 }
 0x76f   : > { %v3337_v36 = vpop.f32.mrb[98].mxu1 }
 0x770   : > { %v7497_v31 = vadd.f32 %v3337_v36, %v7219_v58  ;;  %v5023_v26 = vpop.f32.mrb[99].mxu1 }
 0x773   : > { %v3342_v59 = vpop.f32.mrb[100].mxu1 }
 0x774   : > { %v7500_v16 = vadd.f32 %v3342_v59, %v7227_v3  ;;  %v5026_v57 = vpop.f32.mrb[101].mxu1 }
 0x777   : > { %v3347_v42 = vpop.f32.mrb[102].mxu1 }
 0x778   : > { %v7503_v55 = vadd.f32 %v3347_v42, %v7235_v29  ;;  %v5029_v7 = vpop.f32.mrb[103].mxu1  ;;  %v3592_v14 = vpop.xlane.xlu0 %3591 }
 0x779   : > { %v3617_v4 = vsub.f32 %v7444_v46, %v3592_v14 }
 0x77b   : > { %v3626_v9 = vmul.f32 1.442695, %v3617_v4 }
 0x77c   : > { %v3595_v1 = vpop.xlane.xlu1 %3594 }
 0x77d   : > { %5545 = vpow2.f32 %v3626_v9  ;;  %v3618_v58 = vsub.f32 %v7450_v54, %v3595_v1 }
 0x77f   : > { %v3628_v49 = vmul.f32 1.442695, %v3618_v58 }
 0x780   : > { %v3598_v37 = vpop.xlane.xlu0 %3597  ;;  %v5434_v19 = vpop.permute.xlu1 %5433 }
 0x781   : > { %5547 = vpow2.f32 %v3628_v49  ;;  %v3619_v21 = vsub.f32 %v3583_v50, %v3598_v37  ;;  %v5436_v54 = vunpack.i.h.bf16 %v5434_v19  ;;  %v5435_v32 = vunpack.i.l.bf16 %v5434_v19 }
 0x783   : > { %v3630_v3 = vmul.f32 1.442695, %v3619_v21  ;;  %v5295_v39 = vpack.c.bf16 %v5436_v54, %v5435_v32 }
 0x784   : > { %v3601_v34 = vpop.xlane.xlu0 %3600 }
 0x785   : > { %5549 = vpow2.f32 %v3630_v3  ;;  %v3620_v44 = vsub.f32 %v3584_v45, %v3601_v34 }
 0x787   : > { %v5546_v63 = vpop.eup %5545  ;;  %v3632_v29 = vmul.f32 1.442695, %v3620_v44 }
 0x788   : > { %v5429_v61 = vpop.permute.xlu0 %5428  ;;  %v3644_v56 = vsel %vm1771_vm5, %v5546_v63, 0.0 }
 0x789   : > { %5551 = vpow2.f32 %v3632_v29  ;;  %v5431_v46 = vunpack.i.h.bf16 %v5429_v61  ;;  %v5430_v28 = vunpack.i.l.bf16 %v5429_v61  ;;  %3645 = vadd.xlane.f32.xlu1 %v3644_v56  ;;  %v1587_v29 = vld [vmem:[%s7641_s8 + $0x18] sm:$0xff] }
 0x78a   : > { %5139 = vmatpush3.msra.mxu0 %v1587_v29 }
 0x78b   : > { %v5548_v33 = vpop.eup %5547  ;;  %v5292_v6 = vpack.c.bf16 %v5431_v46, %v5430_v28 }
 0x78c   : > { %v3647_v50 = vsel %vm1771_vm5, %v5548_v33, 0.0 }
 0x78d   : > { %5293 = vmatpush3.bf16.msra.mxu1 %v5292_v6  ;;  %3648 = vadd.xlane.f32.xlu0 %v3647_v50 }
 0x78e   : > { %5294 = vmatprep.subr.bf16.mxu1 %v7719_v30 }
 0x78f   : > { %v5550_v45 = vpop.eup %5549 }
 0x790   : > { %v3650_v25 = vsel %vm1771_vm5, %v5550_v45, 0.0 }
 0x791   : > { %5296 = vmatpush3.bf16.msra.mxu1 %v5295_v39  ;;  %3651 = vadd.xlane.f32.xlu0 %v3650_v25 }
 0x792   : > { %5109 = vmatprep.subr.mxu1 %v7697_v53 }
 0x793   : > { %v5552_v22 = vpop.eup %5551 }
 0x794   : > { %v3653_v51 = vsel %vm1771_vm5, %v5552_v22, 0.0 }
 0x795   : > { %3654 = vadd.xlane.f32.xlu0 %v3653_v51 }
 0x7a4   : > { %v3352_v15 = vpop.f32.mrb[104].mxu1 }
 0x7a5   : > { %v7514_v8 = vadd.f32 %v3352_v15, %v7243_v41  ;;  %v5032_v20 = vpop.f32.mrb[105].mxu1 }
 0x7a8   : > { %v3357_v27 = vpop.f32.mrb[106].mxu1 }
 0x7a9   : > { %v7517_v30 = vadd.f32 %v3357_v27, %v7245_v17  ;;  %v5035_v0 = vpop.f32.mrb[107].mxu1 }
 0x7ac   : > { %v3362_v5 = vpop.f32.mrb[108].mxu1 }
 0x7ad   : > { %v7520_v35 = vadd.f32 %v3362_v5, %v7253_v52  ;;  %v5038_v40 = vpop.f32.mrb[109].mxu1 }
 0x7b0   : > { %v3367_v23 = vpop.f32.mrb[110].mxu1 }
 0x7b1   : > { %v7523_v60 = vadd.f32 %v3367_v23, %v7263_v10  ;;  %v5041_v47 = vpop.f32.mrb[111].mxu1  ;;  %v3604_v43 = vpop.xlane.xlu1 %3603 }
 0x7b2   : > { %v3621_v41 = vsub.f32 %v7466_v18, %v3604_v43 }
 0x7b4   : > { %v3634_v48 = vmul.f32 1.442695, %v3621_v41  ;;  %v3372_v2 = vpop.f32.mrb[112].mxu1 }
 0x7b5   : > { %v7527_v36 = vadd.f32 %v3372_v2, %v7266_v11  ;;  %v5044_v17 = vpop.f32.mrb[113].mxu1  ;;  %v3688_v26 = vpop.permute.xlu1 %3687 }
 0x7b6   : > { %5553 = vpow2.f32 %v3634_v48  ;;  %5110 = vmatpush3.msra.mxu1 %v3688_v26 }
 0x7b7   : > { %5112 = vmatmul.mubr.msk.f32.vlgmr.msra.gmra.mrb[116].mxu1 %vm1771_vm5, %v5546_v63 }
 0x7b8   : > { %v3377_v52 = vpop.f32.mrb[114].mxu1  ;;  %5114 = vmatprep.mubr.msk.f32.mxu1 %vm5605_vm0, %v7697_v53 }
 0x7b9   : > { %v7533_v10 = vadd.f32 %v3377_v52, %v7275_v24  ;;  %v5047_v59 = vpop.f32.mrb[115].mxu1  ;;  %v3607_v18 = vpop.xlane.xlu0 %3606 }
 0x7ba   : > { %v3622_v57 = vsub.f32 %v7472_v38, %v3607_v18 }
 0x7bb   : > { %5115 = vmatmul.mubr.msk.f32.gmra.mrb[118].mxu1 %vm1771_vm5, %v5548_v33 }
 0x7bc   : > { %v3636_v11 = vmul.f32 1.442695, %v3622_v57  ;;  %5117 = vmatprep.mubr.msk.f32.mxu1 %vm5605_vm0, %v7697_v53 }
 0x7bd   : > { %v3610_v42 = vpop.xlane.xlu0 %3609 }
 0x7be   : > { %5555 = vpow2.f32 %v3636_v11  ;;  %v3623_v7 = vsub.f32 %v7478_v62, %v3610_v42 }
 0x7bf   : > { %5118 = vmatmul.mubr.msk.f32.gmra.mrb[120].mxu1 %vm1771_vm5, %v5550_v45 }
 0x7c0   : > { %v5554_v14 = vpop.eup %5553  ;;  %v3638_v4 = vmul.f32 1.442695, %v3623_v7  ;;  %5120 = vmatprep.mubr.msk.f32.mxu1 %vm5605_vm0, %v7697_v53 }
 0x7c1   : > { %v3613_v24 = vpop.xlane.xlu0 %3612  ;;  %v3656_v38 = vsel %vm1771_vm5, %v5554_v14, 0.0 }
 0x7c2   : > { %5557 = vpow2.f32 %v3638_v4  ;;  %v3624_v9 = vsub.f32 %v7484_v12, %v3613_v24  ;;  %3657 = vadd.xlane.f32.xlu0 %v3656_v38 }
 0x7c3   : > { %5121 = vmatmul.mubr.msk.f32.gmra.mrb[122].mxu1 %vm1771_vm5, %v5552_v22 }
 0x7c4   : > { %v3640_v1 = vmul.f32 1.442695, %v3624_v9  ;;  %5123 = vmatprep.mubr.msk.f32.mxu1 %vm5605_vm0, %v7697_v53 }
 0x7c5   : > { %v3616_v62 = vpop.xlane.xlu0 %3615 }
 0x7c6   : > { %5559 = vpow2.f32 %v3640_v1  ;;  %v3625_v58 = vsub.f32 %v7490_v13, %v3616_v62 }
 0x7c7   : > { %5124 = vmatmul.mubr.msk.f32.gmra.mrb[124].mxu1 %vm1771_vm5, %v5554_v14 }
 0x7c8   : > { %v5556_v49 = vpop.eup %5555  ;;  %v3642_v37 = vmul.f32 1.442695, %v3625_v58  ;;  %5126 = vmatprep.mubr.msk.f32.mxu1 %vm5605_vm0, %v7697_v53 }
 0x7c9   : > { %v3659_v12 = vsel %vm1771_vm5, %v5556_v49, 0.0 }
 0x7ca   : > { %5561 = vpow2.f32 %v3642_v37  ;;  %3660 = vadd.xlane.f32.xlu0 %v3659_v12  ;;  %v4360_v12 = vld [vmem:[%s7642_s9] ss:$0 sm:$0xff] }
 0x7cb   : > { %5127 = vmatmul.mubr.msk.f32.gmra.mrb[126].mxu1 %vm1771_vm5, %v5556_v49 }
 0x7cc   : > { %v5558_v21 = vpop.eup %5557  ;;  %5129 = vmatprep.mubr.msk.f32.mxu1 %vm5605_vm0, %v7697_v53 }
 0x7cd   : > { %v3662_v3 = vsel %vm1771_vm5, %v5558_v21, 0.0 }
 0x7ce   : > { %3663 = vadd.xlane.f32.xlu0 %v3662_v3 }
 0x7cf   : > { %5130 = vmatmul.mubr.msk.f32.gmra.mrb[128].mxu1 %vm1771_vm5, %v5558_v21 }
 0x7d0   : > { %v5560_v13 = vpop.eup %5559  ;;  %5132 = vmatprep.mubr.msk.f32.mxu1 %vm5605_vm0, %v7697_v53 }
 0x7d1   : > { %v3665_v34 = vsel %vm1771_vm5, %v5560_v13, 0.0 }
 0x7d2   : > { %3666 = vadd.xlane.f32.xlu0 %v3665_v34 }
 0x7d3   : > { %5133 = vmatmul.mubr.msk.f32.gmra.mrb[130].mxu1 %vm1771_vm5, %v5560_v13 }
 0x7d4   : > { %v5562_v44 = vpop.eup %5561  ;;  %5135 = vmatprep.mubr.msk.f32.mxu1 %vm5605_vm0, %v7697_v53 }
 0x7d5   : > { %v3668_v63 = vsel %vm1771_vm5, %v5562_v44, 0.0 }
 0x7d6   : > { %3669 = vadd.xlane.f32.xlu0 %v3668_v63 }
 0x7d7   : > { %5136 = vmatmul.mubr.msk.f32.gmra.mrb[132].mxu1 %vm1771_vm5, %v5562_v44 }
 0x816   : > { %v3646_v61 = vpop.xlane.xlu1 %3645 }
 0x817   : > { %5563 = vrcp.f32 %v3646_v61 }
 0x81a   : > { %v3649_v19 = vpop.xlane.xlu0 %3648 }
 0x81b   : > { %5565 = vrcp.f32 %v3649_v19 }
 0x81e   : > { %v3652_v56 = vpop.xlane.xlu0 %3651 }
 0x81f   : > { %5567 = vrcp.f32 %v3652_v56 }
 0x821   : > { %v5564_v33 = vpop.eup %5563 }
 0x822   : > { %v3655_v46 = vpop.xlane.xlu0 %3654 }
 0x823   : > { %5569 = vrcp.f32 %v3655_v46 }
 0x825   : > { %v5566_v45 = vpop.eup %5565 }
 0x829   : > { %v5568_v15 = vpop.eup %5567 }
 0x82d   : > { %v5570_v5 = vpop.eup %5569 }
 0x84f   : > { %v3658_v28 = vpop.xlane.xlu0 %3657 }
 0x850   : > { %5571 = vrcp.f32 %v3658_v28 }
 0x857   : > { %v3661_v32 = vpop.xlane.xlu0 %3660 }
 0x858   : > { %5573 = vrcp.f32 %v3661_v32 }
 0x85a   : > { %v5572_v41 = vpop.eup %5571 }
 0x85b   : > { %v3664_v51 = vpop.xlane.xlu0 %3663 }
 0x85c   : > { %5575 = vrcp.f32 %v3664_v51 }
 0x85f   : > { %v3667_v23 = vpop.xlane.xlu0 %3666 }
 0x860   : > { %5577 = vrcp.f32 %v3667_v23 }
 0x862   : > { %v5574_v52 = vpop.eup %5573 }
 0x863   : > { %v3670_v26 = vpop.xlane.xlu0 %3669 }
 0x864   : > { %5579 = vrcp.f32 %v3670_v26 }
 0x866   : > { %v5576_v11 = vpop.eup %5575 }
 0x86a   : > { %v5578_v4 = vpop.eup %5577 }
 0x86e   : > { %v5580_v1 = vpop.eup %5579 }
 0x88a   : > { %v3791_v54 = vpop.f32.mrb[116].mxu1 }
 0x88b   : > { %v3853_v6 = vmul.f32 %v5564_v33, %v3791_v54  ;;  %v5113_v50 = vpop.f32.mrb[117].mxu1 }
 0x88d   : > { %5141 = vmatmul.mubr.msk.f32.vlgmr.msra.gmra.mrb[118].mxu0 %vm1588_vm2, %v3853_v6 }
 0x88e   : > { %v3796_v39 = vpop.f32.mrb[118].mxu1  ;;  %5143 = vmatprep.mubr.msk.f32.mxu0 %vm5605_vm0, %v7697_v53 }
 0x88f   : > { %v3854_v25 = vmul.f32 %v5566_v45, %v3796_v39  ;;  %v5116_v22 = vpop.f32.mrb[119].mxu1 }
 0x891   : > { %5144 = vmatmul.mubr.msk.f32.gmra.mrb[120].mxu0 %vm1588_vm2, %v3854_v25 }
 0x892   : > { %v3801_v20 = vpop.f32.mrb[120].mxu1  ;;  %5146 = vmatprep.mubr.msk.f32.mxu0 %vm5605_vm0, %v7697_v53 }
 0x893   : > { %v3855_v27 = vmul.f32 %v5568_v15, %v3801_v20  ;;  %v5119_v0 = vpop.f32.mrb[121].mxu1 }
 0x895   : > { %5147 = vmatmul.mubr.msk.f32.gmra.mrb[122].mxu0 %vm1588_vm2, %v3855_v27 }
 0x896   : > { %v3806_v40 = vpop.f32.mrb[122].mxu1  ;;  %5149 = vmatprep.mubr.msk.f32.mxu0 %vm5605_vm0, %v7697_v53 }
 0x897   : > { %v3856_v47 = vmul.f32 %v5570_v5, %v3806_v40  ;;  %v5122_v43 = vpop.f32.mrb[123].mxu1 }
 0x899   : > { %5150 = vmatmul.mubr.msk.f32.gmra.mrb[124].mxu0 %vm1588_vm2, %v3856_v47 }
 0x89a   : > { %v3811_v48 = vpop.f32.mrb[124].mxu1  ;;  %5152 = vmatprep.mubr.msk.f32.mxu0 %vm5605_vm0, %v7697_v53 }
 0x89b   : > { %v3857_v2 = vmul.f32 %v5572_v41, %v3811_v48  ;;  %v5125_v17 = vpop.f32.mrb[125].mxu1 }
 0x89d   : > { %5153 = vmatmul.mubr.msk.f32.gmra.mrb[126].mxu0 %vm1588_vm2, %v3857_v2 }
 0x89e   : > { %v3816_v59 = vpop.f32.mrb[126].mxu1  ;;  %5155 = vmatprep.mubr.msk.f32.mxu0 %vm5605_vm0, %v7697_v53 }
 0x89f   : > { %v3858_v18 = vmul.f32 %v5574_v52, %v3816_v59  ;;  %v5128_v57 = vpop.f32.mrb[127].mxu1 }
 0x8a1   : > { %5156 = vmatmul.mubr.msk.f32.gmra.mrb[128].mxu0 %vm1588_vm2, %v3858_v18 }
 0x8a2   : > { %v3821_v42 = vpop.f32.mrb[128].mxu1  ;;  %5158 = vmatprep.mubr.msk.f32.mxu0 %vm5605_vm0, %v7697_v53 }
 0x8a3   : > { %v3859_v7 = vmul.f32 %v5576_v11, %v3821_v42  ;;  %v5131_v14 = vpop.f32.mrb[129].mxu1 }
 0x8a5   : > { %5159 = vmatmul.mubr.msk.f32.gmra.mrb[130].mxu0 %vm1588_vm2, %v3859_v7 }
 0x8a6   : > { %v3826_v24 = vpop.f32.mrb[130].mxu1  ;;  %5161 = vmatprep.mubr.msk.f32.mxu0 %vm5605_vm0, %v7697_v53 }
 0x8a7   : > { %v3860_v38 = vmul.f32 %v5578_v4, %v3826_v24  ;;  %v5134_v9 = vpop.f32.mrb[131].mxu1 }
 0x8a9   : > { %5162 = vmatmul.mubr.msk.f32.gmra.mrb[132].mxu0 %vm1588_vm2, %v3860_v38 }
 0x8aa   : > { %v3831_v62 = vpop.f32.mrb[132].mxu1  ;;  %5164 = vmatprep.mubr.msk.f32.mxu0 %vm5605_vm0, %v7697_v53 }
 0x8ab   : > { %v3861_v58 = vmul.f32 %v5580_v1, %v3831_v62  ;;  %v5137_v49 = vpop.f32.mrb[133].mxu1 }
 0x8ad   : > { %5165 = vmatmul.mubr.msk.f32.gmra.mrb[134].mxu0 %vm1588_vm2, %v3861_v58 }
 0x960   : > { %v3955_v37 = vpop.f32.mrb[118].mxu0 }
 0x961   : > { %v3999_v21 = vadd.f32 %v3955_v37, %v7497_v31  ;;  %v5142_v3 = vpop.f32.mrb[119].mxu0 }
 0x963   : > { %v4015_v53 = vadd.f32 %v4360_v12, %v3999_v21 }
 0x964   : > { %v3960_v13 = vpop.f32.mrb[120].mxu0 }
 0x965   : > { %4024 = vst.msk [vmem:[%s7602_s26] sm:$0xff] %vm1167_vm1, %v4015_v53  ;;  %v4000_v34 = vadd.f32 %v3960_v13, %v7500_v16  ;;  %v5145_v44 = vpop.f32.mrb[121].mxu0 }
 0x967   : > { %v4016_v63 = vadd.f32 %v4360_v12, %v4000_v34 }
 0x968   : > { %v3965_v29 = vpop.f32.mrb[122].mxu0 }
 0x969   : > { %4025 = vst.msk [vmem:[%s7602_s26 + $0x8] sm:$0xff] %vm1167_vm1, %v4016_v63  ;;  %v4001_v31 = vadd.f32 %v3965_v29, %v7503_v55  ;;  %v5148_v19 = vpop.f32.mrb[123].mxu0 }
 0x96b   : > { %v4017_v61 = vadd.f32 %v4360_v12, %v4001_v31 }
 0x96c   : > { %v3970_v56 = vpop.f32.mrb[124].mxu0 }
 0x96d   : > { %4026 = vst.msk [vmem:[%s7602_s26 + $0x10] sm:$0xff] %vm1167_vm1, %v4017_v61  ;;  %v4002_v46 = vadd.f32 %v3970_v56, %v7514_v8  ;;  %v5151_v28 = vpop.f32.mrb[125].mxu0 }
 0x96f   : > { %v4018_v33 = vadd.f32 %v4360_v12, %v4002_v46 }
 0x970   : > { %v3975_v54 = vpop.f32.mrb[126].mxu0 }
 0x971   : > { %4027 = vst.msk [vmem:[%s7602_s26 + $0x18] sm:$0xff] %vm1167_vm1, %v4018_v33  ;;  %v4003_v16 = vadd.f32 %v3975_v54, %v7517_v30  ;;  %v5154_v32 = vpop.f32.mrb[127].mxu0 }
 0x973   : > { %v4019_v6 = vadd.f32 %v4360_v12, %v4003_v16 }
 0x974   : > { %v3980_v50 = vpop.f32.mrb[128].mxu0 }
 0x975   : > { %4028 = vst.msk [vmem:[%s7602_s26 + $0x20] sm:$0xff] %vm1167_vm1, %v4019_v6  ;;  %v4004_v55 = vadd.f32 %v3980_v50, %v7520_v35  ;;  %v5157_v45 = vpop.f32.mrb[129].mxu0 }
 0x977   : > { %v4020_v39 = vadd.f32 %v4360_v12, %v4004_v55 }
 0x978   : > { %v3985_v8 = vpop.f32.mrb[130].mxu0 }
 0x979   : > { %4029 = vst.msk [vmem:[%s7602_s26 + $0x28] sm:$0xff] %vm1167_vm1, %v4020_v39  ;;  %v4005_v25 = vadd.f32 %v3985_v8, %v7523_v60  ;;  %v5160_v22 = vpop.f32.mrb[131].mxu0 }
 0x97b   : > { %v4021_v51 = vadd.f32 %v4360_v12, %v4005_v25 }
 0x97c   : > { %v3990_v15 = vpop.f32.mrb[132].mxu0 }
 0x97d   : > { %4030 = vst.msk [vmem:[%s7602_s26 + $0x30] sm:$0xff] %vm1167_vm1, %v4021_v51  ;;  %v4006_v30 = vadd.f32 %v3990_v15, %v7527_v36  ;;  %v5163_v20 = vpop.f32.mrb[133].mxu0 }
 0x97f   : > { %v4022_v27 = vadd.f32 %v4360_v12, %v4006_v30 }
 0x980   : > { %v3995_v0 = vpop.f32.mrb[134].mxu0 }
 0x981   : > { %4031 = vst.msk [vmem:[%s7602_s26 + $0x38] sm:$0xff] %vm1167_vm1, %v4022_v27  ;;  %v4007_v35 = vadd.f32 %v3995_v0, %v7533_v10  ;;  %v5166_v5 = vpop.f32.mrb[135].mxu0 }
 0x983   : > { %v4023_v40 = vadd.f32 %v4360_v12, %v4007_v35 }
 0x985   : > { %4032 = vst.msk [vmem:[%s7602_s26 + $0x40] sm:$0xff] %vm1167_vm1, %v4023_v40 }
 0x986 PF: > { %s20_s13 = sadd.s32 1, %s5602_s13  }
 0x987   : > { %p17_p4 = scmp.ge.s32.totalorder %s20_s13, 4  }
 0x989   :  { %19 = sbr.rel (!%p17_p4) target bundleno = 1 (0x1), region = 95 }

</bundles_post_ra>
